<compile_context>
chip_gen: v5e
topology: v5e:2x2
jax: 0.10.0
libtpu: 0.0.40
codegen_flags: <defaults>
</compile_context>

<pallas_src>
import functools

import jax
import jax.numpy as jnp
from jax.experimental import pallas as pl
from jax.experimental.pallas import tpu as pltpu


# ---------------------------------------------------------------------------
# VMEM-aware planning
# ---------------------------------------------------------------------------
def _vmem_capacity_bytes():
    try:
        return int(pltpu.get_tpu_info().vmem_capacity_bytes)  # 128 MiB v5e/v6e, 64 MiB v7x
    except Exception:
        return 64 * 1024 * 1024


def _plan_tiles(H, W, Cin, Cout, c_sz, o_sz, row_tile=None):
    """Pick the row-tile TH (and K-fusion default) from the VMEM budget."""
    cap = _vmem_capacity_bytes()
    budget = int(0.75 * cap)
    rows_cap = 16384 if cap >= 96 * 1024 * 1024 else 8192
    fixed = 16 * Cin * Cout * c_sz + 4 * Cout            # resident packed taps + f32 bias
    fuse_default = Cin < 256                              # K=4*Cin fills the MXU better

    def est(th, fuse):
        slab = (th + 2) * (W + 2) * Cin * c_sz            # input tile (x2 buffered)
        outb = th * 2 * W * 2 * Cout * o_sz               # output block (x2 buffered)
        k = 4 if fuse else 9
        tmp = th * W * (k * Cin * c_sz + 6 * Cout * 4)    # in-kernel LHS/acc temporaries
        return fixed + 2 * slab + 2 * outb + tmp

    def fits(th):
        return th * W <= rows_cap and est(th, fuse_default) <= budget

    if row_tile is not None:
        th = max(1, min(int(row_tile), H))
        return th, fuse_default, est(th, fuse_default), cap

    if fits(H):                                           # whole image per step
        return H, fuse_default, est(H, fuse_default), cap

    th_any = 1
    for th in range(min(H, max(1, rows_cap // max(W, 1))), 0, -1):
        if fits(th):
            th_any = th
            break
    th_div = 1
    for th in range(th_any, 0, -1):                       # prefer an exact divisor of H
        if H % th == 0:
            th_div = th
            break
    th = th_div if 2 * th_div >= th_any else th_any
    return th, fuse_default, est(th, fuse_default), cap


# ---------------------------------------------------------------------------
# In-kernel compute: one (TH, W) row tile -> (TH, 2, W, 2*Cout) output block
# ---------------------------------------------------------------------------
def _deconv_tile(slab, w_ref, b_ref, o_ref, *, TH, W, Cin, Cout, fuse_k):
    # slab : Ref view (TH+2, W+2, Cin)     padded input tile, channels on lanes
    # w_ref: (4, 4*Cin, Cout)              packed taps, parity-major / (dr,dc)-K-order
    # b_ref: (1, Cout) f32
    # o_ref: (TH, 2, W, 2*Cout)            -> out[n, i, p, j, q*Cout+co]
    bias = b_ref[...]                                     # f32

    if fuse_k:
        # 4 K-fused matmuls (K = 4*Cin), one per sub-pixel parity.
        for p in (0, 1):
            halves = []
            for q in (0, 1):
                x_cat = jnp.concatenate(
                    [slab[p + dr:p + dr + TH, q + dc:q + dc + W, :]
                     for dr in (0, 1) for dc in (0, 1)],
                    axis=-1).reshape(TH * W, 4 * Cin)
                acc = jnp.dot(x_cat, w_ref[2 * p + q],
                              preferred_element_type=jnp.float32)
                halves.append(acc + bias)
            # lane-dense: one full-width (2*Cout) store per row parity
            res = jnp.concatenate(halves, axis=-1)
            o_ref[:, p, :, :] = res.astype(o_ref.dtype).reshape(TH, W, 2 * Cout)
    else:
        # Large Cin: K = Cin already fills the MXU; share the 9 shifted views.
        xs = {(r, c): slab[r:r + TH, c:c + W, :].reshape(TH * W, Cin)
              for r in (0, 1, 2) for c in (0, 1, 2)}
        for p in (0, 1):
            halves = []
            for q in (0, 1):
                acc = None
                for dr in (0, 1):
                    for dc in (0, 1):
                        k = 2 * dr + dc
                        part = jnp.dot(xs[(p + dr, q + dc)],
                                       w_ref[2 * p + q, k * Cin:(k + 1) * Cin, :],
                                       preferred_element_type=jnp.float32)
                        acc = part if acc is None else acc + part
                halves.append(acc + bias)
            res = jnp.concatenate(halves, axis=-1)
            o_ref[:, p, :, :] = res.astype(o_ref.dtype).reshape(TH, W, 2 * Cout)


def _make_kernel_resident(TH, W, Cin, Cout, fuse_k):
    """Whole padded image per grid step; BlockSpec auto-pipelining over batch."""
    def kernel(x_ref, w_ref, b_ref, o_ref):
        _deconv_tile(x_ref, w_ref, b_ref, o_ref,
                     TH=TH, W=W, Cin=Cin, Cout=Cout, fuse_k=fuse_k)
    return kernel


def _make_kernel_rowtiled(TH, W, Cin, Cout, fuse_k):
    """Row-tiled path: manual double-buffered halo DMA from HBM (overlapping
    row windows are not expressible with Blocked BlockSpecs)."""
    def kernel(x_hbm, w_ref, b_ref, o_ref, slab_ref, sem_ref):
        n = pl.program_id(0)
        t = pl.program_id(1)
        n_tiles = pl.num_programs(1)
        slot = t % 2

        def cp(tt, sl):
            return pltpu.make_async_copy(
                x_hbm.at[n, pl.ds(tt * TH, TH + 2)], slab_ref.at[sl], sem_ref.at[sl])

        @pl.when(t == 0)                     # prime the pipeline once per image
        def _():
            cp(t, slot).start()

        cp(t, slot).wait()

        @pl.when(t + 1 < n_tiles)            # prefetch the next row tile
        def _():
            cp(t + 1, 1 - slot).start()

        _deconv_tile(slab_ref.at[slot], w_ref, b_ref, o_ref,
                     TH=TH, W=W, Cin=Cin, Cout=Cout, fuse_k=fuse_k)
    return kernel


# ---------------------------------------------------------------------------
# Wrappers
# ---------------------------------------------------------------------------
def _pack_weights(weight, cdt):
    """(Cin, Cout, 4, 4) -> (4, 4*Cin, Cout): parity-major, (dr,dc)-ordered K."""
    taps = []
    for p in (0, 1):
        for q in (0, 1):
            taps.append(jnp.concatenate(
                [weight[:, :, 3 - p - 2 * dr, 3 - q - 2 * dc]
                 for dr in (0, 1) for dc in (0, 1)], axis=0))
    return jnp.stack(taps, axis=0).astype(cdt)


def cvti_forward_nhwc(x, weight, bias, *, compute_dtype=None, row_tile=None, fuse_k=None):
    """x: (N, Cin, H, W); weight: (Cin, Cout, 4, 4); bias: (Cout,).
    Returns NHWC (N, 2H, 2W, Cout) — the kernel's native, transpose-free layout."""
    N, Cin, H, W = x.shape
    Cout = weight.shape[1]
    odt = x.dtype                                           # module output dtype (f32)
    cdt = jnp.dtype(compute_dtype) if compute_dtype is not None else jnp.dtype(odt)
    c_sz = cdt.itemsize
    o_sz = jnp.dtype(odt).itemsize

    TH, fuse_auto, est_bytes, vmem_cap = _plan_tiles(H, W, Cin, Cout, c_sz, o_sz, row_tile)
    if fuse_k is None:
        fuse_k = fuse_auto
    n_tiles = pl.cdiv(H, TH)
    Hp = n_tiles * TH

    w_par = _pack_weights(weight, cdt)                      # (4, 4*Cin, Cout), VMEM-resident
    b_row = bias.reshape(1, Cout).astype(jnp.float32)

    # Single wrapper-side input pass: NCHW->NHWC transpose (+1-px pad + cast),
    # fused by XLA.  No halo-duplicated stacking.
    x_nhwc = jnp.transpose(x, (0, 2, 3, 1)).astype(cdt)
    xpad = jnp.pad(x_nhwc, ((0, 0), (1, 1 + Hp - H), (1, 1), (0, 0)))

    vmem_limit = int(min(vmem_cap - 4 * 1024 * 1024,
                         max(est_bytes + 16 * 1024 * 1024, 32 * 1024 * 1024)))
    cost = pl.CostEstimate(
        flops=32 * N * H * W * Cin * Cout, transcendentals=0,
        bytes_accessed=int(xpad.size * c_sz + w_par.size * c_sz
                           + N * 4 * H * W * Cout * o_sz))

    if n_tiles == 1:
        out5 = pl.pallas_call(
            _make_kernel_resident(TH, W, Cin, Cout, fuse_k),
            out_shape=jax.ShapeDtypeStruct((N, Hp, 2, W, 2 * Cout), odt),
            grid_spec=pltpu.PrefetchScalarGridSpec(
                num_scalar_prefetch=0, grid=(N,),
                in_specs=[
                    pl.BlockSpec((None, Hp + 2, W + 2, Cin), lambda n: (n, 0, 0, 0)),
                    pl.BlockSpec((4, 4 * Cin, Cout), lambda n: (0, 0, 0)),
                    pl.BlockSpec((1, Cout), lambda n: (0, 0)),
                ],
                out_specs=pl.BlockSpec((None, Hp, 2, W, 2 * Cout),
                                       lambda n: (n, 0, 0, 0, 0))),
            compiler_params=pltpu.CompilerParams(
                dimension_semantics=("parallel",), vmem_limit_bytes=vmem_limit),
            cost_estimate=cost,
        )(xpad, w_par, b_row)
    else:
        out5 = pl.pallas_call(
            _make_kernel_rowtiled(TH, W, Cin, Cout, fuse_k),
            out_shape=jax.ShapeDtypeStruct((N, Hp, 2, W, 2 * Cout), odt),
            grid_spec=pltpu.PrefetchScalarGridSpec(
                num_scalar_prefetch=0, grid=(N, n_tiles),
                in_specs=[
                    pl.BlockSpec(memory_space=pl.ANY),      # raw HBM; manual halo DMA
                    pl.BlockSpec((4, 4 * Cin, Cout), lambda n, t: (0, 0, 0)),
                    pl.BlockSpec((1, Cout), lambda n, t: (0, 0)),
                ],
                out_specs=pl.BlockSpec((None, TH, 2, W, 2 * Cout),
                                       lambda n, t: (n, t, 0, 0, 0)),
                scratch_shapes=[
                    pltpu.VMEM((2, TH + 2, W + 2, Cin), cdt),
                    pltpu.SemaphoreType.DMA((2,)),
                ]),
            compiler_params=pltpu.CompilerParams(
                dimension_semantics=("parallel", "arbitrary"),
                vmem_limit_bytes=vmem_limit),
            cost_estimate=cost,
        )(xpad, w_par, b_row)

    if Hp != H:
        out5 = out5[:, :H]                                  # drop ragged-tile rows
    # sub-pixel interleave (i,p)->2i+p, (j,q)->2j+q is a free reshape here
    return out5.reshape(N, 2 * H, 2 * W, Cout)


def cvti_forward(x, weight, bias, *, compute_dtype=None, row_tile=None, fuse_k=None):
    """Module-faithful NCHW output: (N, Cout, 2H, 2W)."""
    out_nhwc = cvti_forward_nhwc(x, weight, bias, compute_dtype=compute_dtype,
                                 row_tile=row_tile, fuse_k=fuse_k)
    # The module's NCHW contract forces one full pass over the 4x-upsampled
    # output; NHWC consumers should call cvti_forward_nhwc instead.
    return jnp.transpose(out_nhwc, (0, 3, 1, 2))


# ---------------------------------------------------------------------------
# Pure-JAX reference (transposed conv as lhs-dilated conv) for verification
# ---------------------------------------------------------------------------
def _ref_conv_transpose(x, weight, bias):
    w = jnp.transpose(weight, (1, 0, 2, 3))[:, :, ::-1, ::-1]   # OIHW, spatially flipped
    y = jax.lax.conv_general_dilated(
        x, w, window_strides=(1, 1), padding=((2, 2), (2, 2)),
        lhs_dilation=(2, 2), rhs_dilation=(1, 1),
        dimension_numbers=("NCHW", "OIHW", "NCHW"))
    return y + bias[None, :, None, None]


if __name__ == "__main__":
    key = jax.random.PRNGKey(0)
    kx, kw = jax.random.split(key)

    N, C_in, C_out, H, W = 2, 4, 8, 16, 16
    x = jax.random.normal(kx, (N, C_in, H, W), jnp.float32)
    # weight_init('gaussian'): weight ~ N(0, 0.02), bias = 0
    weight = 0.02 * jax.random.normal(kw, (C_in, C_out, 4, 4), jnp.float32)
    bias = jnp.zeros((C_out,), jnp.float32)

    y_ref = _ref_conv_transpose(x, weight, bias)

    # (1) default: f32, whole padded image per step (auto-pipelined over batch)
    y = jax.block_until_ready(jax.jit(cvti_forward)(x, weight, bias))
    assert y.shape == (N, C_out, 2 * H, 2 * W), y.shape
    assert jnp.allclose(y, y_ref, atol=1e-4, rtol=1e-4), \
        float(jnp.max(jnp.abs(y - y_ref)))

    # (2) row-tiled path (manual double-buffered halo DMA) + un-fused tap matmuls
    f_tiled = jax.jit(functools.partial(cvti_forward, row_tile=4, fuse_k=False))
    y2 = jax.block_until_ready(f_tiled(x, weight, bias))
    assert jnp.allclose(y2, y_ref, atol=1e-4, rtol=1e-4), \
        float(jnp.max(jnp.abs(y2 - y_ref)))

    # (3) row-tiled with a ragged last tile (H % row_tile != 0)
    f_ragged = jax.jit(functools.partial(cvti_forward, row_tile=6))
    y3 = jax.block_until_ready(f_ragged(x, weight, bias))
    assert jnp.allclose(y3, y_ref, atol=1e-4, rtol=1e-4), \
        float(jnp.max(jnp.abs(y3 - y_ref)))

    # (4) bf16 streaming (f32 accumulation / bias / f32 output), looser tolerance
    f_bf16 = jax.jit(functools.partial(cvti_forward, compute_dtype=jnp.bfloat16))
    y4 = jax.block_until_ready(f_bf16(x, weight, bias))
    assert jnp.allclose(y4, y_ref, atol=2e-2, rtol=2e-2), \
        float(jnp.max(jnp.abs(y4 - y_ref)))

    print("KERNEL_OK")
</pallas_src>

<mosaic_0001>
module attributes {stable_mosaic.version = 11 : i64} {
  func.func @kernel(%arg0: i32, %arg1: memref<1x18x18x4xf32, #tpu.memory_space<vmem>>, %arg2: memref<4x16x8xf32, #tpu.memory_space<vmem>>, %arg3: memref<1x8xf32, #tpu.memory_space<vmem>>, %arg4: memref<1x16x2x16x16xf32, #tpu.memory_space<vmem>>) attributes {dimension_semantics = [#tpu.dimension_semantics<parallel>], iteration_bounds = array<i64: 2>, scalar_prefetch = 0 : i64, scratch_operands = 0 : i64, tpu.core_type = #tpu.core_type<tc>, window_params = [{transform_indices = @transform_0, window_bounds = array<i64: 1, 18, 18, 4>}, {pipeline_mode = #tpu.pipeline_mode<synchronous>, transform_indices = @transform_1, window_bounds = array<i64: 4, 16, 8>}, {pipeline_mode = #tpu.pipeline_mode<synchronous>, transform_indices = @transform_2, window_bounds = array<i64: 1, 8>}, {transform_indices = @transform_3, window_bounds = array<i64: 1, 16, 2, 16, 16>}]} {
    %c0 = arith.constant 0 : index
    %c0_0 = arith.constant 0 : index
    %0 = vector.load %arg3[%c0, %c0_0] : memref<1x8xf32, #tpu.memory_space<vmem>>, vector<1x8xf32>
    %c0_1 = arith.constant 0 : index
    %c0_2 = arith.constant 0 : index
    %c0_3 = arith.constant 0 : index
    %c0_4 = arith.constant 0 : index
    %1 = vector.load %arg1[%c0_1, %c0_2, %c0_3, %c0_4] : memref<1x18x18x4xf32, #tpu.memory_space<vmem>>, vector<1x16x16x4xf32>
    %2 = vector.shape_cast %1 : vector<1x16x16x4xf32> to vector<16x16x4xf32>
    %c0_5 = arith.constant 0 : index
    %c0_6 = arith.constant 0 : index
    %c1 = arith.constant 1 : index
    %c0_7 = arith.constant 0 : index
    %3 = vector.load %arg1[%c0_5, %c0_6, %c1, %c0_7] : memref<1x18x18x4xf32, #tpu.memory_space<vmem>>, vector<1x16x16x4xf32>
    %4 = vector.shape_cast %3 : vector<1x16x16x4xf32> to vector<16x16x4xf32>
    %c0_8 = arith.constant 0 : index
    %c1_9 = arith.constant 1 : index
    %c0_10 = arith.constant 0 : index
    %c0_11 = arith.constant 0 : index
    %5 = vector.load %arg1[%c0_8, %c1_9, %c0_10, %c0_11] : memref<1x18x18x4xf32, #tpu.memory_space<vmem>>, vector<1x16x16x4xf32>
    %6 = vector.shape_cast %5 : vector<1x16x16x4xf32> to vector<16x16x4xf32>
    %c0_12 = arith.constant 0 : index
    %c1_13 = arith.constant 1 : index
    %c1_14 = arith.constant 1 : index
    %c0_15 = arith.constant 0 : index
    %7 = vector.load %arg1[%c0_12, %c1_13, %c1_14, %c0_15] : memref<1x18x18x4xf32, #tpu.memory_space<vmem>>, vector<1x16x16x4xf32>
    %8 = vector.shape_cast %7 : vector<1x16x16x4xf32> to vector<16x16x4xf32>
    %9 = tpu.concatenate %2, %4, %6, %8 in 2 : vector<16x16x4xf32>, vector<16x16x4xf32>, vector<16x16x4xf32>, vector<16x16x4xf32> -> vector<16x16x16xf32>
    %10 = vector.shape_cast %9 : vector<16x16x16xf32> to vector<256x16xf32>
    %c0_16 = arith.constant 0 : index
    %c0_17 = arith.constant 0 : index
    %c0_18 = arith.constant 0 : index
    %11 = vector.load %arg2[%c0_16, %c0_17, %c0_18] : memref<4x16x8xf32, #tpu.memory_space<vmem>>, vector<1x16x8xf32>
    %12 = vector.shape_cast %11 : vector<1x16x8xf32> to vector<16x8xf32>
    %cst = arith.constant dense<0.000000e+00> : vector<256x8xf32>
    %13 = tpu.matmul %10, %12, %cst {dimension_numbers = #tpu.dot_dimension_numbers<[1], [0], [0], [1], [0, 0, 1, 1], [], []>} : vector<256x16xf32>, vector<16x8xf32>, vector<256x8xf32> -> vector<256x8xf32>
    %14 = vector.broadcast %0 : vector<1x8xf32> to vector<256x8xf32>
    %15 = arith.addf %13, %14 : vector<256x8xf32>
    %c0_19 = arith.constant 0 : index
    %c0_20 = arith.constant 0 : index
    %c1_21 = arith.constant 1 : index
    %c0_22 = arith.constant 0 : index
    %16 = vector.load %arg1[%c0_19, %c0_20, %c1_21, %c0_22] : memref<1x18x18x4xf32, #tpu.memory_space<vmem>>, vector<1x16x16x4xf32>
    %17 = vector.shape_cast %16 : vector<1x16x16x4xf32> to vector<16x16x4xf32>
    %c0_23 = arith.constant 0 : index
    %c0_24 = arith.constant 0 : index
    %c2 = arith.constant 2 : index
    %c0_25 = arith.constant 0 : index
    %18 = vector.load %arg1[%c0_23, %c0_24, %c2, %c0_25] : memref<1x18x18x4xf32, #tpu.memory_space<vmem>>, vector<1x16x16x4xf32>
    %19 = vector.shape_cast %18 : vector<1x16x16x4xf32> to vector<16x16x4xf32>
    %c0_26 = arith.constant 0 : index
    %c1_27 = arith.constant 1 : index
    %c1_28 = arith.constant 1 : index
    %c0_29 = arith.constant 0 : index
    %20 = vector.load %arg1[%c0_26, %c1_27, %c1_28, %c0_29] : memref<1x18x18x4xf32, #tpu.memory_space<vmem>>, vector<1x16x16x4xf32>
    %21 = vector.shape_cast %20 : vector<1x16x16x4xf32> to vector<16x16x4xf32>
    %c0_30 = arith.constant 0 : index
    %c1_31 = arith.constant 1 : index
    %c2_32 = arith.constant 2 : index
    %c0_33 = arith.constant 0 : index
    %22 = vector.load %arg1[%c0_30, %c1_31, %c2_32, %c0_33] : memref<1x18x18x4xf32, #tpu.memory_space<vmem>>, vector<1x16x16x4xf32>
    %23 = vector.shape_cast %22 : vector<1x16x16x4xf32> to vector<16x16x4xf32>
    %24 = tpu.concatenate %17, %19, %21, %23 in 2 : vector<16x16x4xf32>, vector<16x16x4xf32>, vector<16x16x4xf32>, vector<16x16x4xf32> -> vector<16x16x16xf32>
    %25 = vector.shape_cast %24 : vector<16x16x16xf32> to vector<256x16xf32>
    %c1_34 = arith.constant 1 : index
    %c0_35 = arith.constant 0 : index
    %c0_36 = arith.constant 0 : index
    %26 = vector.load %arg2[%c1_34, %c0_35, %c0_36] : memref<4x16x8xf32, #tpu.memory_space<vmem>>, vector<1x16x8xf32>
    %27 = vector.shape_cast %26 : vector<1x16x8xf32> to vector<16x8xf32>
    %cst_37 = arith.constant dense<0.000000e+00> : vector<256x8xf32>
    %28 = tpu.matmul %25, %27, %cst_37 {dimension_numbers = #tpu.dot_dimension_numbers<[1], [0], [0], [1], [0, 0, 1, 1], [], []>} : vector<256x16xf32>, vector<16x8xf32>, vector<256x8xf32> -> vector<256x8xf32>
    %29 = vector.broadcast %0 : vector<1x8xf32> to vector<256x8xf32>
    %30 = arith.addf %28, %29 : vector<256x8xf32>
    %31 = tpu.concatenate %15, %30 in 1 : vector<256x8xf32>, vector<256x8xf32> -> vector<256x16xf32>
    %32 = vector.shape_cast %31 : vector<256x16xf32> to vector<16x16x16xf32>
    %c0_38 = arith.constant 0 : index
    %c0_39 = arith.constant 0 : index
    %c0_40 = arith.constant 0 : index
    %c0_41 = arith.constant 0 : index
    %c0_42 = arith.constant 0 : index
    %33 = vector.load %arg4[%c0_38, %c0_39, %c0_40, %c0_41, %c0_42] : memref<1x16x2x16x16xf32, #tpu.memory_space<vmem>>, vector<1x16x1x16x16xf32>
    %34 = vector.shape_cast %33 : vector<1x16x1x16x16xf32> to vector<16x16x16xf32>
    %35 = vector.shape_cast %32 : vector<16x16x16xf32> to vector<1x16x1x16x16xf32>
    tpu.vector_store %arg4[%c0_38, %c0_39, %c0_40, %c0_41, %c0_42], %35 {strides = array<i32>} : memref<1x16x2x16x16xf32, #tpu.memory_space<vmem>>, vector<1x16x1x16x16xf32>,
    %c0_43 = arith.constant 0 : index
    %c1_44 = arith.constant 1 : index
    %c0_45 = arith.constant 0 : index
    %c0_46 = arith.constant 0 : index
    %36 = vector.load %arg1[%c0_43, %c1_44, %c0_45, %c0_46] : memref<1x18x18x4xf32, #tpu.memory_space<vmem>>, vector<1x16x16x4xf32>
    %37 = vector.shape_cast %36 : vector<1x16x16x4xf32> to vector<16x16x4xf32>
    %c0_47 = arith.constant 0 : index
    %c1_48 = arith.constant 1 : index
    %c1_49 = arith.constant 1 : index
    %c0_50 = arith.constant 0 : index
    %38 = vector.load %arg1[%c0_47, %c1_48, %c1_49, %c0_50] : memref<1x18x18x4xf32, #tpu.memory_space<vmem>>, vector<1x16x16x4xf32>
    %39 = vector.shape_cast %38 : vector<1x16x16x4xf32> to vector<16x16x4xf32>
    %c0_51 = arith.constant 0 : index
    %c2_52 = arith.constant 2 : index
    %c0_53 = arith.constant 0 : index
    %c0_54 = arith.constant 0 : index
    %40 = vector.load %arg1[%c0_51, %c2_52, %c0_53, %c0_54] : memref<1x18x18x4xf32, #tpu.memory_space<vmem>>, vector<1x16x16x4xf32>
    %41 = vector.shape_cast %40 : vector<1x16x16x4xf32> to vector<16x16x4xf32>
    %c0_55 = arith.constant 0 : index
    %c2_56 = arith.constant 2 : index
    %c1_57 = arith.constant 1 : index
    %c0_58 = arith.constant 0 : index
    %42 = vector.load %arg1[%c0_55, %c2_56, %c1_57, %c0_58] : memref<1x18x18x4xf32, #tpu.memory_space<vmem>>, vector<1x16x16x4xf32>
    %43 = vector.shape_cast %42 : vector<1x16x16x4xf32> to vector<16x16x4xf32>
    %44 = tpu.concatenate %37, %39, %41, %43 in 2 : vector<16x16x4xf32>, vector<16x16x4xf32>, vector<16x16x4xf32>, vector<16x16x4xf32> -> vector<16x16x16xf32>
    %45 = vector.shape_cast %44 : vector<16x16x16xf32> to vector<256x16xf32>
    %c2_59 = arith.constant 2 : index
    %c0_60 = arith.constant 0 : index
    %c0_61 = arith.constant 0 : index
    %46 = vector.load %arg2[%c2_59, %c0_60, %c0_61] : memref<4x16x8xf32, #tpu.memory_space<vmem>>, vector<1x16x8xf32>
    %47 = vector.shape_cast %46 : vector<1x16x8xf32> to vector<16x8xf32>
    %cst_62 = arith.constant dense<0.000000e+00> : vector<256x8xf32>
    %48 = tpu.matmul %45, %47, %cst_62 {dimension_numbers = #tpu.dot_dimension_numbers<[1], [0], [0], [1], [0, 0, 1, 1], [], []>} : vector<256x16xf32>, vector<16x8xf32>, vector<256x8xf32> -> vector<256x8xf32>
    %49 = vector.broadcast %0 : vector<1x8xf32> to vector<256x8xf32>
    %50 = arith.addf %48, %49 : vector<256x8xf32>
    %c0_63 = arith.constant 0 : index
    %c1_64 = arith.constant 1 : index
    %c1_65 = arith.constant 1 : index
    %c0_66 = arith.constant 0 : index
    %51 = vector.load %arg1[%c0_63, %c1_64, %c1_65, %c0_66] : memref<1x18x18x4xf32, #tpu.memory_space<vmem>>, vector<1x16x16x4xf32>
    %52 = vector.shape_cast %51 : vector<1x16x16x4xf32> to vector<16x16x4xf32>
    %c0_67 = arith.constant 0 : index
    %c1_68 = arith.constant 1 : index
    %c2_69 = arith.constant 2 : index
    %c0_70 = arith.constant 0 : index
    %53 = vector.load %arg1[%c0_67, %c1_68, %c2_69, %c0_70] : memref<1x18x18x4xf32, #tpu.memory_space<vmem>>, vector<1x16x16x4xf32>
    %54 = vector.shape_cast %53 : vector<1x16x16x4xf32> to vector<16x16x4xf32>
    %c0_71 = arith.constant 0 : index
    %c2_72 = arith.constant 2 : index
    %c1_73 = arith.constant 1 : index
    %c0_74 = arith.constant 0 : index
    %55 = vector.load %arg1[%c0_71, %c2_72, %c1_73, %c0_74] : memref<1x18x18x4xf32, #tpu.memory_space<vmem>>, vector<1x16x16x4xf32>
    %56 = vector.shape_cast %55 : vector<1x16x16x4xf32> to vector<16x16x4xf32>
    %c0_75 = arith.constant 0 : index
    %c2_76 = arith.constant 2 : index
    %c2_77 = arith.constant 2 : index
    %c0_78 = arith.constant 0 : index
    %57 = vector.load %arg1[%c0_75, %c2_76, %c2_77, %c0_78] : memref<1x18x18x4xf32, #tpu.memory_space<vmem>>, vector<1x16x16x4xf32>
    %58 = vector.shape_cast %57 : vector<1x16x16x4xf32> to vector<16x16x4xf32>
    %59 = tpu.concatenate %52, %54, %56, %58 in 2 : vector<16x16x4xf32>, vector<16x16x4xf32>, vector<16x16x4xf32>, vector<16x16x4xf32> -> vector<16x16x16xf32>
    %60 = vector.shape_cast %59 : vector<16x16x16xf32> to vector<256x16xf32>
    %c3 = arith.constant 3 : index
    %c0_79 = arith.constant 0 : index
    %c0_80 = arith.constant 0 : index
    %61 = vector.load %arg2[%c3, %c0_79, %c0_80] : memref<4x16x8xf32, #tpu.memory_space<vmem>>, vector<1x16x8xf32>
    %62 = vector.shape_cast %61 : vector<1x16x8xf32> to vector<16x8xf32>
    %cst_81 = arith.constant dense<0.000000e+00> : vector<256x8xf32>
    %63 = tpu.matmul %60, %62, %cst_81 {dimension_numbers = #tpu.dot_dimension_numbers<[1], [0], [0], [1], [0, 0, 1, 1], [], []>} : vector<256x16xf32>, vector<16x8xf32>, vector<256x8xf32> -> vector<256x8xf32>
    %64 = vector.broadcast %0 : vector<1x8xf32> to vector<256x8xf32>
    %65 = arith.addf %63, %64 : vector<256x8xf32>
    %66 = tpu.concatenate %50, %65 in 1 : vector<256x8xf32>, vector<256x8xf32> -> vector<256x16xf32>
    %67 = vector.shape_cast %66 : vector<256x16xf32> to vector<16x16x16xf32>
    %c0_82 = arith.constant 0 : index
    %c0_83 = arith.constant 0 : index
    %c1_84 = arith.constant 1 : index
    %c0_85 = arith.constant 0 : index
    %c0_86 = arith.constant 0 : index
    %68 = vector.load %arg4[%c0_82, %c0_83, %c1_84, %c0_85, %c0_86] : memref<1x16x2x16x16xf32, #tpu.memory_space<vmem>>, vector<1x16x1x16x16xf32>
    %69 = vector.shape_cast %68 : vector<1x16x1x16x16xf32> to vector<16x16x16xf32>
    %70 = vector.shape_cast %67 : vector<16x16x16xf32> to vector<1x16x1x16x16xf32>
    tpu.vector_store %arg4[%c0_82, %c0_83, %c1_84, %c0_85, %c0_86], %70 {strides = array<i32>} : memref<1x16x2x16x16xf32, #tpu.memory_space<vmem>>, vector<1x16x1x16x16xf32>,
    return
  }
  func.func @transform_0(%arg0: i32) -> (i32, i32, i32, i32) {
    %c0_i32 = arith.constant 0 : i32
    %c0_i32_0 = arith.constant 0 : i32
    %c0_i32_1 = arith.constant 0 : i32
    %c0_i32_2 = arith.constant 0 : i32
    return %arg0, %c0_i32, %c0_i32_0, %c0_i32_1 : i32, i32, i32, i32
  }
  func.func @transform_1(%arg0: i32) -> (i32, i32, i32) {
    %c0_i32 = arith.constant 0 : i32
    %c0_i32_0 = arith.constant 0 : i32
    %c0_i32_1 = arith.constant 0 : i32
    %c0_i32_2 = arith.constant 0 : i32
    return %c0_i32, %c0_i32_0, %c0_i32_1 : i32, i32, i32
  }
  func.func @transform_2(%arg0: i32) -> (i32, i32) {
    %c0_i32 = arith.constant 0 : i32
    %c0_i32_0 = arith.constant 0 : i32
    %c0_i32_1 = arith.constant 0 : i32
    return %c0_i32, %c0_i32_0 : i32, i32
  }
  func.func @transform_3(%arg0: i32) -> (i32, i32, i32, i32, i32) {
    %c0_i32 = arith.constant 0 : i32
    %c0_i32_0 = arith.constant 0 : i32
    %c0_i32_1 = arith.constant 0 : i32
    %c0_i32_2 = arith.constant 0 : i32
    %c0_i32_3 = arith.constant 0 : i32
    return %arg0, %c0_i32, %c0_i32_0, %c0_i32_1, %c0_i32_2 : i32, i32, i32, i32, i32
  }
}

</mosaic_0001>

<bundles_post_ra>
// kernel: cvti_forward.1
= control target key start
LH: loop header
LB: loop body
LE: loop exit
PB: predicated region body
PF: predicated region fallthrough
CT: control target
= control target key end

     0   :  { %s4283_s12 = smov 0   ;;  %s7302_s0 = inlined_call_operand.vmem [shape: f32[2,18,18,4], index: 0, kind: input, shape index: {}]   ;;  %s7303_s1 = inlined_call_operand.vmem [shape: f32[4,16,8], index: 1, kind: input, shape index: {}]   ;;  %s7304_s2 = inlined_call_operand.vmem [shape: f32[1,8], index: 2, kind: input, shape index: {}]   ;;  %s7305_s3 = inlined_call_operand.vmem [shape: f32[2,16,2,16,16], index: 3, kind: output, shape index: {}]  }
   0x1 LB: > { %s3708_s13 = sadd.s32 4294967295, %s4258_s12   ;;  %p3712_p0 = scmp.ge.s32.totalorder %s4258_s12, 1  ;;  %s4258_s12 = sphi %s4283_s12, %s13_s12  }
   0x2   : > { %p137_p1 = scmp.lt.s32.totalorder %s4258_s12, 3 }
   0x4   : > { %p138_p2 = pnand %p3712_p0, %p137_p1 }
   0x6   : > { %141 = sbr.rel (%p138_p2) target bundleno = 1798 (0x706), region = 32 }
   0xb   : > { %p161_p3 = scmp.lt.s32.totalorder %s3708_s13, 1  ;;  %s4260_s18 = smov 4   ;;  %vm718_vm0 = vcmask 64512   ;;  %vm685_vm1 = vcmask 31744   ;;  %vm789_vm2 = vcmask 130048   ;;  %vm751_vm3 = vcmask 97280  }
   0xc   : > { %s4261_s19 = smov 8   ;;  %s4262_s20 = smov 12  }
   0xd   : > { %s7697_s13 = smov (!%p161_p3, %s3708_s13), 1 }
   0xe   : > { %s4173_s14 = smul.u32 432, %s7697_s13  ;;  %s4172_s4 = sshll.u32 %s7697_s13, 9 }
   0xf   : > { %s5794_s7 = scalar_lea.vmem %s7305_s3, %s4172_s4 }
  0x10   : > { %s4297_s17 = scalar_lea.vmem %s7302_s0, %s4173_s14 }
  0x11   : > { %v4300_v0 = vld [vmem:[%s4297_s17 + $0x31] sm:$0xff]  ;;  %v4303_v1 = vld [vmem:[%s4297_s17 + $0x19] sm:$0xff]  ;;  %v204_v2 = vld [vmem:[%s4297_s17 + $0x1] sm:$0xff] }
  0x12   : > { %341 = vrot.lane.b32.xlu2 %v4300_v0, %s4260_s18  ;;  %337 = vrot.lane.b32.xlu1 %v4303_v1, %s4260_s18  ;;  %v4312_v3 = vld [vmem:[%s4297_s17 + $0x39] sm:$0xff]  ;;  %v4315_v4 = vld [vmem:[%s4297_s17 + $0x21] sm:$0xff] }
  0x13   : > { %333 = vrot.lane.b32.xlu0 %v204_v2, %s4260_s18  ;;  %v205_v5 = vld [vmem:[%s4297_s17 + $0x9] sm:$0xff]  ;;  %v4324_v6 = vld [vmem:[%s4297_s17 + $0x61] sm:$0xff]  ;;  %v4327_v7 = vld [vmem:[%s4297_s17 + $0x51] sm:$0xff] }
  0x14   : > { %v4330_v8 = vld [vmem:[%s4297_s17 + $0x49] sm:$0xff]  ;;  %v4339_v9 = vld [vmem:[%s4297_s17 + $0x81] sm:$0xff]  ;;  %v4342_v10 = vld [vmem:[%s4297_s17 + $0x79] sm:$0xff] }
  0x15   : > { %v4345_v11 = vld [vmem:[%s4297_s17 + $0x69] sm:$0xff]  ;;  %v4357_v13 = vld [vmem:[%s4297_s17 + $0x99] sm:$0xff]  ;;  %v4360_v14 = vld [vmem:[%s4297_s17 + $0x91] sm:$0xff] }
  0x16   : > { %v4354_v12 = vld [vmem:[%s4297_s17 + $0xa9] sm:$0xff]  ;;  %v4372_v16 = vld [vmem:[%s4297_s17 + $0xc1] sm:$0xff]  ;;  %v4375_v17 = vld [vmem:[%s4297_s17 + $0xb1] sm:$0xff] }
  0x17   : > { %v4369_v15 = vld [vmem:[%s4297_s17 + $0xc9] sm:$0xff]  ;;  %7368 = vst [vmem:[#allocation2_spill] sm:$0xff] %v4375_v17  ;;  %v4384_v18 = vld [vmem:[%s4297_s17 + $0xf1] sm:$0xff]  ;;  %v4387_v19 = vld [vmem:[%s4297_s17 + $0xe1] sm:$0xff] }
  0x18   : > { %7369 = vst [vmem:[#allocation3_spill] sm:$0xff] %v4387_v19  ;;  %v4390_v20 = vld [vmem:[%s4297_s17 + $0xd9] sm:$0xff]  ;;  %v4399_v21 = vld [vmem:[%s4297_s17 + $0x111] sm:$0xff]  ;;  %v4402_v22 = vld [vmem:[%s4297_s17 + $0x109] sm:$0xff] }
  0x19   : > { %7370 = vst [vmem:[#allocation4_spill] sm:$0xff] %v4390_v20  ;;  %v4405_v23 = vld [vmem:[%s4297_s17 + $0xf9] sm:$0xff]  ;;  %v4417_v25 = vld [vmem:[%s4297_s17 + $0x129] sm:$0xff]  ;;  %v4420_v26 = vld [vmem:[%s4297_s17 + $0x121] sm:$0xff] }
  0x1a   : > { %343 = vrot.lane.b32.xlu2 %v4312_v3, %s4260_s18  ;;  %339 = vrot.lane.b32.xlu1 %v4315_v4, %s4260_s18  ;;  %7371 = vst [vmem:[#allocation5_spill] sm:$0xff] %v4399_v21  ;;  %v4414_v24 = vld [vmem:[%s4297_s17 + $0x139] sm:$0xff]  ;;  %v4432_v28 = vld [vmem:[%s4297_s17 + $0x151] sm:$0xff] }
  0x1b   : > { %335 = vrot.lane.b32.xlu0 %v205_v5, %s4260_s18  ;;  %7372 = vst [vmem:[#allocation6_spill] sm:$0xff] %v4402_v22  ;;  %v4429_v27 = vld [vmem:[%s4297_s17 + $0x159] sm:$0xff]  ;;  %v4435_v29 = vld [vmem:[%s4297_s17 + $0x141] sm:$0xff]  ;;  %v4447_v31 = vld [vmem:[%s4297_s17 + $0x171] sm:$0xff] }
  0x1c   : > { %7373 = vst [vmem:[#allocation7_spill] sm:$0xff] %v4405_v23  ;;  %v4444_v30 = vld [vmem:[%s4297_s17 + $0x18] sm:$0xff]  ;;  %v4450_v32 = vld [vmem:[%s4297_s17 + $0x169] sm:$0xff]  ;;  %v4465_v35 = vld [vmem:[%s4297_s17 + $0x20] sm:$0xff] }
  0x1d   : > { %7374 = vst [vmem:[#allocation8_spill] sm:$0xff] %v4414_v24  ;;  %v4459_v33 = vld [vmem:[%s4297_s17 + $0x38] sm:$0xff]  ;;  %v4462_v34 = vld [vmem:[%s4297_s17 + $0x30] sm:$0xff]  ;;  %v4476_v37 = vld [vmem:[%s4297_s17 + $0x60] sm:$0xff] }
  0x1e   : > { %7375 = vst [vmem:[#allocation9_spill] sm:$0xff] %v4417_v25  ;;  %v4479_v38 = vld [vmem:[%s4297_s17 + $0x50] sm:$0xff]  ;;  %v4482_v39 = vld [vmem:[%s4297_s17 + $0x48] sm:$0xff]  ;;  %v4493_v41 = vld [vmem:[%s4297_s17 + $0x80] sm:$0xff] }
  0x1f   : > { %7376 = vst [vmem:[#allocation10_spill] sm:$0xff] %v4420_v26  ;;  %v4496_v42 = vld [vmem:[%s4297_s17 + $0x78] sm:$0xff]  ;;  %v4499_v43 = vld [vmem:[%s4297_s17 + $0x68] sm:$0xff]  ;;  %v4516_v47 = vld [vmem:[%s4297_s17 + $0x90] sm:$0xff] }
  0x20   : > { %7377 = vst [vmem:[#allocation11_spill] sm:$0xff] %v4429_v27  ;;  %v4510_v45 = vld [vmem:[%s4297_s17 + $0xa8] sm:$0xff]  ;;  %v4513_v46 = vld [vmem:[%s4297_s17 + $0x98] sm:$0xff]  ;;  %v4534_v52 = vld [vmem:[%s4297_s17 + $0xc0] sm:$0xff] }
  0x21   : > { %7378 = vst [vmem:[#allocation12_spill] sm:$0xff] %v4432_v28  ;;  %v4531_v51 = vld [vmem:[%s4297_s17 + $0xc8] sm:$0xff]  ;;  %v4537_v53 = vld [vmem:[%s4297_s17 + $0xb0] sm:$0xff]  ;;  %v4555_v58 = vld [vmem:[%s4297_s17 + $0xe0] sm:$0xff] }
  0x22   : > { %349 = vrot.lane.b32.xlu2 %v4324_v6, %s4260_s18  ;;  %347 = vrot.lane.b32.xlu1 %v4327_v7, %s4260_s18  ;;  %7379 = vst [vmem:[#allocation13_spill] sm:$0xff] %v4435_v29  ;;  %v4552_v57 = vld [vmem:[%s4297_s17 + $0xf0] sm:$0xff]  ;;  %v4558_v59 = vld [vmem:[%s4297_s17 + $0xd8] sm:$0xff] }
  0x23   : > { %345 = vrot.lane.b32.xlu0 %v4330_v8, %s4260_s18  ;;  %7380 = vst [vmem:[#allocation14_spill] sm:$0xff] %v4447_v31  ;;  %v4573_v63 = vld [vmem:[%s4297_s17 + $0x110] sm:$0xff]  ;;  %v4576_v2 = vld [vmem:[%s4297_s17 + $0x108] sm:$0xff]  ;;  %v4579_v5 = vld [vmem:[%s4297_s17 + $0xf8] sm:$0xff] }
  0x24   : > { %7381 = vst [vmem:[#allocation15_spill] sm:$0xff] %v4450_v32 }
  0x25   : > { %7382 = vst [vmem:[#allocation16_spill] sm:$0xff] %v4510_v45 }
  0x26   : > { %7383 = vst [vmem:[#allocation17_spill] sm:$0xff] %v4513_v46 }
  0x27   : > { %7384 = vst [vmem:[#allocation18_spill] sm:$0xff] %v4531_v51 }
  0x28   : > { %7385 = vst [vmem:[#allocation19_spill] sm:$0xff] %v4534_v52 }
  0x29   : > { %7386 = vst [vmem:[#allocation20_spill] sm:$0xff] %v4537_v53 }
  0x2a   : > { %355 = vrot.lane.b32.xlu2 %v4339_v9, %s4260_s18  ;;  %353 = vrot.lane.b32.xlu1 %v4342_v10, %s4260_s18  ;;  %7388 = vst [vmem:[#allocation22_spill] sm:$0xff] %v4552_v57 }
  0x2b   : > { %351 = vrot.lane.b32.xlu0 %v4345_v11, %s4260_s18  ;;  %7389 = vst [vmem:[#allocation23_spill] sm:$0xff] %v4555_v58 }
  0x2c   : > { %7390 = vst [vmem:[#allocation24_spill] sm:$0xff] %v4558_v59 }
  0x2d   : > { %7392 = vst [vmem:[#allocation26_spill] sm:$0xff] %v4573_v63 }
  0x2e   : > { %7393 = vst [vmem:[#allocation27_spill] sm:$0xff] %v4576_v2 }
  0x2f   : > { %7394 = vst [vmem:[#allocation28_spill] sm:$0xff] %v4579_v5 }
  0x32   : > { %361 = vrot.lane.b32.xlu2 %v4354_v12, %s4260_s18  ;;  %359 = vrot.lane.b32.xlu1 %v4357_v13, %s4260_s18 }
  0x33   : > { %357 = vrot.lane.b32.xlu0 %v4360_v14, %s4260_s18 }
  0x3a   : > { %367 = vrot.lane.b32.xlu2 %v4369_v15, %s4260_s18  ;;  %365 = vrot.lane.b32.xlu1 %v4372_v16, %s4260_s18 }
  0x3b   : > { %363 = vrot.lane.b32.xlu0 %v4375_v17, %s4260_s18 }
  0x42   : > { %373 = vrot.lane.b32.xlu2 %v4384_v18, %s4260_s18  ;;  %371 = vrot.lane.b32.xlu1 %v4387_v19, %s4260_s18 }
  0x43   : > { %369 = vrot.lane.b32.xlu0 %v4390_v20, %s4260_s18 }
  0x4a   : > { %379 = vrot.lane.b32.xlu2 %v4399_v21, %s4260_s18  ;;  %377 = vrot.lane.b32.xlu1 %v4402_v22, %s4260_s18 }
  0x4b   : > { %375 = vrot.lane.b32.xlu0 %v4405_v23, %s4260_s18 }
  0x52   : > { %385 = vrot.lane.b32.xlu2 %v4414_v24, %s4260_s18  ;;  %383 = vrot.lane.b32.xlu1 %v4417_v25, %s4260_s18 }
  0x53   : > { %381 = vrot.lane.b32.xlu0 %v4420_v26, %s4260_s18 }
  0x5a   : > { %391 = vrot.lane.b32.xlu2 %v4429_v27, %s4260_s18  ;;  %389 = vrot.lane.b32.xlu1 %v4432_v28, %s4260_s18 }
  0x5b   : > { %387 = vrot.lane.b32.xlu0 %v4435_v29, %s4260_s18 }
  0x62   : > { %461 = vrot.lane.b32.xlu2 %v4444_v30, %s4261_s19  ;;  %395 = vrot.lane.b32.xlu1 %v4447_v31, %s4260_s18 }
  0x63   : > { %393 = vrot.lane.b32.xlu0 %v4450_v32, %s4260_s18 }
  0x6a   : > { %467 = vrot.lane.b32.xlu2 %v4459_v33, %s4261_s19  ;;  %465 = vrot.lane.b32.xlu1 %v4462_v34, %s4261_s19 }
  0x6b   : > { %463 = vrot.lane.b32.xlu0 %v4465_v35, %s4261_s19 }
  0x6c   : > { %v4473_v36 = vpop.permute.xlu2 %341 }
  0x72   : > { %473 = vrot.lane.b32.xlu2 %v4476_v37, %s4261_s19  ;;  %471 = vrot.lane.b32.xlu1 %v4479_v38, %s4261_s19 }
  0x73   : > { %469 = vrot.lane.b32.xlu0 %v4482_v39, %s4261_s19 }
  0x74   : > { %v4490_v40 = vpop.permute.xlu2 %343 }
  0x7a   : > { %479 = vrot.lane.b32.xlu2 %v4493_v41, %s4261_s19  ;;  %477 = vrot.lane.b32.xlu1 %v4496_v42, %s4261_s19 }
  0x7b   : > { %475 = vrot.lane.b32.xlu0 %v4499_v43, %s4261_s19 }
  0x7c   : > { %v4507_v44 = vpop.permute.xlu2 %349 }
  0x82   : > { %485 = vrot.lane.b32.xlu2 %v4510_v45, %s4261_s19  ;;  %483 = vrot.lane.b32.xlu1 %v4513_v46, %s4261_s19  ;;  %v4621_v45 = vld [vmem:[%s4297_s17 + $0x140] sm:$0xff]  ;;  %v4640_v46 = vld [vmem:[%s4297_s17 + $0x168] sm:$0xff] }
  0x83   : > { %481 = vrot.lane.b32.xlu0 %v4516_v47, %s4261_s19  ;;  %7403 = vst [vmem:[#allocation37_spill] sm:$0xff] %v4621_v45 }
  0x84   : > { %v4524_v48 = vpop.permute.xlu2 %355  ;;  %v4526_v49 = vpop.permute.xlu1 %337  ;;  %7408 = vst [vmem:[#allocation42_spill] sm:$0xff] %v4640_v46 }
  0x85   : > { %v4528_v50 = vpop.permute.xlu0 %333 }
  0x8a   : > { %491 = vrot.lane.b32.xlu2 %v4531_v51, %s4261_s19  ;;  %489 = vrot.lane.b32.xlu1 %v4534_v52, %s4261_s19  ;;  %v4594_v51 = vld [vmem:[%s4297_s17 + $0x138] sm:$0xff]  ;;  %v4600_v52 = vld [vmem:[%s4297_s17 + $0x120] sm:$0xff] }
  0x8b   : > { %487 = vrot.lane.b32.xlu0 %v4537_v53, %s4261_s19  ;;  %7396 = vst [vmem:[#allocation30_spill] sm:$0xff] %v4594_v51  ;;  %v4618_v53 = vld [vmem:[%s4297_s17 + $0x150] sm:$0xff] }
  0x8c   : > { %v4545_v54 = vpop.permute.xlu2 %361  ;;  %v4547_v55 = vpop.permute.xlu1 %339  ;;  %7398 = vst [vmem:[#allocation32_spill] sm:$0xff] %v4600_v52 }
  0x8d   : > { %7387 = vst [vmem:[#allocation21_spill] sm:$0xff] %v4545_v54  ;;  %v4549_v56 = vpop.permute.xlu0 %335  ;;  %v4637_v54 = vld [vmem:[%s4297_s17 + $0x170] sm:$0xff] }
  0x8e   : > { %7402 = vst [vmem:[#allocation36_spill] sm:$0xff] %v4618_v53 }
  0x8f   : > { %7407 = vst [vmem:[#allocation41_spill] sm:$0xff] %v4637_v54 }
  0x92   : > { %497 = vrot.lane.b32.xlu2 %v4552_v57, %s4261_s19  ;;  %495 = vrot.lane.b32.xlu1 %v4555_v58, %s4261_s19 }
  0x93   : > { %493 = vrot.lane.b32.xlu0 %v4558_v59, %s4261_s19 }
  0x94   : > { %v4566_v60 = vpop.permute.xlu2 %367  ;;  %v4568_v61 = vpop.permute.xlu1 %347 }
  0x95   : > { %7391 = vst [vmem:[#allocation25_spill] sm:$0xff] %v4566_v60  ;;  %v4570_v62 = vpop.permute.xlu0 %345  ;;  %v4597_v60 = vld [vmem:[%s4297_s17 + $0x128] sm:$0xff] }
  0x96   : > { %7397 = vst [vmem:[#allocation31_spill] sm:$0xff] %v4597_v60 }
  0x9a   : > { %503 = vrot.lane.b32.xlu2 %v4573_v63, %s4261_s19  ;;  %501 = vrot.lane.b32.xlu1 %v4576_v2, %s4261_s19 }
  0x9b   : > { %499 = vrot.lane.b32.xlu0 %v4579_v5, %s4261_s19 }
  0x9c   : > { %v4587_v57 = vpop.permute.xlu2 %373  ;;  %v4589_v58 = vpop.permute.xlu1 %353 }
  0x9d   : > { %7395 = vst [vmem:[#allocation29_spill] sm:$0xff] %v4587_v57  ;;  %v4591_v59 = vpop.permute.xlu0 %351  ;;  %v4615_v57 = vld [vmem:[%s4297_s17 + $0x158] sm:$0xff] }
  0x9e   : > { %7401 = vst [vmem:[#allocation35_spill] sm:$0xff] %v4615_v57 }
  0xa2   : > { %509 = vrot.lane.b32.xlu2 %v4594_v51, %s4261_s19  ;;  %507 = vrot.lane.b32.xlu1 %v4597_v60, %s4261_s19 }
  0xa3   : > { %505 = vrot.lane.b32.xlu0 %v4600_v52, %s4261_s19 }
  0xa4   : > { %v4608_v63 = vpop.permute.xlu2 %379  ;;  %v4610_v2 = vpop.permute.xlu1 %359 }
  0xa5   : > { %7399 = vst [vmem:[#allocation33_spill] sm:$0xff] %v4608_v63  ;;  %v4612_v5 = vpop.permute.xlu0 %357  ;;  %v3746_v63 = vld [vmem:[%s4297_s17 + $0x180] sm:$0xff] }
  0xa6   : > { %7400 = vst [vmem:[#allocation34_spill] sm:$0xff] %v4610_v2 }
  0xaa   : > { %515 = vrot.lane.b32.xlu2 %v4615_v57, %s4261_s19  ;;  %513 = vrot.lane.b32.xlu1 %v4618_v53, %s4261_s19 }
  0xab   : > { %511 = vrot.lane.b32.xlu0 %v4621_v45, %s4261_s19 }
  0xac   : > { %v4629_v51 = vpop.permute.xlu2 %385  ;;  %v4631_v60 = vpop.permute.xlu1 %365 }
  0xad   : > { %7404 = vst [vmem:[#allocation38_spill] sm:$0xff] %v4629_v51  ;;  %v4633_v52 = vpop.permute.xlu0 %363  ;;  %v3747_v51 = vld [vmem:[%s4297_s17 + $0x188] sm:$0xff] }
  0xae   : > { %7405 = vst [vmem:[#allocation39_spill] sm:$0xff] %v4631_v60 }
  0xaf   : > { %7406 = vst [vmem:[#allocation40_spill] sm:$0xff] %v4633_v52 }
  0xb2   : > { %521 = vrot.lane.b32.xlu2 %v3746_v63, %s4261_s19  ;;  %519 = vrot.lane.b32.xlu1 %v4637_v54, %s4261_s19 }
  0xb3   : > { %517 = vrot.lane.b32.xlu0 %v4640_v46, %s4261_s19 }
  0xb4   : > { %v4647_v57 = vpop.permute.xlu2 %391  ;;  %v4649_v53 = vpop.permute.xlu1 %371 }
  0xb5   : > { %7409 = vst [vmem:[#allocation43_spill] sm:$0xff] %v4647_v57  ;;  %v4651_v45 = vpop.permute.xlu0 %369 }
  0xb6   : > { %7410 = vst [vmem:[#allocation44_spill] sm:$0xff] %v4649_v53 }
  0xb7   : > { %7411 = vst [vmem:[#allocation45_spill] sm:$0xff] %v4651_v45 }
  0xba   : > { %591 = vrot.lane.b32.xlu2 %v4315_v4, %s4262_s20  ;;  %589 = vrot.lane.b32.xlu1 %v4303_v1, %s4262_s20 }
  0xbb   : > { %523 = vrot.lane.b32.xlu0 %v3747_v51, %s4261_s19 }
  0xbc   : > { %v4659_v63 = vpop.permute.xlu2 %461  ;;  %v4661_v54 = vpop.permute.xlu1 %377 }
  0xbd   : > { %7412 = vst [vmem:[#allocation46_spill] sm:$0xff] %v4661_v54  ;;  %v4663_v46 = vpop.permute.xlu0 %375 }
  0xbe   : > { %7413 = vst [vmem:[#allocation47_spill] sm:$0xff] %v4663_v46 }
  0xc2   : > { %597 = vrot.lane.b32.xlu2 %v4330_v8, %s4262_s20  ;;  %595 = vrot.lane.b32.xlu1 %v4312_v3, %s4262_s20 }
  0xc3   : > { %593 = vrot.lane.b32.xlu0 %v4300_v0, %s4262_s20 }
  0xc4   : > { %v4671_v57 = vpop.permute.xlu2 %467  ;;  %v4673_v53 = vpop.permute.xlu1 %383 }
  0xc5   : > { %7414 = vst [vmem:[#allocation48_spill] sm:$0xff] %v4673_v53  ;;  %v4675_v51 = vpop.permute.xlu0 %381 }
  0xc6   : > { %7415 = vst [vmem:[#allocation49_spill] sm:$0xff] %v4675_v51 }
  0xca   : > { %603 = vrot.lane.b32.xlu2 %v4345_v11, %s4262_s20  ;;  %601 = vrot.lane.b32.xlu1 %v4324_v6, %s4262_s20 }
  0xcb   : > { %599 = vrot.lane.b32.xlu0 %v4327_v7, %s4262_s20 }
  0xcc   : > { %v4683_v54 = vpop.permute.xlu2 %473  ;;  %v4685_v46 = vpop.permute.xlu1 %389 }
  0xcd   : > { %7416 = vst [vmem:[#allocation50_spill] sm:$0xff] %v4685_v46  ;;  %v4687_v45 = vpop.permute.xlu0 %387 }
  0xce   : > { %7417 = vst [vmem:[#allocation51_spill] sm:$0xff] %v4687_v45 }
  0xd2   : > { %609 = vrot.lane.b32.xlu2 %v4360_v14, %s4262_s20  ;;  %607 = vrot.lane.b32.xlu1 %v4339_v9, %s4262_s20 }
  0xd3   : > { %605 = vrot.lane.b32.xlu0 %v4342_v10, %s4262_s20 }
  0xd4   : > { %v4695_v53 = vpop.permute.xlu2 %479  ;;  %v4697_v51 = vpop.permute.xlu1 %395 }
  0xd5   : > { %7418 = vst [vmem:[#allocation52_spill] sm:$0xff] %v4697_v51  ;;  %v4699_v60 = vpop.permute.xlu0 %393 }
  0xd6   : > { %7419 = vst [vmem:[#allocation53_spill] sm:$0xff] %v4699_v60 }
  0xda   : > { %615 = vrot.lane.b32.xlu2 %v4375_v17, %s4262_s20  ;;  %613 = vrot.lane.b32.xlu1 %v4354_v12, %s4262_s20 }
  0xdb   : > { %611 = vrot.lane.b32.xlu0 %v4357_v13, %s4262_s20 }
  0xdc   : > { %v4707_v46 = vpop.permute.xlu2 %485  ;;  %v4709_v45 = vpop.permute.xlu1 %465 }
  0xdd   : > { %7420 = vst [vmem:[#allocation54_spill] sm:$0xff] %v4707_v46  ;;  %v4711_v52 = vpop.permute.xlu0 %463 }
  0xe2   : > { %621 = vrot.lane.b32.xlu2 %v4390_v20, %s4262_s20  ;;  %619 = vrot.lane.b32.xlu1 %v4369_v15, %s4262_s20 }
  0xe3   : > { %617 = vrot.lane.b32.xlu0 %v4372_v16, %s4262_s20 }
  0xe4   : > { %v4719_v51 = vpop.permute.xlu2 %491  ;;  %v4721_v60 = vpop.permute.xlu1 %471 }
  0xe5   : > { %7421 = vst [vmem:[#allocation55_spill] sm:$0xff] %v4719_v51  ;;  %v4723_v2 = vpop.permute.xlu0 %469 }
  0xea   : > { %627 = vrot.lane.b32.xlu2 %v4405_v23, %s4262_s20  ;;  %625 = vrot.lane.b32.xlu1 %v4384_v18, %s4262_s20 }
  0xeb   : > { %623 = vrot.lane.b32.xlu0 %v4387_v19, %s4262_s20  ;;  %v4860_v19 = vld [vmem:[%s4297_s17 + $0x6a] sm:$0xff] }
  0xec   : > { %v4731_v20 = vpop.permute.xlu2 %497  ;;  %v4733_v46 = vpop.permute.xlu1 %477  ;;  %7450 = vst [vmem:[#allocation84_spill] sm:$0xff] %v4860_v19 }
  0xed   : > { %7422 = vst [vmem:[#allocation56_spill] sm:$0xff] %v4731_v20  ;;  %v4735_v17 = vpop.permute.xlu0 %475 }
  0xf2   : > { %633 = vrot.lane.b32.xlu2 %v4420_v26, %s4262_s20  ;;  %631 = vrot.lane.b32.xlu1 %v4399_v21, %s4262_s20 }
  0xf3   : > { %629 = vrot.lane.b32.xlu0 %v4402_v22, %s4262_s20 }
  0xf4   : > { %v4743_v51 = vpop.permute.xlu2 %503  ;;  %v4745_v23 = vpop.permute.xlu1 %483 }
  0xf5   : > { %7423 = vst [vmem:[#allocation57_spill] sm:$0xff] %v4743_v51  ;;  %v4747_v20 = vpop.permute.xlu0 %481 }
  0xfa   : > { %639 = vrot.lane.b32.xlu2 %v4435_v29, %s4262_s20  ;;  %637 = vrot.lane.b32.xlu1 %v4414_v24, %s4262_s20  ;;  %v4777_v24 = vld [vmem:[%s4297_s17 + $0x181] sm:$0xff] }
  0xfb   : > { %635 = vrot.lane.b32.xlu0 %v4417_v25, %s4262_s20  ;;  %v4774_v25 = vld [vmem:[%s4297_s17 + $0x189] sm:$0xff]  ;;  %7431 = vst [vmem:[#allocation65_spill] sm:$0xff] %v4777_v24 }
  0xfc   : > { %v4755_v26 = vpop.permute.xlu2 %509  ;;  %v4757_v22 = vpop.permute.xlu1 %489  ;;  %7430 = vst [vmem:[#allocation64_spill] sm:$0xff] %v4774_v25 }
  0xfd   : > { %7424 = vst [vmem:[#allocation58_spill] sm:$0xff] %v4755_v26  ;;  %v4759_v21 = vpop.permute.xlu0 %487 }
  0xfe   : > { %7425 = vst [vmem:[#allocation59_spill] sm:$0xff] %v4757_v22  ;;  %v4856_v22 = vld [vmem:[%s4297_s17 + $0x7a] sm:$0xff] }
  0xff   : > { %7426 = vst [vmem:[#allocation60_spill] sm:$0xff] %v4759_v21  ;;  %v172_v21 = vld [vmem:[%s4297_s17] sm:$0xff] }
 0x100   : > { %7449 = vst [vmem:[#allocation83_spill] sm:$0xff] %v4856_v22 }
 0x102   : > { %645 = vrot.lane.b32.xlu2 %v4450_v32, %s4262_s20  ;;  %643 = vrot.lane.b32.xlu1 %v4429_v27, %s4262_s20  ;;  %v4817_v27 = vld [vmem:[%s4297_s17 + $0x22] sm:$0xff] }
 0x103   : > { %641 = vrot.lane.b32.xlu0 %v4432_v28, %s4262_s20  ;;  %v999_v28 = vld [vmem:[%s4297_s17 + $0x2] sm:$0xff]  ;;  %7440 = vst [vmem:[#allocation74_spill] sm:$0xff] %v4817_v27 }
 0x104   : > { %v4767_v51 = vpop.permute.xlu2 %515  ;;  %v4769_v29 = vpop.permute.xlu1 %495 }
 0x105   : > { %7427 = vst [vmem:[#allocation61_spill] sm:$0xff] %v4767_v51  ;;  %v4771_v26 = vpop.permute.xlu0 %493  ;;  %v785_v51 = vld [vmem:[%s7303_s1 + $0x8] sm:$0xff] }
 0x106   : > { %7428 = vst [vmem:[#allocation62_spill] sm:$0xff] %v4769_v29  ;;  %900 = vmatpush.msra.mxu0 %v785_v51 }
 0x107   : > { %7429 = vst [vmem:[#allocation63_spill] sm:$0xff] %v4771_v26 }
 0x10a   : > { %651 = vrot.lane.b32.xlu2 %v4774_v25, %s4262_s20  ;;  %649 = vrot.lane.b32.xlu1 %v4777_v24, %s4262_s20  ;;  %v784_v25 = vld [vmem:[%s7303_s1] sm:$0xff]  ;;  %v1000_v24 = vld [vmem:[%s4297_s17 + $0xa] sm:$0xff] }
 0x10b   : > { %647 = vrot.lane.b32.xlu0 %v4447_v31, %s4262_s20  ;;  %901 = vmatpush.msra.mxu0 %v784_v25  ;;  %v4798_v31 = vld [vmem:[%s4297_s17 + $0x1a] sm:$0xff] }
 0x10c   : > { %v4788_v29 = vpop.permute.xlu2 %521  ;;  %v4790_v32 = vpop.permute.xlu1 %501  ;;  %7435 = vst [vmem:[#allocation69_spill] sm:$0xff] %v4798_v31  ;;  %v4811_v25 = vld [vmem:[%s4297_s17 + $0x3a] sm:$0xff] }
 0x10d   : > { %7432 = vst [vmem:[#allocation66_spill] sm:$0xff] %v4788_v29  ;;  %v4792_v26 = vpop.permute.xlu0 %499 }
 0x10e   : > { %7433 = vst [vmem:[#allocation67_spill] sm:$0xff] %v4790_v32 }
 0x10f   : > { %7434 = vst [vmem:[#allocation68_spill] sm:$0xff] %v4792_v26  ;;  %v4814_v26 = vld [vmem:[%s4297_s17 + $0x32] sm:$0xff] }
 0x110   : > { %7438 = vst [vmem:[#allocation72_spill] sm:$0xff] %v4811_v25 }
 0x111   : > { %7439 = vst [vmem:[#allocation73_spill] sm:$0xff] %v4814_v26 }
 0x112   : > { %1099 = vrot.lane.b32.xlu2 %v4798_v31, %s4260_s18  ;;  %1097 = vrot.lane.b32.xlu1 %v1000_v24, %s4260_s18  ;;  %v4835_v31 = vld [vmem:[%s4297_s17 + $0x52] sm:$0xff] }
 0x113   : > { %1095 = vrot.lane.b32.xlu0 %v999_v28, %s4260_s18  ;;  %7444 = vst [vmem:[#allocation78_spill] sm:$0xff] %v4835_v31 }
 0x114   : > { %v592_v51 = vpop.permute.xlu2 %591  ;;  %v4806_v29 = vpop.permute.xlu1 %507 }
 0x115   : > { %7436 = vst [vmem:[#allocation70_spill] sm:$0xff] %v4806_v29  ;;  %v4808_v32 = vpop.permute.xlu0 %505 }
 0x116   : > { %7437 = vst [vmem:[#allocation71_spill] sm:$0xff] %v4808_v32  ;;  %v4832_v32 = vld [vmem:[%s4297_s17 + $0x62] sm:$0xff] }
 0x117   : > { %7443 = vst [vmem:[#allocation77_spill] sm:$0xff] %v4832_v32 }
 0x11a   : > { %1105 = vrot.lane.b32.xlu2 %v4811_v25, %s4260_s18  ;;  %1103 = vrot.lane.b32.xlu1 %v4814_v26, %s4260_s18  ;;  %v4838_v25 = vld [vmem:[%s4297_s17 + $0x4a] sm:$0xff] }
 0x11b   : > { %1101 = vrot.lane.b32.xlu0 %v4817_v27, %s4260_s18  ;;  %7445 = vst [vmem:[#allocation79_spill] sm:$0xff] %v4838_v25  ;;  %v4853_v27 = vld [vmem:[%s4297_s17 + $0x82] sm:$0xff] }
 0x11c   : > { %v4825_v24 = vpop.permute.xlu2 %597  ;;  %v4827_v28 = vpop.permute.xlu1 %513  ;;  %7448 = vst [vmem:[#allocation82_spill] sm:$0xff] %v4853_v27 }
 0x11d   : > { %7441 = vst [vmem:[#allocation75_spill] sm:$0xff] %v4827_v28  ;;  %v4829_v29 = vpop.permute.xlu0 %511 }
 0x11e   : > { %7442 = vst [vmem:[#allocation76_spill] sm:$0xff] %v4829_v29 }
 0x122   : > { %1111 = vrot.lane.b32.xlu2 %v4832_v32, %s4260_s18  ;;  %1109 = vrot.lane.b32.xlu1 %v4835_v31, %s4260_s18 }
 0x123   : > { %1107 = vrot.lane.b32.xlu0 %v4838_v25, %s4260_s18 }
 0x124   : > { %v4846_v26 = vpop.permute.xlu2 %603  ;;  %v4848_v28 = vpop.permute.xlu1 %519 }
 0x125   : > { %7446 = vst [vmem:[#allocation80_spill] sm:$0xff] %v4848_v28  ;;  %v4850_v29 = vpop.permute.xlu0 %517  ;;  %v686_v28 = vsel %vm685_vm1, %v172_v21, %v4528_v50  ;;  %v4879_v21 = vld [vmem:[%s4297_s17 + $0xaa] sm:$0xff]  ;;  %v4882_v50 = vld [vmem:[%s4297_s17 + $0x9a] sm:$0xff] }
 0x126   : > { %7447 = vst [vmem:[#allocation81_spill] sm:$0xff] %v4850_v29  ;;  %v719_v29 = vsel %vm718_vm0, %v686_v28, %v4659_v63 }
 0x127   : > { %7452 = vst [vmem:[#allocation86_spill] sm:$0xff] %v4882_v50 }
 0x12a   : > { %1117 = vrot.lane.b32.xlu2 %v4853_v27, %s4260_s18  ;;  %1115 = vrot.lane.b32.xlu1 %v4856_v22, %s4260_s18  ;;  %v173_v22 = vld [vmem:[%s4297_s17 + $0x8] sm:$0xff] }
 0x12b   : > { %1113 = vrot.lane.b32.xlu0 %v4860_v19, %s4260_s18  ;;  %v4886_v19 = vld [vmem:[%s4297_s17 + $0x92] sm:$0xff] }
 0x12c   : > { %v4872_v31 = vpop.permute.xlu2 %609  ;;  %v590_v32 = vpop.permute.xlu1 %589 }
 0x12d   : > { %v4874_v25 = vpop.permute.xlu0 %523  ;;  %v752_v27 = vsel %vm751_vm3, %v719_v29, %v590_v32  ;;  %v687_v29 = vsel %vm685_vm1, %v173_v22, %v4549_v56  ;;  %v4906_v22 = vld [vmem:[%s4297_s17 + $0xc2] sm:$0xff]  ;;  %v4909_v56 = vld [vmem:[%s4297_s17 + $0xb2] sm:$0xff] }
 0x12e   : > { %7451 = vst [vmem:[#allocation85_spill] sm:$0xff] %v4874_v25  ;;  %3780 = vmatmul.msk.f32.vlgmr.msra.gmra.mxu0 %vm789_vm2, %v752_v27  ;;  %v720_v27 = vsel %vm718_vm0, %v687_v29, %v4711_v52  ;;  %v688_v52 = vsel %vm685_vm1, %v4444_v30, %v4526_v49  ;;  %v4930_v30 = vld [vmem:[%s4297_s17 + $0xe2] sm:$0xff]  ;;  %v4933_v49 = vld [vmem:[%s4297_s17 + $0xda] sm:$0xff] }
 0x12f   : > { %v753_v25 = vsel %vm751_vm3, %v720_v27, %v592_v51  ;;  %7454 = vst [vmem:[#allocation88_spill] sm:$0xff] %v4906_v22  ;;  %v721_v51 = vsel %vm718_vm0, %v688_v52, %v4709_v45  ;;  %v689_v45 = vsel %vm685_vm1, %v4465_v35, %v4547_v55  ;;  %v4955_v35 = vld [vmem:[%s4297_s17 + $0x112] sm:$0xff]  ;;  %v4958_v55 = vld [vmem:[%s4297_s17 + $0x10a] sm:$0xff] }
 0x130   : > { %7456 = vst [vmem:[#allocation90_spill] sm:$0xff] %v4930_v30 }
 0x131   : > { %7457 = vst [vmem:[#allocation91_spill] sm:$0xff] %v4955_v35 }
 0x132   : > { %1123 = vrot.lane.b32.xlu2 %v4879_v21, %s4260_s18  ;;  %1121 = vrot.lane.b32.xlu1 %v4882_v50, %s4260_s18  ;;  %v4903_v50 = vld [vmem:[%s4297_s17 + $0xca] sm:$0xff]  ;;  %7458 = vst [vmem:[#allocation92_spill] sm:$0xff] %v4958_v55 }
 0x133   : > { %1119 = vrot.lane.b32.xlu0 %v4886_v19, %s4260_s18  ;;  %7453 = vst [vmem:[#allocation87_spill] sm:$0xff] %v4903_v50 }
 0x134   : > { %v4898_v32 = vpop.permute.xlu2 %615  ;;  %v596_v63 = vpop.permute.xlu1 %595 }
 0x135   : > { %v594_v28 = vpop.permute.xlu0 %593 }
 0x136   : > { %3781 = vmatmul.msk.f32.gmra.mxu0 %vm789_vm2, %v753_v25 }
 0x13a   : > { %1129 = vrot.lane.b32.xlu2 %v4903_v50, %s4260_s18  ;;  %1127 = vrot.lane.b32.xlu1 %v4906_v22, %s4260_s18  ;;  %v754_v50 = vsel %vm751_vm3, %v721_v51, %v594_v28  ;;  %v4927_v22 = vld [vmem:[%s4297_s17 + $0xf2] sm:$0xff] }
 0x13b   : > { %1125 = vrot.lane.b32.xlu0 %v4909_v56, %s4260_s18  ;;  %7455 = vst [vmem:[#allocation89_spill] sm:$0xff] %v4927_v22 }
 0x13c   : > { %v4922_v25 = vpop.permute.xlu2 %621  ;;  %v602_v29 = vpop.permute.xlu1 %601 }
 0x13d   : > { %v600_v27 = vpop.permute.xlu0 %599 }
 0x13e   : > { %3782 = vmatmul.msk.f32.gmra.mxu0 %vm789_vm2, %v754_v50  ;;  %v722_v50 = vsel %vm718_vm0, %v689_v45, %v4671_v57  ;;  %v690_v57 = vsel %vm685_vm1, %v4462_v34, %v4473_v36  ;;  %v4984_v34 = vld [vmem:[%s4297_s17 + $0x13a] sm:$0xff]  ;;  %v4987_v36 = vld [vmem:[%s4297_s17 + $0x12a] sm:$0xff] }
 0x13f   : > { %7459 = vst [vmem:[#allocation93_spill] sm:$0xff] %v4984_v34 }
 0x140   : > { %7460 = vst [vmem:[#allocation94_spill] sm:$0xff] %v4987_v36 }
 0x142   : > { %1135 = vrot.lane.b32.xlu2 %v4927_v22, %s4260_s18  ;;  %1133 = vrot.lane.b32.xlu1 %v4930_v30, %s4260_s18  ;;  %v755_v22 = vsel %vm751_vm3, %v722_v50, %v596_v63  ;;  %v4961_v30 = vld [vmem:[%s4297_s17 + $0xfa] sm:$0xff]  ;;  %v723_v63 = vsel %vm718_vm0, %v690_v57, %v4723_v2  ;;  %v691_v2 = vsel %vm685_vm1, %v4459_v33, %v4490_v40  ;;  %v5015_v33 = vld [vmem:[%s4297_s17 + $0x152] sm:$0xff] }
 0x143   : > { %1131 = vrot.lane.b32.xlu0 %v4933_v49, %s4260_s18  ;;  %7463 = vst [vmem:[#allocation97_spill] sm:$0xff] %v5015_v33  ;;  %v5018_v40 = vld [vmem:[%s4297_s17 + $0x142] sm:$0xff] }
 0x144   : > { %v4946_v28 = vpop.permute.xlu2 %627  ;;  %v4948_v52 = vpop.permute.xlu1 %607 }
 0x145   : > { %v4950_v51 = vpop.permute.xlu0 %605 }
 0x146   : > { %3783 = vmatmul.msk.f32.gmra.mxu0 %vm789_vm2, %v755_v22 }
 0x14a   : > { %1141 = vrot.lane.b32.xlu2 %v4955_v35, %s4260_s18  ;;  %1139 = vrot.lane.b32.xlu1 %v4958_v55, %s4260_s18  ;;  %v756_v55 = vsel %vm751_vm3, %v723_v63, %v4825_v24  ;;  %v4990_v35 = vld [vmem:[%s4297_s17 + $0x122] sm:$0xff]  ;;  %v724_v24 = vsel %vm718_vm0, %v691_v2, %v4721_v60  ;;  %v692_v60 = vsel %vm685_vm1, %v4482_v39, %v4570_v62 }
 0x14b   : > { %1137 = vrot.lane.b32.xlu0 %v4961_v30, %s4260_s18  ;;  %v693_v39 = vsel %vm685_vm1, %v4479_v38, %v4568_v61 }
 0x14c   : > { %v4974_v22 = vpop.permute.xlu2 %633  ;;  %v4976_v45 = vpop.permute.xlu1 %613 }
 0x14d   : > { %v4978_v50 = vpop.permute.xlu0 %611 }
 0x14e   : > { %3784 = vmatmul.msk.f32.gmra.mxu0 %vm789_vm2, %v756_v55 }
 0x152   : > { %1147 = vrot.lane.b32.xlu2 %v4984_v34, %s4260_s18  ;;  %1145 = vrot.lane.b32.xlu1 %v4987_v36, %s4260_s18  ;;  %v757_v34 = vsel %vm751_vm3, %v724_v24, %v600_v27  ;;  %v5012_v36 = vld [vmem:[%s4297_s17 + $0x15a] sm:$0xff]  ;;  %v725_v27 = vsel %vm718_vm0, %v692_v60, %v4683_v54  ;;  %v726_v54 = vsel %vm718_vm0, %v693_v39, %v4735_v17 }
 0x153   : > { %1143 = vrot.lane.b32.xlu0 %v4990_v35, %s4260_s18  ;;  %7462 = vst [vmem:[#allocation96_spill] sm:$0xff] %v5012_v36  ;;  %v694_v17 = vsel %vm685_vm1, %v4476_v37, %v4507_v44 }
 0x154   : > { %v5003_v55 = vpop.permute.xlu2 %639  ;;  %v5005_v57 = vpop.permute.xlu1 %619  ;;  %v727_v38 = vsel %vm718_vm0, %v694_v17, %v4733_v46  ;;  %v7471_v17 = vld [vmem:[#allocation5_spill] sm:$0xff] }
 0x155   : > { %7461 = vst [vmem:[#allocation95_spill] sm:$0xff] %v5003_v55  ;;  %v5007_v63 = vpop.permute.xlu0 %617  ;;  %v5043_v55 = vld [vmem:[%s4297_s17 + $0x16a] sm:$0xff] }
 0x156   : > { %3785 = vmatmul.msk.f32.gmra.mxu0 %vm789_vm2, %v757_v34 }
 0x15a   : > { %1153 = vrot.lane.b32.xlu2 %v5012_v36, %s4260_s18  ;;  %1151 = vrot.lane.b32.xlu1 %v5015_v33, %s4260_s18  ;;  %v758_v36 = vsel %vm751_vm3, %v725_v27, %v602_v29  ;;  %v5040_v33 = vld [vmem:[%s4297_s17 + $0x172] sm:$0xff] }
 0x15b   : > { %1149 = vrot.lane.b32.xlu0 %v5018_v40, %s4260_s18  ;;  %v7470_v27 = vld [vmem:[#allocation60_spill] sm:$0xff] }
 0x15c   : > { %v5031_v34 = vpop.permute.xlu2 %645  ;;  %v5033_v2 = vpop.permute.xlu1 %625 }
 0x15d   : > { %v5035_v24 = vpop.permute.xlu0 %623 }
 0x15e   : > { %3786 = vmatmul.msk.f32.gmra.mxu0 %vm789_vm2, %v758_v36 }
 0x162   : > { %1191 = vrot.lane.b32.xlu2 %v4303_v1, %s4261_s19  ;;  %1157 = vrot.lane.b32.xlu1 %v5040_v33, %s4260_s18  ;;  %v759_v1 = vsel %vm751_vm3, %v726_v54, %v4846_v26 }
 0x163   : > { %1155 = vrot.lane.b32.xlu0 %v5043_v55, %s4260_s18 }
 0x164   : > { %v5056_v62 = vpop.permute.xlu2 %651  ;;  %v5058_v29 = vpop.permute.xlu1 %631 }
 0x165   : > { %v5060_v36 = vpop.permute.xlu0 %629 }
 0x166   : > { %3787 = vmatmul.msk.f32.gmra.mxu0 %vm789_vm2, %v759_v1 }
 0x16a   : > { %1197 = vrot.lane.b32.xlu2 %v4312_v3, %s4261_s19  ;;  %1195 = vrot.lane.b32.xlu1 %v4300_v0, %s4261_s19  ;;  %v760_v3 = vsel %vm751_vm3, %v727_v38, %v4950_v51  ;;  %v695_v0 = vsel %vm685_vm1, %v4499_v43, %v4591_v59  ;;  %v7472_v38 = vld [vmem:[#allocation6_spill] sm:$0xff] }
 0x16b   : > { %1193 = vrot.lane.b32.xlu0 %v4315_v4, %s4261_s19  ;;  %v728_v4 = vsel %vm718_vm0, %v695_v0, %v4695_v53  ;;  %v7474_v0 = vld [vmem:[#allocation16_spill] sm:$0xff] }
 0x16c   : > { %v5076_v61 = vpop.permute.xlu2 %1099  ;;  %v5078_v26 = vpop.permute.xlu1 %637 }
 0x16d   : > { %v5080_v60 = vpop.permute.xlu0 %635 }
 0x16e   : > { %3788 = vmatmul.msk.f32.gmra.mxu0 %vm789_vm2, %v760_v3  ;;  %v7473_v3 = vld [vmem:[#allocation21_spill] sm:$0xff] }
 0x172   : > { %1203 = vrot.lane.b32.xlu2 %v4324_v6, %s4261_s19  ;;  %1201 = vrot.lane.b32.xlu1 %v4327_v7, %s4261_s19  ;;  %v761_v6 = vsel %vm751_vm3, %v728_v4, %v4948_v52  ;;  %v696_v7 = vsel %vm685_vm1, %v4496_v42, %v4589_v58  ;;  %v700_v4 = vsel %vm685_vm1, %v7474_v0, %v7473_v3  ;;  %v7487_v3 = vld [vmem:[#allocation13_spill] sm:$0xff]  ;;  %v7488_v0 = vld [vmem:[#allocation63_spill] sm:$0xff] }
 0x173   : > { %1199 = vrot.lane.b32.xlu0 %v4330_v8, %s4261_s19  ;;  %v729_v8 = vsel %vm718_vm0, %v696_v7, %v4747_v20  ;;  %v7476_v7 = vld [vmem:[#allocation59_spill] sm:$0xff] }
 0x174   : > { %v5096_v37 = vpop.permute.xlu2 %1105  ;;  %v5098_v44 = vpop.permute.xlu1 %643 }
 0x175   : > { %v5100_v46 = vpop.permute.xlu0 %641 }
 0x176   : > { %3789 = vmatmul.msk.f32.gmra.mxu0 %vm789_vm2, %v761_v6  ;;  %v7475_v6 = vld [vmem:[#allocation7_spill] sm:$0xff] }
 0x17a   : > { %1209 = vrot.lane.b32.xlu2 %v4339_v9, %s4261_s19  ;;  %1207 = vrot.lane.b32.xlu1 %v4342_v10, %s4261_s19  ;;  %v762_v9 = vsel %vm751_vm3, %v729_v8, %v4872_v31  ;;  %v697_v10 = vsel %vm685_vm1, %v4493_v41, %v4524_v48  ;;  %v733_v8 = vsel %vm718_vm0, %v700_v4, %v7476_v7 }
 0x17b   : > { %1205 = vrot.lane.b32.xlu0 %v4345_v11, %s4261_s19  ;;  %v730_v11 = vsel %vm718_vm0, %v697_v10, %v4745_v23  ;;  %v7465_v23 = vld [vmem:[#allocation54_spill] sm:$0xff] }
 0x17c   : > { %v5116_v43 = vpop.permute.xlu2 %1111  ;;  %v5118_v53 = vpop.permute.xlu1 %649 }
 0x17d   : > { %v5120_v59 = vpop.permute.xlu0 %647 }
 0x17e   : > { %3790 = vmatmul.msk.f32.gmra.mxu0 %vm789_vm2, %v762_v9 }
 0x182   : > { %1215 = vrot.lane.b32.xlu2 %v4354_v12, %s4261_s19  ;;  %1213 = vrot.lane.b32.xlu1 %v4357_v13, %s4261_s19  ;;  %v763_v12 = vsel %vm751_vm3, %v730_v11, %v4978_v50  ;;  %v698_v13 = vsel %vm685_vm1, %v4516_v47, %v4612_v5  ;;  %v7467_v47 = vld [vmem:[#allocation34_spill] sm:$0xff]  ;;  %v7468_v5 = vld [vmem:[#allocation17_spill] sm:$0xff]  ;;  %v7469_v50 = vld [vmem:[#allocation4_spill] sm:$0xff]  ;;  %v766_v11 = vsel %vm751_vm3, %v733_v8, %v5007_v63 }
 0x183   : > { %1211 = vrot.lane.b32.xlu0 %v4360_v14, %s4261_s19  ;;  %v7464_v14 = vld [vmem:[#allocation2_spill] sm:$0xff]  ;;  %v731_v41 = vsel %vm718_vm0, %v698_v13, %v7465_v23  ;;  %v699_v51 = vsel %vm685_vm1, %v7468_v5, %v7467_v47  ;;  %v7478_v13 = vld [vmem:[#allocation9_spill] sm:$0xff]  ;;  %v7480_v23 = vld [vmem:[#allocation20_spill] sm:$0xff] }
 0x184   : > { %v5136_v20 = vpop.permute.xlu2 %1117  ;;  %v5138_v31 = vpop.permute.xlu1 %1097  ;;  %v732_v39 = vsel %vm718_vm0, %v699_v51, %v7470_v27  ;;  %v7483_v27 = vld [vmem:[#allocation11_spill] sm:$0xff] }
 0x185   : > { %v5140_v42 = vpop.permute.xlu0 %1095 }
 0x186   : > { %3791 = vmatmul.msk.f32.gmra.mxu0 %vm789_vm2, %v763_v12  ;;  %v7477_v12 = vld [vmem:[#allocation8_spill] sm:$0xff] }
 0x18a   : > { %1221 = vrot.lane.b32.xlu2 %v4369_v15, %s4261_s19  ;;  %1219 = vrot.lane.b32.xlu1 %v4372_v16, %s4261_s19  ;;  %v764_v15 = vsel %vm751_vm3, %v731_v41, %v4976_v45  ;;  %v7466_v16 = vld [vmem:[#allocation3_spill] sm:$0xff] }
 0x18b   : > { %1217 = vrot.lane.b32.xlu0 %v7464_v14, %s4261_s19  ;;  %v7479_v14 = vld [vmem:[#allocation40_spill] sm:$0xff] }
 0x18c   : > { %v5156_v48 = vpop.permute.xlu2 %1123  ;;  %v5158_v58 = vpop.permute.xlu1 %1103  ;;  %v701_v41 = vsel %vm685_vm1, %v7480_v23, %v7479_v14  ;;  %v7493_v14 = vld [vmem:[#allocation18_spill] sm:$0xff] }
 0x18d   : > { %v5160_v52 = vpop.permute.xlu0 %1101 }
 0x18e   : > { %3792 = vmatmul.msk.f32.gmra.mxu0 %vm789_vm2, %v764_v15  ;;  %v7481_v15 = vld [vmem:[#allocation10_spill] sm:$0xff] }
 0x192   : > { %1227 = vrot.lane.b32.xlu2 %v4384_v18, %s4261_s19  ;;  %1225 = vrot.lane.b32.xlu1 %v7466_v16, %s4261_s19  ;;  %v765_v18 = vsel %vm751_vm3, %v732_v39, %v4898_v32  ;;  %v7482_v16 = vld [vmem:[#allocation55_spill] sm:$0xff]  ;;  %v7484_v39 = vld [vmem:[#allocation12_spill] sm:$0xff] }
 0x193   : > { %1223 = vrot.lane.b32.xlu0 %v7469_v50, %s4261_s19  ;;  %v734_v47 = vsel %vm718_vm0, %v701_v41, %v7482_v16  ;;  %v7494_v41 = vld [vmem:[#allocation15_spill] sm:$0xff] }
 0x194   : > { %v5176_v54 = vpop.permute.xlu2 %1129  ;;  %v5178_v45 = vpop.permute.xlu1 %1109  ;;  %v767_v51 = vsel %vm751_vm3, %v734_v47, %v5005_v57 }
 0x195   : > { %v5180_v1 = vpop.permute.xlu0 %1107 }
 0x196   : > { %3793 = vmatmul.msk.f32.gmra.mxu0 %vm789_vm2, %v765_v18  ;;  %v7485_v18 = vld [vmem:[#allocation39_spill] sm:$0xff] }
 0x19a   : > { %1233 = vrot.lane.b32.xlu2 %v7471_v17, %s4261_s19  ;;  %1231 = vrot.lane.b32.xlu1 %v7472_v38, %s4261_s19  ;;  %v7486_v17 = vld [vmem:[#allocation19_spill] sm:$0xff] }
 0x19b   : > { %1229 = vrot.lane.b32.xlu0 %v7475_v6, %s4261_s19  ;;  %v702_v38 = vsel %vm685_vm1, %v7486_v17, %v7485_v18  ;;  %v7498_v18 = vld [vmem:[#allocation69_spill] sm:$0xff] }
 0x19c   : > { %v5196_v9 = vpop.permute.xlu2 %1135  ;;  %v5198_v32 = vpop.permute.xlu1 %1115  ;;  %v735_v57 = vsel %vm718_vm0, %v702_v38, %v7488_v0  ;;  %v7499_v17 = vld [vmem:[#allocation45_spill] sm:$0xff]  ;;  %v7500_v38 = vld [vmem:[#allocation24_spill] sm:$0xff] }
 0x19d   : > { %v5200_v10 = vpop.permute.xlu0 %1113  ;;  %v768_v7 = vsel %vm751_vm3, %v735_v57, %v4922_v25  ;;  %v7501_v0 = vld [vmem:[#allocation64_spill] sm:$0xff] }
 0x19e   : > { %3794 = vmatmul.msk.f32.gmra.mxu0 %vm789_vm2, %v766_v11  ;;  %v7490_v11 = vld [vmem:[#allocation65_spill] sm:$0xff]  ;;  %v7502_v57 = vld [vmem:[#allocation56_spill] sm:$0xff] }
 0x1a2   : > { %1239 = vrot.lane.b32.xlu2 %v7477_v12, %s4261_s19  ;;  %1237 = vrot.lane.b32.xlu1 %v7478_v13, %s4261_s19  ;;  %v7491_v12 = vld [vmem:[#allocation14_spill] sm:$0xff]  ;;  %v7492_v13 = vld [vmem:[#allocation25_spill] sm:$0xff] }
 0x1a3   : > { %1235 = vrot.lane.b32.xlu0 %v7481_v15, %s4261_s19  ;;  %v703_v23 = vsel %vm685_vm1, %v7493_v14, %v7492_v13  ;;  %v7495_v15 = vld [vmem:[#allocation62_spill] sm:$0xff]  ;;  %v7503_v13 = vld [vmem:[#allocation79_spill] sm:$0xff]  ;;  %v7504_v14 = vld [vmem:[#allocation72_spill] sm:$0xff] }
 0x1a4   : > { %v5216_v5 = vpop.permute.xlu1 %1121  ;;  %v5222_v50 = vpop.permute.xlu2 %1141  ;;  %v736_v25 = vsel %vm718_vm0, %v703_v23, %v7495_v15  ;;  %v7505_v23 = vld [vmem:[#allocation44_spill] sm:$0xff] }
 0x1a5   : > { %v5218_v63 = vpop.permute.xlu0 %1119 }
 0x1a6   : > { %3795 = vmatmul.msk.f32.gmra.mxu0 %vm789_vm2, %v767_v51  ;;  %v769_v51 = vsel %vm751_vm3, %v736_v25, %v5035_v24  ;;  %v7507_v25 = vld [vmem:[#allocation73_spill] sm:$0xff] }
 0x1aa   : > { %1245 = vrot.lane.b32.xlu2 %v7483_v27, %s4261_s19  ;;  %1243 = vrot.lane.b32.xlu1 %v7484_v39, %s4261_s19  ;;  %v7497_v39 = vld [vmem:[#allocation74_spill] sm:$0xff] }
 0x1ab   : > { %1241 = vrot.lane.b32.xlu0 %v7487_v3, %s4261_s19  ;;  %v704_v3 = vsel %vm685_vm1, %v7500_v38, %v7499_v17 }
 0x1ac   : > { %v5236_v4 = vpop.permute.xlu1 %1127  ;;  %v5243_v8 = vpop.permute.xlu2 %1147  ;;  %v737_v24 = vsel %vm718_vm0, %v704_v3, %v7502_v57  ;;  %v7510_v3 = vld [vmem:[#allocation84_spill] sm:$0xff]  ;;  %v7512_v57 = vld [vmem:[#allocation29_spill] sm:$0xff] }
 0x1ad   : > { %v5238_v6 = vpop.permute.xlu0 %1125  ;;  %7489 = vst [vmem:[#allocation2_spill] sm:$0xff] %v5243_v8  ;;  %v7569_v8 = vld [vmem:[#allocation66_spill] sm:$0xff] }
 0x1ae   : > { %3796 = vmatmul.msk.f32.gmra.mxu0 %vm789_vm2, %v768_v7 }
 0x1b2   : > { %1251 = vrot.lane.b32.xlu2 %v7490_v11, %s4261_s19  ;;  %1249 = vrot.lane.b32.xlu1 %v7491_v12, %s4261_s19  ;;  %v770_v12 = vsel %vm751_vm3, %v737_v24, %v5033_v2  ;;  %v7513_v24 = vld [vmem:[#allocation22_spill] sm:$0xff] }
 0x1b3   : > { %1247 = vrot.lane.b32.xlu0 %v7494_v41, %s4261_s19  ;;  %v7506_v41 = vld [vmem:[#allocation23_spill] sm:$0xff] }
 0x1b4   : > { %v5256_v16 = vpop.permute.xlu1 %1133  ;;  %v5263_v27 = vpop.permute.xlu2 %1153  ;;  %v705_v15 = vsel %vm685_vm1, %v7506_v41, %v7505_v23 }
 0x1b5   : > { %v5258_v47 = vpop.permute.xlu0 %1131  ;;  %7496 = vst [vmem:[#allocation54_spill] sm:$0xff] %v5263_v27 }
 0x1b6   : > { %3797 = vmatmul.msk.f32.gmra.mxu0 %vm789_vm2, %v769_v51  ;;  %v7508_v51 = vld [vmem:[#allocation68_spill] sm:$0xff] }
 0x1ba   : > { %1321 = vrot.lane.b32.xlu2 %v7497_v39, %s4262_s20  ;;  %1319 = vrot.lane.b32.xlu1 %v7498_v18, %s4262_s20  ;;  %v738_v39 = vsel %vm718_vm0, %v705_v15, %v7508_v51  ;;  %v7518_v51 = vld [vmem:[#allocation82_spill] sm:$0xff] }
 0x1bb   : > { %1253 = vrot.lane.b32.xlu0 %v7501_v0, %s4261_s19  ;;  %v771_v38 = vsel %vm751_vm3, %v738_v39, %v4946_v28  ;;  %v7511_v0 = vld [vmem:[#allocation77_spill] sm:$0xff]  ;;  %v7519_v39 = vld [vmem:[#allocation47_spill] sm:$0xff] }
 0x1bc   : > { %v5276_v7 = vpop.permute.xlu1 %1139  ;;  %v5294_v18 = vpop.permute.xlu2 %1191 }
 0x1bd   : > { %v5278_v11 = vpop.permute.xlu0 %1137 }
 0x1be   : > { %3798 = vmatmul.msk.f32.gmra.mxu0 %vm789_vm2, %v770_v12  ;;  %v706_v12 = vsel %vm685_vm1, %v7513_v24, %v7512_v57  ;;  %v7522_v57 = vld [vmem:[#allocation57_spill] sm:$0xff] }
 0x1c2   : > { %1327 = vrot.lane.b32.xlu2 %v7503_v13, %s4262_s20  ;;  %1325 = vrot.lane.b32.xlu1 %v7504_v14, %s4262_s20  ;;  %v7514_v13 = vld [vmem:[#allocation78_spill] sm:$0xff]  ;;  %v7515_v14 = vld [vmem:[#allocation67_spill] sm:$0xff] }
 0x1c3   : > { %1323 = vrot.lane.b32.xlu0 %v7507_v25, %s4262_s20  ;;  %v739_v23 = vsel %vm718_vm0, %v706_v12, %v7515_v14  ;;  %v7525_v14 = vld [vmem:[#allocation46_spill] sm:$0xff] }
 0x1c4   : > { %v5296_v2 = vpop.permute.xlu1 %1145  ;;  %v772_v15 = vsel %vm751_vm3, %v739_v23, %v5060_v36  ;;  %v5320_v25 = vpop.permute.xlu2 %1197  ;;  %v7526_v23 = vld [vmem:[#allocation27_spill] sm:$0xff] }
 0x1c5   : > { %7509 = vst [vmem:[#allocation3_spill] sm:$0xff] %v5296_v2  ;;  %v5298_v17 = vpop.permute.xlu0 %1143  ;;  %v7573_v2 = vld [vmem:[#allocation41_spill] sm:$0xff] }
 0x1c6   : > { %3799 = vmatmul.msk.f32.gmra.mxu0 %vm789_vm2, %v771_v38  ;;  %v7520_v38 = vld [vmem:[#allocation28_spill] sm:$0xff] }
 0x1ca   : > { %1333 = vrot.lane.b32.xlu2 %v7510_v3, %s4262_s20  ;;  %1331 = vrot.lane.b32.xlu1 %v7511_v0, %s4262_s20  ;;  %v707_v3 = vsel %vm685_vm1, %v7520_v38, %v7519_v39  ;;  %v7521_v0 = vld [vmem:[#allocation83_spill] sm:$0xff] }
 0x1cb   : > { %1329 = vrot.lane.b32.xlu0 %v7514_v13, %s4262_s20  ;;  %v740_v36 = vsel %vm718_vm0, %v707_v3, %v7522_v57  ;;  %v7528_v39 = vld [vmem:[#allocation71_spill] sm:$0xff] }
 0x1cc   : > { %v5314_v41 = vpop.permute.xlu1 %1151  ;;  %v5341_v13 = vpop.permute.xlu2 %1203  ;;  %v7530_v57 = vld [vmem:[#allocation87_spill] sm:$0xff] }
 0x1cd   : > { %7516 = vst [vmem:[#allocation34_spill] sm:$0xff] %v5314_v41  ;;  %v5316_v28 = vpop.permute.xlu0 %1149 }
 0x1ce   : > { %7517 = vst [vmem:[#allocation17_spill] sm:$0xff] %v5316_v28  ;;  %3800 = vmatmul.msk.f32.gmra.mxu0 %vm789_vm2, %v772_v15  ;;  %v708_v15 = vsel %vm685_vm1, %v7526_v23, %v7525_v14  ;;  %v7533_v23 = vld [vmem:[#allocation88_spill] sm:$0xff] }
 0x1d2   : > { %1339 = vrot.lane.b32.xlu2 %v4886_v19, %s4262_s20  ;;  %1337 = vrot.lane.b32.xlu1 %v7518_v51, %s4262_s20  ;;  %v773_v19 = vsel %vm751_vm3, %v740_v36, %v5058_v29  ;;  %v7527_v51 = vld [vmem:[#allocation86_spill] sm:$0xff]  ;;  %v741_v29 = vsel %vm718_vm0, %v708_v15, %v7528_v39  ;;  %v7531_v36 = vld [vmem:[#allocation33_spill] sm:$0xff] }
 0x1d3   : > { %1335 = vrot.lane.b32.xlu0 %v7521_v0, %s4262_s20 }
 0x1d4   : > { %v5334_v24 = vpop.permute.xlu1 %1157  ;;  %v5363_v0 = vpop.permute.xlu2 %1209 }
 0x1d5   : > { %7523 = vst [vmem:[#allocation4_spill] sm:$0xff] %v5334_v24  ;;  %v5336_v12 = vpop.permute.xlu0 %1155 }
 0x1d6   : > { %7524 = vst [vmem:[#allocation60_spill] sm:$0xff] %v5336_v12  ;;  %3801 = vmatmul.msk.f32.gmra.mxu0 %vm789_vm2, %v773_v19  ;;  %v7532_v19 = vld [vmem:[#allocation26_spill] sm:$0xff] }
 0x1d7   : > { %v709_v14 = vsel %vm685_vm1, %v7532_v19, %v7531_v36  ;;  %v7538_v36 = vld [vmem:[#allocation32_spill] sm:$0xff] }
 0x1da   : > { %1345 = vrot.lane.b32.xlu2 %v4909_v56, %s4262_s20  ;;  %1343 = vrot.lane.b32.xlu1 %v4879_v21, %s4262_s20  ;;  %v774_v56 = vsel %vm751_vm3, %v741_v29, %v4974_v22  ;;  %v5361_v21 = vpop.f32.mrf.mxu0  ;;  %v7534_v22 = vld [vmem:[#allocation70_spill] sm:$0xff] }
 0x1db   : > { %1341 = vrot.lane.b32.xlu0 %v7527_v51, %s4262_s20  ;;  %7529 = vst [vmem:[#allocation5_spill] sm:$0xff] %v5361_v21  ;;  %v742_v15 = vsel %vm718_vm0, %v709_v14, %v7534_v22  ;;  %v7539_v14 = vld [vmem:[#allocation90_spill] sm:$0xff] }
 0x1dc   : > { %v5354_v38 = vpop.permute.xlu1 %1195  ;;  %v5396_v22 = vpop.permute.xlu2 %1215 }
 0x1dd   : > { %v5356_v3 = vpop.permute.xlu0 %1193 }
 0x1de   : > { %3802 = vmatmul.msk.f32.gmra.mxu0 %vm789_vm2, %v774_v56  ;;  %v7536_v56 = vld [vmem:[#allocation89_spill] sm:$0xff] }
 0x1e2   : > { %1351 = vrot.lane.b32.xlu2 %v4933_v49, %s4262_s20  ;;  %1349 = vrot.lane.b32.xlu1 %v7530_v57, %s4262_s20  ;;  %v775_v49 = vsel %vm751_vm3, %v742_v15, %v5080_v60  ;;  %v5383_v29 = vpop.f32.mrf.mxu0  ;;  %v7537_v57 = vld [vmem:[#allocation49_spill] sm:$0xff] }
 0x1e3   : > { %1347 = vrot.lane.b32.xlu0 %v7533_v23, %s4262_s20  ;;  %7535 = vst [vmem:[#allocation6_spill] sm:$0xff] %v5383_v29  ;;  %v710_v19 = vsel %vm685_vm1, %v7538_v36, %v7537_v57  ;;  %v7540_v23 = vld [vmem:[#allocation58_spill] sm:$0xff]  ;;  %v7542_v57 = vld [vmem:[#allocation48_spill] sm:$0xff]  ;;  %v7543_v36 = vld [vmem:[#allocation31_spill] sm:$0xff] }
 0x1e4   : > { %v5376_v51 = vpop.permute.xlu1 %1201  ;;  %v743_v60 = vsel %vm718_vm0, %v710_v19, %v7540_v23  ;;  %v711_v19 = vsel %vm685_vm1, %v7543_v36, %v7542_v57  ;;  %v7545_v23 = vld [vmem:[#allocation76_spill] sm:$0xff]  ;;  %v7548_v57 = vld [vmem:[#allocation93_spill] sm:$0xff]  ;;  %v7549_v36 = vld [vmem:[#allocation38_spill] sm:$0xff] }
 0x1e5   : > { %v5378_v39 = vpop.permute.xlu0 %1199 }
 0x1e6   : > { %3803 = vmatmul.msk.f32.gmra.mxu0 %vm789_vm2, %v775_v49 }
 0x1ea   : > { %1357 = vrot.lane.b32.xlu2 %v4961_v30, %s4262_s20  ;;  %1355 = vrot.lane.b32.xlu1 %v7536_v56, %s4262_s20  ;;  %v776_v30 = vsel %vm751_vm3, %v743_v60, %v5078_v26  ;;  %v7541_v56 = vld [vmem:[#allocation91_spill] sm:$0xff]  ;;  %v744_v26 = vsel %vm718_vm0, %v711_v19, %v7545_v23  ;;  %v5416_v60 = vpop.f32.mrf.mxu0  ;;  %v7550_v19 = vld [vmem:[#allocation30_spill] sm:$0xff] }
 0x1eb   : > { %1353 = vrot.lane.b32.xlu0 %v7539_v14, %s4262_s20  ;;  %v7544_v14 = vld [vmem:[#allocation92_spill] sm:$0xff]  ;;  %7546 = vst [vmem:[#allocation21_spill] sm:$0xff] %v5416_v60  ;;  %v7551_v23 = vld [vmem:[#allocation94_spill] sm:$0xff] }
 0x1ec   : > { %v5398_v15 = vpop.permute.xlu1 %1207 }
 0x1ed   : > { %v5402_v49 = vpop.permute.xlu0 %1205 }
 0x1ee   : > { %3804 = vmatmul.msk.f32.gmra.mxu0 %vm789_vm2, %v776_v30  ;;  %v7547_v30 = vld [vmem:[#allocation95_spill] sm:$0xff] }
 0x1f2   : > { %1363 = vrot.lane.b32.xlu2 %v4990_v35, %s4262_s20  ;;  %1361 = vrot.lane.b32.xlu1 %v7541_v56, %s4262_s20  ;;  %v777_v35 = vsel %vm751_vm3, %v744_v26, %v7547_v30  ;;  %v5424_v56 = vpop.permute.xlu2 %1221  ;;  %v7552_v26 = vld [vmem:[#allocation75_spill] sm:$0xff] }
 0x1f3   : > { %1359 = vrot.lane.b32.xlu0 %v7544_v14, %s4262_s20  ;;  %v712_v14 = vsel %vm685_vm1, %v7550_v19, %v7549_v36  ;;  %v7554_v19 = vld [vmem:[#allocation96_spill] sm:$0xff] }
 0x1f4   : > { %v5418_v29 = vpop.permute.xlu1 %1213  ;;  %v745_v30 = vsel %vm718_vm0, %v712_v14, %v7552_v26  ;;  %v7555_v14 = vld [vmem:[#allocation51_spill] sm:$0xff] }
 0x1f5   : > { %v5422_v24 = vpop.permute.xlu0 %1211 }
 0x1f6   : > { %3805 = vmatmul.msk.f32.gmra.mxu0 %vm789_vm2, %v777_v35 }
 0x1fa   : > { %1369 = vrot.lane.b32.xlu2 %v5018_v40, %s4262_s20  ;;  %1367 = vrot.lane.b32.xlu1 %v7548_v57, %s4262_s20  ;;  %v778_v40 = vsel %vm751_vm3, %v745_v30, %v5100_v46  ;;  %v5444_v57 = vpop.f32.mrf.mxu0  ;;  %v5447_v36 = vpop.permute.xlu2 %1227  ;;  %v7557_v46 = vld [vmem:[#allocation97_spill] sm:$0xff] }
 0x1fb   : > { %1365 = vrot.lane.b32.xlu0 %v7551_v23, %s4262_s20  ;;  %7553 = vst [vmem:[#allocation16_spill] sm:$0xff] %v5444_v57  ;;  %v7556_v23 = vld [vmem:[#allocation37_spill] sm:$0xff] }
 0x1fc   : > { %v5438_v21 = vpop.permute.xlu1 %1219  ;;  %v713_v26 = vsel %vm685_vm1, %v7556_v23, %v7555_v14  ;;  %v7558_v30 = vld [vmem:[#allocation61_spill] sm:$0xff]  ;;  %v7560_v23 = vld [vmem:[#allocation50_spill] sm:$0xff] }
 0x1fd   : > { %v5442_v35 = vpop.permute.xlu0 %1217  ;;  %v746_v57 = vsel %vm718_vm0, %v713_v26, %v7558_v30  ;;  %v7561_v26 = vld [vmem:[#allocation36_spill] sm:$0xff] }
 0x1fe   : > { %3806 = vmatmul.msk.f32.gmra.mxu0 %vm789_vm2, %v778_v40  ;;  %v779_v40 = vsel %vm751_vm3, %v746_v57, %v5098_v44  ;;  %v3845_v44 = vld [vmem:[%s7303_s1 + $0x18] sm:$0xff] }
 0x1ff   : > { %v7562_v57 = vld [vmem:[#allocation81_spill] sm:$0xff]  ;;  %1624 = vmatpush.msra.mxu1 %v3845_v44 }
 0x202   : > { %1375 = vrot.lane.b32.xlu2 %v5043_v55, %s4262_s20  ;;  %1373 = vrot.lane.b32.xlu1 %v7554_v19, %s4262_s20  ;;  %v3843_v55 = vld [vmem:[%s4297_s17 + $0x18a] sm:$0xff]  ;;  %v3842_v19 = vld [vmem:[%s4297_s17 + $0x182] sm:$0xff]  ;;  %v5469_v27 = vpop.f32.mrf.mxu0  ;;  %v5471_v14 = vpop.permute.xlu2 %1233 }
 0x203   : > { %1371 = vrot.lane.b32.xlu0 %v7557_v46, %s4262_s20  ;;  %7559 = vst [vmem:[#allocation7_spill] sm:$0xff] %v5469_v27  ;;  %v714_v46 = vsel %vm685_vm1, %v7561_v26, %v7560_v23  ;;  %v3844_v23 = vld [vmem:[%s7303_s1 + $0x10] sm:$0xff]  ;;  %v7564_v26 = vld [vmem:[#allocation43_spill] sm:$0xff] }
 0x204   : > { %v5460_v12 = vpop.permute.xlu1 %1225  ;;  %v747_v30 = vsel %vm718_vm0, %v714_v46, %v7562_v57  ;;  %1625 = vmatpush.msra.mxu1 %v3844_v23  ;;  %v7565_v27 = vld [vmem:[#allocation35_spill] sm:$0xff]  ;;  %v7566_v57 = vld [vmem:[#allocation80_spill] sm:$0xff]  ;;  %v7568_v23 = vld [vmem:[#allocation42_spill] sm:$0xff] }
 0x205   : > { %v5464_v60 = vpop.permute.xlu0 %1223  ;;  %v715_v46 = vsel %vm685_vm1, %v7565_v27, %v7564_v26 }
 0x206   : > { %3807 = vmatmul.msk.f32.gmra.mxu0 %vm789_vm2, %v779_v40  ;;  %v748_v44 = vsel %vm718_vm0, %v715_v46, %v7566_v57 }
 0x20a   : > { %1381 = vrot.lane.b32.xlu2 %v3843_v55, %s4262_s20  ;;  %1379 = vrot.lane.b32.xlu1 %v3842_v19, %s4262_s20  ;;  %v780_v55 = vsel %vm751_vm3, %v747_v30, %v5031_v34  ;;  %v5502_v41 = vpop.permute.xlu2 %1239  ;;  %v781_v30 = vsel %vm751_vm3, %v748_v44, %v5120_v59 }
 0x20b   : > { %1377 = vrot.lane.b32.xlu0 %v5040_v33, %s4262_s20  ;;  %v5495_v33 = vpop.f32.mrf.mxu0 }
 0x20c   : > { %v5485_v40 = vpop.permute.xlu1 %1231  ;;  %7563 = vst [vmem:[#allocation59_spill] sm:$0xff] %v5495_v33 }
 0x20d   : > { %v5489_v19 = vpop.permute.xlu0 %1229 }
 0x20e   : > { %3808 = vmatmul.msk.f32.gmra.mxu0 %vm789_vm2, %v780_v55  ;;  %v7567_v55 = vld [vmem:[#allocation53_spill] sm:$0xff] }
 0x20f   : > { %v716_v33 = vsel %vm685_vm1, %v7568_v23, %v7567_v55  ;;  %v7574_v23 = vld [vmem:[#allocation85_spill] sm:$0xff] }
 0x210   : > { %v749_v27 = vsel %vm718_vm0, %v716_v33, %v7569_v8 }
 0x211   : > { %v782_v57 = vsel %vm751_vm3, %v749_v27, %v5118_v53 }
 0x212   : > { %v5524_v44 = vpop.permute.xlu2 %1245 }
 0x213   : > { %v5516_v26 = vpop.f32.mrf.mxu0  ;;  %7571 = vst [vmem:[#allocation9_spill] sm:$0xff] %v5524_v44  ;;  %v4186_v44 = vld [vmem:[%s4297_s17 + $0x1] sm:$0xff] }
 0x214   : > { %v5504_v34 = vpop.permute.xlu1 %1237  ;;  %7570 = vst [vmem:[#allocation8_spill] sm:$0xff] %v5516_v26 }
 0x215   : > { %v5508_v28 = vpop.permute.xlu0 %1235 }
 0x216   : > { %3809 = vmatmul.msk.f32.gmra.mxu0 %vm789_vm2, %v781_v30  ;;  %v7572_v30 = vld [vmem:[#allocation52_spill] sm:$0xff] }
 0x217   : > { %v717_v55 = vsel %vm685_vm1, %v7573_v2, %v7572_v30  ;;  %v1415_v2 = vsel %vm685_vm1, %v4186_v44, %v5140_v42  ;;  %v4188_v44 = vld [vmem:[%s4297_s17 + $0x19] sm:$0xff] }
 0x218   : > { %v750_v8 = vsel %vm718_vm0, %v717_v55, %v7574_v23  ;;  %v1447_v30 = vsel %vm718_vm0, %v1415_v2, %v5294_v18  ;;  %v1417_v2 = vsel %vm685_vm1, %v4188_v44, %v5076_v61 }
 0x219   : > { %v783_v26 = vsel %vm751_vm3, %v750_v8, %v5056_v62 }
 0x21b   : > { %v5536_v53 = vpop.f32.mrf.mxu0 }
 0x21c   : > { %v5518_v46 = vpop.permute.xlu1 %1243  ;;  %7575 = vst [vmem:[#allocation40_spill] sm:$0xff] %v5536_v53 }
 0x21d   : > { %v5522_v59 = vpop.permute.xlu0 %1241 }
 0x21e   : > { %3810 = vmatmul.msk.f32.gmra.mxu0 %vm789_vm2, %v782_v57  ;;  %v5541_v57 = vpop.permute.xlu2 %1251 }
 0x21f   : > { %7576 = vst [vmem:[#allocation20_spill] sm:$0xff] %v5541_v57 }
 0x224   : > { %v5532_v33 = vpop.permute.xlu1 %1249 }
 0x225   : > { %v5538_v27 = vpop.permute.xlu0 %1247 }
 0x226   : > { %3811 = vmatmul.msk.f32.gmra.mxu0 %vm789_vm2, %v783_v26  ;;  %v1322_v8 = vpop.permute.xlu2 %1321  ;;  %v4187_v26 = vld [vmem:[%s4297_s17 + $0x9] sm:$0xff] }
 0x227   : > { %v1416_v53 = vsel %vm685_vm1, %v4187_v26, %v5138_v31 }
 0x228   : > { %v1448_v57 = vsel %vm718_vm0, %v1416_v53, %v5356_v3  ;;  %v4189_v3 = vld [vmem:[%s4297_s17 + $0x21] sm:$0xff] }
 0x229   : > { %v1480_v42 = vsel %vm751_vm3, %v1448_v57, %v1322_v8  ;;  %v1418_v53 = vsel %vm685_vm1, %v4189_v3, %v5160_v52 }
 0x22a   : > { %v1450_v57 = vsel %vm718_vm0, %v1418_v53, %v5320_v25  ;;  %v4191_v25 = vld [vmem:[%s4297_s17 + $0x39] sm:$0xff] }
 0x22c   : > { %v1320_v55 = vpop.permute.xlu1 %1319 }
 0x22d   : > { %v1479_v23 = vsel %vm751_vm3, %v1447_v30, %v1320_v55  ;;  %v5550_v62 = vpop.permute.xlu0 %1253  ;;  %v1449_v30 = vsel %vm718_vm0, %v1417_v2, %v5354_v38  ;;  %v4190_v38 = vld [vmem:[%s4297_s17 + $0x31] sm:$0xff] }
 0x22e   : > { %3846 = vmatmul.msk.f32.vlgmr.msra.gmra.mxu1 %vm789_vm2, %v1479_v23  ;;  %v1328_v61 = vpop.permute.xlu2 %1327  ;;  %v1419_v8 = vsel %vm685_vm1, %v4190_v38, %v5158_v58 }
 0x22f   : > { %v1451_v26 = vsel %vm718_vm0, %v1419_v8, %v5378_v39  ;;  %v4192_v39 = vld [vmem:[%s4297_s17 + $0x49] sm:$0xff] }
 0x234   : > { %v1326_v31 = vpop.permute.xlu1 %1325 }
 0x235   : > { %v1324_v18 = vpop.permute.xlu0 %1323  ;;  %v1482_v23 = vsel %vm751_vm3, %v1450_v57, %v1326_v31 }
 0x236   : > { %3847 = vmatmul.msk.f32.gmra.mxu1 %vm789_vm2, %v1480_v42  ;;  %v1481_v55 = vsel %vm751_vm3, %v1449_v30, %v1324_v18  ;;  %v1483_v42 = vsel %vm751_vm3, %v1451_v26, %v1328_v61  ;;  %v1420_v18 = vsel %vm685_vm1, %v4191_v25, %v5096_v37  ;;  %v1421_v30 = vsel %vm685_vm1, %v4192_v39, %v5180_v1  ;;  %v1334_v37 = vpop.permute.xlu2 %1333 }
 0x237   : > { %v1452_v44 = vsel %vm718_vm0, %v1420_v18, %v5376_v51  ;;  %v4193_v51 = vld [vmem:[%s4297_s17 + $0x51] sm:$0xff] }
 0x238   : > { %v1422_v3 = vsel %vm685_vm1, %v4193_v51, %v5178_v45 }
 0x239   : > { %v1454_v53 = vsel %vm718_vm0, %v1422_v3, %v5402_v49  ;;  %v4195_v49 = vld [vmem:[%s4297_s17 + $0x69] sm:$0xff] }
 0x23a   : > { %v1486_v57 = vsel %vm751_vm3, %v1454_v53, %v1334_v37  ;;  %v1424_v8 = vsel %vm685_vm1, %v4195_v49, %v5200_v10 }
 0x23b   : > { %v1456_v26 = vsel %vm718_vm0, %v1424_v8, %v5363_v0  ;;  %v4197_v0 = vld [vmem:[%s4297_s17 + $0x81] sm:$0xff] }
 0x23c   : > { %v1332_v58 = vpop.permute.xlu1 %1331 }
 0x23d   : > { %v1330_v52 = vpop.permute.xlu0 %1329 }
 0x23e   : > { %3848 = vmatmul.msk.f32.gmra.mxu1 %vm789_vm2, %v1481_v55  ;;  %v1484_v2 = vsel %vm751_vm3, %v1452_v44, %v1330_v52  ;;  %v1453_v55 = vsel %vm718_vm0, %v1421_v30, %v5341_v13  ;;  %v4194_v13 = vld [vmem:[%s4297_s17 + $0x61] sm:$0xff]  ;;  %v1426_v44 = vsel %vm685_vm1, %v4197_v0, %v5136_v20 }
 0x23f   : > { %v1485_v31 = vsel %vm751_vm3, %v1453_v55, %v1332_v58 }
 0x244   : > { %v1338_v45 = vpop.permute.xlu1 %1337 }
 0x245   : > { %v1336_v1 = vpop.permute.xlu0 %1335 }
 0x246   : > { %3849 = vmatmul.msk.f32.gmra.mxu1 %vm789_vm2, %v1482_v23  ;;  %v1423_v23 = vsel %vm685_vm1, %v4194_v13, %v5116_v43  ;;  %v1340_v43 = vpop.permute.xlu2 %1339 }
 0x247   : > { %v1455_v61 = vsel %vm718_vm0, %v1423_v23, %v5398_v15  ;;  %v4196_v15 = vld [vmem:[%s4297_s17 + $0x79] sm:$0xff] }
 0x248   : > { %v1487_v38 = vsel %vm751_vm3, %v1455_v61, %v1336_v1  ;;  %v1425_v52 = vsel %vm685_vm1, %v4196_v15, %v5198_v32  ;;  %v4201_v1 = vld [vmem:[%s4297_s17 + $0xb1] sm:$0xff]  ;;  %v4202_v61 = vld [vmem:[%s4297_s17 + $0xc1] sm:$0xff] }
 0x249   : > { %v1457_v25 = vsel %vm718_vm0, %v1425_v52, %v5422_v24  ;;  %v4198_v24 = vld [vmem:[%s4297_s17 + $0x91] sm:$0xff] }
 0x24a   : > { %v1489_v18 = vsel %vm751_vm3, %v1457_v25, %v1340_v43  ;;  %v1427_v39 = vsel %vm685_vm1, %v4198_v24, %v5218_v63  ;;  %v4204_v25 = vld [vmem:[%s4297_s17 + $0xd9] sm:$0xff] }
 0x24b   : > { %v1459_v30 = vsel %vm718_vm0, %v1427_v39, %v5396_v22  ;;  %v4200_v22 = vld [vmem:[%s4297_s17 + $0xa9] sm:$0xff] }
 0x24c   : > { %v1344_v32 = vpop.permute.xlu1 %1343  ;;  %v1429_v3 = vsel %vm685_vm1, %v4200_v22, %v5156_v48  ;;  %v5660_v48 = vld [vmem:[%s7304_s2] ss:$0 sm:$0xff] }
 0x24d   : > { %v1342_v10 = vpop.permute.xlu0 %1341  ;;  %v1491_v55 = vsel %vm751_vm3, %v1459_v30, %v1344_v32  ;;  %v1461_v53 = vsel %vm718_vm0, %v1429_v3, %v5438_v21  ;;  %v4206_v30 = vld [vmem:[%s4297_s17 + $0xf1] sm:$0xff] }
 0x24e   : > { %3850 = vmatmul.msk.f32.gmra.mxu1 %vm789_vm2, %v1483_v42  ;;  %v1488_v42 = vsel %vm751_vm3, %v1456_v26, %v1338_v45  ;;  %v1346_v20 = vpop.permute.xlu2 %1345  ;;  %v4203_v26 = vld [vmem:[%s4297_s17 + $0xc9] sm:$0xff] }
 0x255   : > { %v1348_v63 = vpop.permute.xlu0 %1347 }
 0x256   : > { %3851 = vmatmul.msk.f32.gmra.mxu1 %vm789_vm2, %v1484_v2  ;;  %v1458_v2 = vsel %vm718_vm0, %v1426_v44, %v5418_v29  ;;  %v4199_v29 = vld [vmem:[%s4297_s17 + $0x99] sm:$0xff]  ;;  %v1352_v21 = vpop.permute.xlu2 %1351 }
 0x257   : > { %v1490_v58 = vsel %vm751_vm3, %v1458_v2, %v1342_v10  ;;  %v4205_v2 = vld [vmem:[%s4297_s17 + $0xe1] sm:$0xff] }
 0x25d   : > { %v1354_v8 = vpop.permute.xlu0 %1353 }
 0x25e   : > { %3852 = vmatmul.msk.f32.gmra.mxu1 %vm789_vm2, %v1485_v31  ;;  %v1428_v31 = vsel %vm685_vm1, %v4199_v29, %v5216_v5  ;;  %v1350_v5 = vpop.permute.xlu1 %1349  ;;  %v1358_v44 = vpop.permute.xlu2 %1357 }
 0x25f   : > { %v1460_v37 = vsel %vm718_vm0, %v1428_v31, %v5442_v35  ;;  %v1430_v35 = vsel %vm685_vm1, %v4201_v1, %v5238_v6 }
 0x260   : > { %v1492_v51 = vsel %vm751_vm3, %v1460_v37, %v1346_v20  ;;  %v1462_v13 = vsel %vm718_vm0, %v1430_v35, %v5424_v56  ;;  %v4207_v37 = vld [vmem:[%s4297_s17 + $0xf9] sm:$0xff] }
 0x261   : > { %v1494_v23 = vsel %vm751_vm3, %v1462_v13, %v1350_v5  ;;  %v4209_v13 = vld [vmem:[%s4297_s17 + $0x111] sm:$0xff] }
 0x265   : > { %v1360_v39 = vpop.permute.xlu0 %1359 }
 0x266   : > { %3853 = vmatmul.msk.f32.gmra.mxu1 %vm789_vm2, %v1486_v57  ;;  %v1493_v57 = vsel %vm751_vm3, %v1461_v53, %v1348_v63  ;;  %v1356_v52 = vpop.permute.xlu1 %1355  ;;  %v1364_v3 = vpop.permute.xlu2 %1363  ;;  %v4208_v53 = vld [vmem:[%s4297_s17 + $0x109] sm:$0xff] }
 0x26d   : > { %v1366_v35 = vpop.permute.xlu0 %1365 }
 0x26e   : > { %3854 = vmatmul.msk.f32.gmra.mxu1 %vm789_vm2, %v1487_v38  ;;  %v1431_v38 = vsel %vm685_vm1, %v4202_v61, %v5236_v4  ;;  %v1362_v31 = vpop.permute.xlu1 %1361 }
 0x26f   : > { %v1463_v6 = vsel %vm718_vm0, %v1431_v38, %v5464_v60 }
 0x270   : > { %v1495_v49 = vsel %vm751_vm3, %v1463_v6, %v1352_v21 }
 0x276   : > { %3855 = vmatmul.msk.f32.gmra.mxu1 %vm789_vm2, %v1488_v42  ;;  %v1432_v42 = vsel %vm685_vm1, %v4203_v26, %v5176_v54  ;;  %v1368_v38 = vpop.permute.xlu1 %1367  ;;  %v4211_v26 = vld [vmem:[%s4297_s17 + $0x129] sm:$0xff] }
 0x277   : > { %v1464_v4 = vsel %vm718_vm0, %v1432_v42, %v5460_v12  ;;  %v7577_v42 = vld [vmem:[#allocation3_spill] sm:$0xff] }
 0x278   : > { %v1496_v15 = vsel %vm751_vm3, %v1464_v4, %v1354_v8  ;;  %v1370_v8 = vpop.permute.xlu2 %1369 }
 0x27e   : > { %3856 = vmatmul.msk.f32.gmra.mxu1 %vm789_vm2, %v1489_v18  ;;  %v1433_v18 = vsel %vm685_vm1, %v4204_v25, %v5258_v47  ;;  %v7578_v25 = vld [vmem:[#allocation2_spill] sm:$0xff] }
 0x27f   : > { %v1465_v54 = vsel %vm718_vm0, %v1433_v18, %v5447_v36 }
 0x280   : > { %v1497_v0 = vsel %vm751_vm3, %v1465_v54, %v1356_v52  ;;  %v4212_v52 = vld [vmem:[%s4297_s17 + $0x139] sm:$0xff] }
 0x281   : > { %v1441_v18 = vsel %vm685_vm1, %v4212_v52, %v7578_v25 }
 0x282   : > { %v1473_v54 = vsel %vm718_vm0, %v1441_v18, %v5518_v46 }
 0x286   : > { %3857 = vmatmul.msk.f32.gmra.mxu1 %vm789_vm2, %v1490_v58  ;;  %v1434_v58 = vsel %vm685_vm1, %v4205_v2, %v5256_v16  ;;  %v7579_v2 = vld [vmem:[#allocation17_spill] sm:$0xff] }
 0x287   : > { %v1466_v47 = vsel %vm718_vm0, %v1434_v58, %v5489_v19 }
 0x288   : > { %v1498_v24 = vsel %vm751_vm3, %v1466_v47, %v1358_v44  ;;  %v4213_v44 = vld [vmem:[%s4297_s17 + $0x141] sm:$0xff]  ;;  %v7580_v47 = vld [vmem:[#allocation9_spill] sm:$0xff] }
 0x289   : > { %v1442_v58 = vsel %vm685_vm1, %v4213_v44, %v7579_v2  ;;  %v7590_v2 = vld [vmem:[#allocation16_spill] sm:$0xff] }
 0x28e   : > { %3858 = vmatmul.msk.f32.gmra.mxu1 %vm789_vm2, %v1491_v55  ;;  %v1435_v55 = vsel %vm685_vm1, %v4206_v30, %v5196_v9  ;;  %v4214_v30 = vld [vmem:[%s4297_s17 + $0x151] sm:$0xff] }
 0x28f   : > { %v1467_v16 = vsel %vm718_vm0, %v1435_v55, %v5485_v40  ;;  %v7581_v55 = vld [vmem:[#allocation34_spill] sm:$0xff] }
 0x290   : > { %v1499_v29 = vsel %vm751_vm3, %v1467_v16, %v1360_v39  ;;  %v1376_v39 = vpop.permute.xlu2 %1375 }
 0x296   : > { %3859 = vmatmul.msk.f32.gmra.mxu1 %vm789_vm2, %v1492_v51  ;;  %v1436_v51 = vsel %vm685_vm1, %v4207_v37, %v5278_v11 }
 0x297   : > { %v1468_v9 = vsel %vm718_vm0, %v1436_v51, %v5471_v14 }
 0x298   : > { %v1500_v22 = vsel %vm751_vm3, %v1468_v9, %v1362_v31  ;;  %v1382_v37 = vpop.permute.xlu2 %1381  ;;  %v7582_v9 = vld [vmem:[#allocation54_spill] sm:$0xff] }
 0x29e   : > { %3860 = vmatmul.msk.f32.gmra.mxu1 %vm789_vm2, %v1493_v57  ;;  %v1437_v57 = vsel %vm685_vm1, %v4208_v53, %v5276_v7 }
 0x29f   : > { %v1469_v11 = vsel %vm718_vm0, %v1437_v57, %v5508_v28  ;;  %v7583_v57 = vld [vmem:[#allocation21_spill] sm:$0xff] }
 0x2a0   : > { %v1501_v1 = vsel %vm751_vm3, %v1469_v11, %v1364_v3 }
 0x2a6   : > { %3861 = vmatmul.msk.f32.gmra.mxu1 %vm789_vm2, %v1494_v23  ;;  %v1438_v23 = vsel %vm685_vm1, %v4209_v13, %v5222_v50  ;;  %v7584_v13 = vld [vmem:[#allocation60_spill] sm:$0xff] }
 0x2a7   : > { %v1470_v7 = vsel %vm718_vm0, %v1438_v23, %v5504_v34 }
 0x2a8   : > { %v1502_v61 = vsel %vm751_vm3, %v1470_v7, %v1366_v35  ;;  %v4216_v35 = vld [vmem:[%s4297_s17 + $0x169] sm:$0xff] }
 0x2a9   : > { %v1445_v23 = vsel %vm685_vm1, %v4216_v35, %v7584_v13  ;;  %v7585_v7 = vld [vmem:[#allocation20_spill] sm:$0xff] }
 0x2ab   : > { %v1627_v45 = vpop.f32.mrf.mxu1 }
 0x2ac   : > { %v1628_v56 = vadd.f32 %v5660_v48, %v1627_v45  ;;  %v4210_v45 = vld [vmem:[%s4297_s17 + $0x121] sm:$0xff] }
 0x2ad   : > { %v1439_v6 = vsel %vm685_vm1, %v4210_v45, %v5298_v17  ;;  %v7586_v45 = vld [vmem:[#allocation5_spill] sm:$0xff] }
 0x2ae   : > { %1755 = vrot.lane.b32.xlu0 %v1628_v56, %s4261_s19  ;;  %3862 = vmatmul.msk.f32.gmra.mxu1 %vm789_vm2, %v1495_v49  ;;  %v1471_v50 = vsel %vm718_vm0, %v1439_v6, %v5502_v41  ;;  %v904_v6 = vadd.f32 %v5660_v48, %v7586_v45 }
 0x2af   : > { %v1503_v49 = vsel %vm751_vm3, %v1471_v50, %v1368_v38 }
 0x2b3   : > { %v1630_v43 = vpop.f32.mrf.mxu1 }
 0x2b4   : > { %v1631_v60 = vadd.f32 %v5660_v48, %v1630_v43  ;;  %v1440_v43 = vsel %vm685_vm1, %v4211_v26, %v7577_v42 }
 0x2b5   : > { %v1472_v17 = vsel %vm718_vm0, %v1440_v43, %v5522_v59 }
 0x2b6   : > { %1757 = vrot.lane.b32.xlu1 %v1631_v60, %s4261_s19  ;;  %3863 = vmatmul.msk.f32.gmra.mxu1 %vm789_vm2, %v1496_v15  ;;  %v1504_v60 = vsel %vm751_vm3, %v1472_v17, %v1370_v8  ;;  %v1372_v15 = vpop.permute.xlu0 %1371 }
 0x2bb   : > { %v1633_v10 = vpop.f32.mrf.mxu1 }
 0x2bc   : > { %v1634_v12 = vadd.f32 %v5660_v48, %v1633_v10 }
 0x2be   : > { %1759 = vrot.lane.b32.xlu2 %v1634_v12, %s4261_s19  ;;  %3864 = vmatmul.msk.f32.gmra.mxu1 %vm789_vm2, %v1497_v0  ;;  %v1505_v12 = vsel %vm751_vm3, %v1473_v54, %v1372_v15  ;;  %v1374_v0 = vpop.permute.xlu1 %1373  ;;  %v1378_v51 = vpop.permute.xlu0 %1377 }
 0x2c3   : > { %v1636_v32 = vpop.f32.mrf.mxu1 }
 0x2c4   : > { %v1637_v36 = vadd.f32 %v5660_v48, %v1636_v32 }
 0x2c6   : > { %1761 = vrot.lane.b32.xlu0 %v1637_v36, %s4261_s19  ;;  %3865 = vmatmul.msk.f32.gmra.mxu1 %vm789_vm2, %v1498_v24  ;;  %v1474_v36 = vsel %vm718_vm0, %v1442_v58, %v7580_v47  ;;  %v913_v58 = vadd.f32 %v5660_v48, %v7590_v2 }
 0x2c7   : > { %v1506_v24 = vsel %vm751_vm3, %v1474_v36, %v1374_v0 }
 0x2cb   : > { %v1639_v20 = vpop.f32.mrf.mxu1 }
 0x2cc   : > { %v1640_v19 = vadd.f32 %v5660_v48, %v1639_v20  ;;  %v1443_v20 = vsel %vm685_vm1, %v4214_v30, %v7581_v55 }
 0x2ce   : > { %1763 = vrot.lane.b32.xlu1 %v1640_v19, %s4261_s19  ;;  %3866 = vmatmul.msk.f32.gmra.mxu1 %vm789_vm2, %v1499_v29  ;;  %v1475_v19 = vsel %vm718_vm0, %v1443_v20, %v5538_v27 }
 0x2cf   : > { %v1507_v31 = vsel %vm751_vm3, %v1475_v19, %v1376_v39  ;;  %v7591_v39 = vld [vmem:[#allocation7_spill] sm:$0xff] }
 0x2d0   : > { %v916_v30 = vadd.f32 %v5660_v48, %v7591_v39 }
 0x2d3   : > { %v1642_v63 = vpop.f32.mrf.mxu1 }
 0x2d4   : > { %v1643_v40 = vadd.f32 %v5660_v48, %v1642_v63  ;;  %v4215_v63 = vld [vmem:[%s4297_s17 + $0x159] sm:$0xff] }
 0x2d6   : > { %1765 = vrot.lane.b32.xlu2 %v1643_v40, %s4261_s19  ;;  %3867 = vmatmul.msk.f32.gmra.mxu1 %vm789_vm2, %v1500_v22  ;;  %v1444_v40 = vsel %vm685_vm1, %v4215_v63, %v7582_v9 }
 0x2d7   : > { %v1476_v3 = vsel %vm718_vm0, %v1444_v40, %v5532_v33 }
 0x2d8   : > { %v1508_v53 = vsel %vm751_vm3, %v1476_v3, %v1378_v51 }
 0x2db   : > { %v1645_v5 = vpop.f32.mrf.mxu1 }
 0x2dc   : > { %v1646_v14 = vadd.f32 %v5660_v48, %v1645_v5  ;;  %v910_v5 = vadd.f32 %v5660_v48, %v7583_v57 }
 0x2de   : > { %1767 = vrot.lane.b32.xlu0 %v1646_v14, %s4261_s19  ;;  %3868 = vmatmul.msk.f32.gmra.mxu1 %vm789_vm2, %v1501_v1  ;;  %v927_v14 = vpop.f32.mrf.mxu0  ;;  %v1380_v1 = vpop.permute.xlu1 %1379 }
 0x2e3   : > { %v1648_v21 = vpop.f32.mrf.mxu1 }
 0x2e4   : > { %v1649_v28 = vadd.f32 %v5660_v48, %v1648_v21 }
 0x2e6   : > { %1769 = vrot.lane.b32.xlu1 %v1649_v28, %s4261_s19  ;;  %3869 = vmatmul.msk.f32.gmra.mxu1 %vm789_vm2, %v1502_v61  ;;  %v1477_v28 = vsel %vm718_vm0, %v1445_v23, %v7585_v7  ;;  %v5816_v42 = vpop.f32.mrf.mxu0 }
 0x2e7   : > { %v1509_v38 = vsel %vm751_vm3, %v1477_v28, %v1380_v1 }
 0x2eb   : > { %v1651_v56 = vpop.f32.mrf.mxu1 }
 0x2ec   : > { %v1652_v34 = vadd.f32 %v5660_v48, %v1651_v56 }
 0x2ee   : > { %1771 = vrot.lane.b32.xlu2 %v1652_v34, %s4261_s19  ;;  %3870 = vmatmul.msk.f32.gmra.mxu1 %vm789_vm2, %v1503_v49  ;;  %v4217_v34 = vld [vmem:[%s4297_s17 + $0x171] sm:$0xff]  ;;  %v5830_v18 = vpop.f32.mrf.mxu0 }
 0x2ef   : > { %v7587_v49 = vld [vmem:[#allocation4_spill] sm:$0xff] }
 0x2f0   : > { %v1446_v8 = vsel %vm685_vm1, %v4217_v34, %v7587_v49 }
 0x2f1   : > { %v1478_v43 = vsel %vm718_vm0, %v1446_v8, %v5550_v62 }
 0x2f2   : > { %v1510_v17 = vsel %vm751_vm3, %v1478_v43, %v1382_v37 }
 0x2f3   : > { %v1654_v4 = vpop.f32.mrf.mxu1 }
 0x2f4   : > { %v1655_v41 = vadd.f32 %v5660_v48, %v1654_v4 }
 0x2f6   : > { %1773 = vrot.lane.b32.xlu0 %v1655_v41, %s4261_s19  ;;  %3871 = vmatmul.msk.f32.gmra.mxu1 %vm789_vm2, %v1504_v60  ;;  %v7588_v41 = vld [vmem:[#allocation6_spill] sm:$0xff] }
 0x2f7   : > { %v907_v60 = vadd.f32 %v5660_v48, %v7588_v41 }
 0x2fb   : > { %v1657_v10 = vpop.f32.mrf.mxu1 }
 0x2fc   : > { %v1658_v59 = vadd.f32 %v5660_v48, %v1657_v10  ;;  %v7589_v10 = vld [vmem:[#allocation59_spill] sm:$0xff] }
 0x2fd   : > { %v919_v54 = vadd.f32 %v5660_v48, %v7589_v10 }
 0x2fe   : > { %1775 = vrot.lane.b32.xlu1 %v1658_v59, %s4261_s19  ;;  %3872 = vmatmul.msk.f32.gmra.mxu1 %vm789_vm2, %v1505_v12 }
 0x303   : > { %v1660_v32 = vpop.f32.mrf.mxu1 }
 0x304   : > { %v1661_v46 = vadd.f32 %v5660_v48, %v1660_v32  ;;  %v936_v32 = vpop.f32.mrf.mxu0 }
 0x306   : > { %1777 = vrot.lane.b32.xlu2 %v1661_v46, %s4261_s19  ;;  %3873 = vmatmul.msk.f32.gmra.mxu1 %vm789_vm2, %v1506_v24 }
 0x30b   : > { %v1663_v16 = vpop.f32.mrf.mxu1 }
 0x30c   : > { %v1664_v29 = vadd.f32 %v5660_v48, %v1663_v16  ;;  %v939_v16 = vpop.f32.mrf.mxu0 }
 0x30d   : > { %v940_v10 = vadd.f32 %v5660_v48, %v939_v16 }
 0x30e   : > { %1779 = vrot.lane.b32.xlu0 %v1664_v29, %s4261_s19  ;;  %3874 = vmatmul.msk.f32.gmra.mxu1 %vm789_vm2, %v1507_v31  ;;  %v928_v31 = vadd.f32 %v5660_v48, %v927_v14 }
 0x313   : > { %v1666_v22 = vpop.f32.mrf.mxu1 }
 0x314   : > { %v1667_v27 = vadd.f32 %v5660_v48, %v1666_v22  ;;  %v942_v9 = vpop.f32.mrf.mxu0  ;;  %v7592_v22 = vld [vmem:[#allocation8_spill] sm:$0xff] }
 0x315   : > { %v922_v3 = vadd.f32 %v5660_v48, %v7592_v22 }
 0x316   : > { %1781 = vrot.lane.b32.xlu1 %v1667_v27, %s4261_s19  ;;  %3875 = vmatmul.msk.f32.gmra.mxu1 %vm789_vm2, %v1508_v53 }
 0x318   : > { %v1760_v11 = vpop.permute.xlu2 %1759 }
 0x319   : > { %v1853_v33 = vsel %vm718_vm0, %v910_v5, %v1760_v11 }
 0x31a   : > { %1885 = vst.msk [vmem:[%s5794_s7 + $0x20] sm:$0xff] %vm789_vm2, %v1853_v33  ;;  %v7593_v33 = vld [vmem:[#allocation40_spill] sm:$0xff] }
 0x31b   : > { %v1669_v21 = vpop.f32.mrf.mxu1  ;;  %v925_v14 = vadd.f32 %v5660_v48, %v7593_v33 }
 0x31c   : > { %v1670_v61 = vadd.f32 %v5660_v48, %v1669_v21  ;;  %v945_v11 = vpop.f32.mrf.mxu0  ;;  %v937_v21 = vadd.f32 %v5660_v48, %v936_v32 }
 0x31e   : > { %1783 = vrot.lane.b32.xlu2 %v1670_v61, %s4261_s19  ;;  %3876 = vmatmul.msk.f32.gmra.mxu1 %vm789_vm2, %v1509_v38 }
 0x320   : > { %v1756_v56 = vpop.permute.xlu0 %1755 }
 0x321   : > { %v1851_v50 = vsel %vm718_vm0, %v904_v6, %v1756_v56  ;;  %v931_v6 = vadd.f32 %v5660_v48, %v5816_v42 }
 0x322   : > { %1883 = vst.msk [vmem:[%s5794_s7] sm:$0xff] %vm789_vm2, %v1851_v50 }
 0x323   : > { %v1672_v26 = vpop.f32.mrf.mxu1 }
 0x324   : > { %v1673_v4 = vadd.f32 %v5660_v48, %v1672_v26  ;;  %v948_v7 = vpop.f32.mrf.mxu0  ;;  %v934_v26 = vadd.f32 %v5660_v48, %v5830_v18 }
 0x325   : > { %v949_v16 = vadd.f32 %v5660_v48, %v948_v7 }
 0x326   : > { %1785 = vrot.lane.b32.xlu0 %v1673_v4, %s4261_s19  ;;  %3877 = vmatmul.msk.f32.gmra.mxu1 %vm789_vm2, %v1510_v17 }
 0x328   : > { %v1758_v15 = vpop.permute.xlu1 %1757 }
 0x329   : > { %v1852_v52 = vsel %vm718_vm0, %v907_v60, %v1758_v15  ;;  %v946_v60 = vadd.f32 %v5660_v48, %v945_v11 }
 0x32a   : > { %1884 = vst.msk [vmem:[%s5794_s7 + $0x8] sm:$0xff] %vm789_vm2, %v1852_v52 }
 0x32b   : > { %v1675_v25 = vpop.f32.mrf.mxu1 }
 0x32c   : > { %v1676_v62 = vadd.f32 %v5660_v48, %v1675_v25  ;;  %v951_v34 = vpop.f32.mrf.mxu0 }
 0x32e   : > { %1787 = vrot.lane.b32.xlu1 %v1676_v62, %s4261_s19 }
 0x330   : > { %v1766_v59 = vpop.permute.xlu2 %1765 }
 0x331   : > { %v1856_v12 = vsel %vm718_vm0, %v919_v54, %v1766_v59 }
 0x332   : > { %1888 = vst.msk [vmem:[%s5794_s7 + $0x48] sm:$0xff] %vm789_vm2, %v1856_v12 }
 0x333   : > { %v1678_v0 = vpop.f32.mrf.mxu1 }
 0x334   : > { %v1679_v44 = vadd.f32 %v5660_v48, %v1678_v0  ;;  %v954_v17 = vpop.f32.mrf.mxu0 }
 0x336   : > { %1789 = vrot.lane.b32.xlu2 %v1679_v44, %s4261_s19  ;;  %v943_v44 = vadd.f32 %v5660_v48, %v942_v9  ;;  %v952_v9 = vadd.f32 %v5660_v48, %v951_v34 }
 0x338   : > { %v1762_v47 = vpop.permute.xlu0 %1761 }
 0x339   : > { %v1854_v36 = vsel %vm718_vm0, %v913_v58, %v1762_v47 }
 0x33a   : > { %1886 = vst.msk [vmem:[%s5794_s7 + $0x28] sm:$0xff] %vm789_vm2, %v1854_v36 }
 0x33b   : > { %v1681_v46 = vpop.f32.mrf.mxu1 }
 0x33c   : > { %v1682_v24 = vadd.f32 %v5660_v48, %v1681_v46  ;;  %v957_v18 = vpop.f32.mrf.mxu0  ;;  %v955_v46 = vadd.f32 %v5660_v48, %v954_v17  ;;  %v6007_v17 = vld [vmem:[%s4297_s17 + $0x99] sm:$0xff] }
 0x33e   : > { %1791 = vrot.lane.b32.xlu0 %v1682_v24, %s4261_s19 }
 0x340   : > { %v1764_v55 = vpop.permute.xlu1 %1763 }
 0x341   : > { %v1855_v20 = vsel %vm718_vm0, %v916_v30, %v1764_v55 }
 0x342   : > { %1887 = vst.msk [vmem:[%s5794_s7 + $0x40] sm:$0xff] %vm789_vm2, %v1855_v20 }
 0x343   : > { %v1684_v19 = vpop.f32.mrf.mxu1 }
 0x344   : > { %v1685_v29 = vadd.f32 %v5660_v48, %v1684_v19  ;;  %v960_v2 = vpop.f32.mrf.mxu0 }
 0x346   : > { %1793 = vrot.lane.b32.xlu1 %v1685_v29, %s4261_s19 }
 0x348   : > { %v1772_v37 = vpop.permute.xlu2 %1771 }
 0x349   : > { %v1859_v51 = vsel %vm718_vm0, %v928_v31, %v1772_v37  ;;  %v5923_v37 = vld [vmem:[%s4297_s17 + $0x19] sm:$0xff] }
 0x34a   : > { %1891 = vst.msk [vmem:[%s5794_s7 + $0x80] sm:$0xff] %vm789_vm2, %v1859_v51 }
 0x34b   : > { %v1687_v63 = vpop.f32.mrf.mxu1 }
 0x34c   : > { %v1688_v40 = vadd.f32 %v5660_v48, %v1687_v63  ;;  %v963_v30 = vpop.f32.mrf.mxu0 }
 0x34d   : > { %v964_v11 = vadd.f32 %v5660_v48, %v963_v30  ;;  %v6067_v30 = vld [vmem:[%s4297_s17 + $0x121] sm:$0xff] }
 0x34e   : > { %1795 = vrot.lane.b32.xlu2 %v1688_v40, %s4261_s19 }
 0x350   : > { %v1768_v27 = vpop.permute.xlu0 %1767 }
 0x351   : > { %v1857_v53 = vsel %vm718_vm0, %v922_v3, %v1768_v27  ;;  %v5934_v27 = vld [vmem:[%s4297_s17 + $0x21] sm:$0xff] }
 0x352   : > { %1889 = vst.msk [vmem:[%s5794_s7 + $0x60] sm:$0xff] %vm789_vm2, %v1857_v53 }
 0x353   : > { %v1690_v57 = vpop.f32.mrf.mxu1 }
 0x354   : > { %v1691_v5 = vadd.f32 %v5660_v48, %v1690_v57  ;;  %v966_v51 = vpop.f32.mrf.mxu0  ;;  %v5938_v57 = vld [vmem:[%s4297_s17 + $0x39] sm:$0xff] }
 0x356   : > { %1797 = vrot.lane.b32.xlu0 %v1691_v5, %s4261_s19 }
 0x358   : > { %v1770_v1 = vpop.permute.xlu1 %1769 }
 0x359   : > { %v1858_v35 = vsel %vm718_vm0, %v925_v14, %v1770_v1  ;;  %v5950_v1 = vld [vmem:[%s4297_s17 + $0x31] sm:$0xff] }
 0x35a   : > { %1890 = vst.msk [vmem:[%s5794_s7 + $0x68] sm:$0xff] %vm789_vm2, %v1858_v35  ;;  %v5953_v35 = vld [vmem:[%s4297_s17 + $0x49] sm:$0xff] }
 0x35b   : > { %v1693_v13 = vpop.f32.mrf.mxu1 }
 0x35c   : > { %v1694_v23 = vadd.f32 %v5660_v48, %v1693_v13  ;;  %v969_v5 = vpop.f32.mrf.mxu0  ;;  %v5956_v13 = vld [vmem:[%s4297_s17 + $0x61] sm:$0xff] }
 0x35e   : > { %1799 = vrot.lane.b32.xlu1 %v1694_v23, %s4261_s19  ;;  %v958_v23 = vadd.f32 %v5660_v48, %v957_v18  ;;  %v6026_v18 = vld [vmem:[%s4297_s17 + $0xc1] sm:$0xff] }
 0x360   : > { %v1778_v28 = vpop.permute.xlu2 %1777 }
 0x361   : > { %v1862_v61 = vsel %vm718_vm0, %v937_v21, %v1778_v28 }
 0x362   : > { %1894 = vst.msk [vmem:[%s5794_s7 + $0xa8] sm:$0xff] %vm789_vm2, %v1862_v61  ;;  %v5969_v61 = vld [vmem:[%s4297_s17 + $0x51] sm:$0xff] }
 0x363   : > { %v1696_v38 = vpop.f32.mrf.mxu1 }
 0x364   : > { %v1697_v45 = vadd.f32 %v5660_v48, %v1696_v38  ;;  %v972_v21 = vpop.f32.mrf.mxu0  ;;  %v5972_v38 = vld [vmem:[%s4297_s17 + $0x69] sm:$0xff] }
 0x366   : > { %1801 = vrot.lane.b32.xlu2 %v1697_v45, %s4261_s19  ;;  %v5975_v45 = vld [vmem:[%s4297_s17 + $0x81] sm:$0xff] }
 0x368   : > { %v1774_v56 = vpop.permute.xlu0 %1773 }
 0x369   : > { %v1860_v50 = vsel %vm718_vm0, %v931_v6, %v1774_v56  ;;  %v961_v6 = vadd.f32 %v5660_v48, %v960_v2  ;;  %v6045_v2 = vld [vmem:[%s4297_s17 + $0xe1] sm:$0xff] }
 0x36a   : > { %1892 = vst.msk [vmem:[%s5794_s7 + $0x88] sm:$0xff] %vm789_vm2, %v1860_v50 }
 0x36b   : > { %v1699_v49 = vpop.f32.mrf.mxu1 }
 0x36c   : > { %v1700_v8 = vadd.f32 %v5660_v48, %v1699_v49  ;;  %v975_v34 = vpop.f32.mrf.mxu0  ;;  %v5988_v49 = vld [vmem:[%s4297_s17 + $0x79] sm:$0xff] }
 0x36e   : > { %1803 = vrot.lane.b32.xlu0 %v1700_v8, %s4261_s19  ;;  %v5991_v8 = vld [vmem:[%s4297_s17 + $0x91] sm:$0xff] }
 0x370   : > { %v1776_v43 = vpop.permute.xlu1 %1775 }
 0x371   : > { %v1861_v4 = vsel %vm718_vm0, %v934_v26, %v1776_v43  ;;  %v5994_v26 = vld [vmem:[%s4297_s17 + $0xa9] sm:$0xff]  ;;  %v973_v43 = vadd.f32 %v5660_v48, %v972_v21  ;;  %v3939_v21 = vld [vmem:[%s4297_s17 + $0x171] sm:$0xff] }
 0x372   : > { %1893 = vst.msk [vmem:[%s5794_s7 + $0xa0] sm:$0xff] %vm789_vm2, %v1861_v4 }
 0x373   : > { %v1702_v42 = vpop.f32.mrf.mxu1 }
 0x374   : > { %v1703_v41 = vadd.f32 %v5660_v48, %v1702_v42 }
 0x376   : > { %1805 = vrot.lane.b32.xlu1 %v1703_v41, %s4261_s19  ;;  %v6010_v41 = vld [vmem:[%s4297_s17 + $0xb1] sm:$0xff] }
 0x378   : > { %v1784_v15 = vpop.permute.xlu2 %1783 }
 0x379   : > { %v1865_v52 = vsel %vm718_vm0, %v946_v60, %v1784_v15  ;;  %v978_v60 = vpop.f32.mrf.mxu0  ;;  %v6013_v15 = vld [vmem:[%s4297_s17 + $0xc9] sm:$0xff] }
 0x37a   : > { %1897 = vst.msk [vmem:[%s5794_s7 + $0xe0] sm:$0xff] %vm789_vm2, %v1865_v52  ;;  %v967_v52 = vadd.f32 %v5660_v48, %v966_v51  ;;  %v3935_v51 = vld [vmem:[%s4297_s17 + $0x141] sm:$0xff] }
 0x37b   : > { %v1705_v25 = vpop.f32.mrf.mxu1 }
 0x37c   : > { %v1706_v62 = vadd.f32 %v5660_v48, %v1705_v25 }
 0x37e   : > { %1807 = vrot.lane.b32.xlu2 %v1706_v62, %s4261_s19 }
 0x380   : > { %v1780_v54 = vpop.permute.xlu0 %1779 }
 0x381   : > { %v1863_v59 = vsel %vm718_vm0, %v940_v10, %v1780_v54  ;;  %v6029_v10 = vld [vmem:[%s4297_s17 + $0xd9] sm:$0xff]  ;;  %v6032_v54 = vld [vmem:[%s4297_s17 + $0xf1] sm:$0xff] }
 0x382   : > { %1895 = vst.msk [vmem:[%s5794_s7 + $0xc0] sm:$0xff] %vm789_vm2, %v1863_v59  ;;  %v981_v59 = vpop.f32.mrf.mxu0 }
 0x383   : > { %v1708_v12 = vpop.f32.mrf.mxu1 }
 0x384   : > { %v1709_v0 = vadd.f32 %v5660_v48, %v1708_v12  ;;  %v970_v12 = vadd.f32 %v5660_v48, %v969_v5 }
 0x386   : > { %1809 = vrot.lane.b32.xlu0 %v1709_v0, %s4261_s19 }
 0x388   : > { %v1782_v58 = vpop.permute.xlu1 %1781 }
 0x389   : > { %v1864_v32 = vsel %vm718_vm0, %v943_v44, %v1782_v58  ;;  %v6048_v58 = vld [vmem:[%s4297_s17 + $0xf9] sm:$0xff] }
 0x38a   : > { %1896 = vst.msk [vmem:[%s5794_s7 + $0xc8] sm:$0xff] %vm789_vm2, %v1864_v32  ;;  %v6051_v32 = vld [vmem:[%s4297_s17 + $0x111] sm:$0xff] }
 0x38b   : > { %v1711_v47 = vpop.f32.mrf.mxu1 }
 0x38c   : > { %v1712_v36 = vadd.f32 %v5660_v48, %v1711_v47  ;;  %v982_v47 = vadd.f32 %v5660_v48, %v981_v59  ;;  %v6139_v59 = vld [vmem:[%s4297_s17 + $0x50] sm:$0xff] }
 0x38e   : > { %1811 = vrot.lane.b32.xlu1 %v1712_v36, %s4261_s19  ;;  %v984_v36 = vpop.f32.mrf.mxu0 }
 0x390   : > { %v1790_v24 = vpop.permute.xlu2 %1789 }
 0x391   : > { %v1868_v39 = vsel %vm718_vm0, %v955_v46, %v1790_v24 }
 0x392   : > { %1900 = vst.msk [vmem:[%s5794_s7 + $0x108] sm:$0xff] %vm789_vm2, %v1868_v39  ;;  %v6064_v39 = vld [vmem:[%s4297_s17 + $0x109] sm:$0xff] }
 0x393   : > { %v1714_v55 = vpop.f32.mrf.mxu1 }
 0x394   : > { %v1715_v20 = vadd.f32 %v5660_v48, %v1714_v55  ;;  %v3934_v55 = vld [vmem:[%s4297_s17 + $0x139] sm:$0xff] }
 0x396   : > { %1813 = vrot.lane.b32.xlu2 %v1715_v20, %s4261_s19  ;;  %v976_v20 = vadd.f32 %v5660_v48, %v975_v34 }
 0x398   : > { %v1786_v19 = vpop.permute.xlu0 %1785 }
 0x399   : > { %v1866_v29 = vsel %vm718_vm0, %v949_v16, %v1786_v19 }
 0x39a   : > { %1898 = vst.msk [vmem:[%s5794_s7 + $0xe8] sm:$0xff] %vm789_vm2, %v1866_v29  ;;  %v987_v29 = vpop.f32.mrf.mxu0 }
 0x39b   : > { %v1717_v31 = vpop.f32.mrf.mxu1 }
 0x39c   : > { %v1718_v63 = vadd.f32 %v5660_v48, %v1717_v31  ;;  %v6080_v31 = vld [vmem:[%s4297_s17 + $0x129] sm:$0xff] }
 0x39e   : > { %1815 = vrot.lane.b32.xlu0 %v1718_v63, %s4261_s19  ;;  %2076 = vrot.lane.b32.xlu2 %v5923_v37, %s4260_s18  ;;  %v3937_v63 = vld [vmem:[%s4297_s17 + $0x159] sm:$0xff] }
 0x3a0   : > { %v1788_v40 = vpop.permute.xlu1 %1787 }
 0x3a1   : > { %v1867_v22 = vsel %vm718_vm0, %v952_v9, %v1788_v40  ;;  %v979_v9 = vadd.f32 %v5660_v48, %v978_v60  ;;  %v988_v60 = vadd.f32 %v5660_v48, %v987_v29  ;;  %v6177_v29 = vld [vmem:[%s4297_s17 + $0x98] sm:$0xff] }
 0x3a2   : > { %1899 = vst.msk [vmem:[%s5794_s7 + $0x100] sm:$0xff] %vm789_vm2, %v1867_v22  ;;  %v990_v5 = vpop.f32.mrf.mxu0 }
 0x3a3   : > { %v1720_v3 = vpop.f32.mrf.mxu1  ;;  %7596 = vst [vmem:[#allocation11_spill] sm:$0xff] %v6177_v29 }
 0x3a4   : > { %v1721_v53 = vadd.f32 %v5660_v48, %v1720_v3  ;;  %v3936_v3 = vld [vmem:[%s4297_s17 + $0x151] sm:$0xff] }
 0x3a6   : > { %1817 = vrot.lane.b32.xlu1 %v1721_v53, %s4261_s19  ;;  %2078 = vrot.lane.b32.xlu0 %v5934_v27, %s4260_s18  ;;  %v3938_v53 = vld [vmem:[%s4297_s17 + $0x169] sm:$0xff] }
 0x3a7   : > { %2082 = vrot.lane.b32.xlu2 %v5938_v57, %s4260_s18 }
 0x3a8   : > { %v1796_v33 = vpop.permute.xlu2 %1795 }
 0x3a9   : > { %v1871_v14 = vsel %vm718_vm0, %v964_v11, %v1796_v33  ;;  %v3940_v11 = vld [vmem:[%s4297_s17 + $0x181] sm:$0xff]  ;;  %v991_v33 = vadd.f32 %v5660_v48, %v990_v5 }
 0x3aa   : > { %1903 = vst.msk [vmem:[%s5794_s7 + $0x140] sm:$0xff] %vm789_vm2, %v1871_v14 }
 0x3ae   : > { %2080 = vrot.lane.b32.xlu1 %v5950_v1, %s4260_s18  ;;  %2084 = vrot.lane.b32.xlu0 %v5953_v35, %s4260_s18 }
 0x3af   : > { %2088 = vrot.lane.b32.xlu2 %v5956_v13, %s4260_s18 }
 0x3b0   : > { %v1792_v7 = vpop.permute.xlu0 %1791 }
 0x3b1   : > { %v1869_v28 = vsel %vm718_vm0, %v958_v23, %v1792_v7  ;;  %v3941_v7 = vld [vmem:[%s4297_s17 + $0x189] sm:$0xff] }
 0x3b2   : > { %1901 = vst.msk [vmem:[%s5794_s7 + $0x120] sm:$0xff] %vm789_vm2, %v1869_v28  ;;  %v6105_v28 = vld [vmem:[%s4297_s17 + $0x38] sm:$0xff] }
 0x3b6   : > { %2086 = vrot.lane.b32.xlu1 %v5969_v61, %s4260_s18  ;;  %2090 = vrot.lane.b32.xlu0 %v5972_v38, %s4260_s18 }
 0x3b7   : > { %2094 = vrot.lane.b32.xlu2 %v5975_v45, %s4260_s18 }
 0x3b8   : > { %v1794_v56 = vpop.permute.xlu1 %1793 }
 0x3b9   : > { %v1870_v50 = vsel %vm718_vm0, %v961_v6, %v1794_v56  ;;  %v985_v6 = vadd.f32 %v5660_v48, %v984_v36  ;;  %v6156_v36 = vld [vmem:[%s4297_s17 + $0x78] sm:$0xff] }
 0x3ba   : > { %1902 = vst.msk [vmem:[%s5794_s7 + $0x128] sm:$0xff] %vm789_vm2, %v1870_v50 }
 0x3be   : > { %2092 = vrot.lane.b32.xlu1 %v5988_v49, %s4260_s18  ;;  %2096 = vrot.lane.b32.xlu0 %v5991_v8, %s4260_s18 }
 0x3bf   : > { %2100 = vrot.lane.b32.xlu2 %v5994_v26, %s4260_s18 }
 0x3c0   : > { %v1802_v4 = vpop.permute.xlu2 %1801 }
 0x3c1   : > { %v1874_v42 = vsel %vm718_vm0, %v973_v43, %v1802_v4  ;;  %v6118_v43 = vld [vmem:[%s4297_s17 + $0x30] sm:$0xff]  ;;  %v6121_v4 = vld [vmem:[%s4297_s17 + $0x48] sm:$0xff] }
 0x3c2   : > { %1906 = vst.msk [vmem:[%s5794_s7 + $0x168] sm:$0xff] %vm789_vm2, %v1874_v42  ;;  %v6124_v42 = vld [vmem:[%s4297_s17 + $0x60] sm:$0xff] }
 0x3c6   : > { %2098 = vrot.lane.b32.xlu1 %v6007_v17, %s4260_s18  ;;  %2102 = vrot.lane.b32.xlu0 %v6010_v41, %s4260_s18 }
 0x3c7   : > { %2106 = vrot.lane.b32.xlu2 %v6013_v15, %s4260_s18 }
 0x3c8   : > { %v1798_v25 = vpop.permute.xlu0 %1797 }
 0x3c9   : > { %v1872_v62 = vsel %vm718_vm0, %v967_v52, %v1798_v25 }
 0x3ca   : > { %1904 = vst.msk [vmem:[%s5794_s7 + $0x148] sm:$0xff] %vm789_vm2, %v1872_v62 }
 0x3ce   : > { %2104 = vrot.lane.b32.xlu1 %v6026_v18, %s4260_s18  ;;  %2108 = vrot.lane.b32.xlu0 %v6029_v10, %s4260_s18 }
 0x3cf   : > { %2112 = vrot.lane.b32.xlu2 %v6032_v54, %s4260_s18 }
 0x3d0   : > { %v1800_v0 = vpop.permute.xlu1 %1799 }
 0x3d1   : > { %v1873_v44 = vsel %vm718_vm0, %v970_v12, %v1800_v0  ;;  %v6142_v12 = vld [vmem:[%s4297_s17 + $0x68] sm:$0xff]  ;;  %v6145_v0 = vld [vmem:[%s4297_s17 + $0x80] sm:$0xff] }
 0x3d2   : > { %1905 = vst.msk [vmem:[%s5794_s7 + $0x160] sm:$0xff] %vm789_vm2, %v1873_v44 }
 0x3d6   : > { %2110 = vrot.lane.b32.xlu1 %v6045_v2, %s4260_s18  ;;  %2114 = vrot.lane.b32.xlu0 %v6048_v58, %s4260_s18 }
 0x3d7   : > { %2118 = vrot.lane.b32.xlu2 %v6051_v32, %s4260_s18 }
 0x3d8   : > { %v1808_v46 = vpop.permute.xlu2 %1807 }
 0x3d9   : > { %v1877_v24 = vsel %vm718_vm0, %v982_v47, %v1808_v46  ;;  %v993_v47 = vpop.f32.mrf.mxu0  ;;  %v6159_v46 = vld [vmem:[%s4297_s17 + $0x90] sm:$0xff] }
 0x3da   : > { %1909 = vst.msk [vmem:[%s5794_s7 + $0x1a0] sm:$0xff] %vm789_vm2, %v1877_v24  ;;  %v6162_v24 = vld [vmem:[%s4297_s17 + $0xa8] sm:$0xff] }
 0x3db   : > { %7594 = vst [vmem:[#allocation10_spill] sm:$0xff] %v6159_v46 }
 0x3dc   : > { %7595 = vst [vmem:[#allocation55_spill] sm:$0xff] %v6162_v24 }
 0x3de   : > { %2116 = vrot.lane.b32.xlu1 %v6064_v39, %s4260_s18  ;;  %2120 = vrot.lane.b32.xlu0 %v6067_v30, %s4260_s18 }
 0x3df   : > { %2124 = vrot.lane.b32.xlu2 %v3934_v55, %s4260_s18  ;;  %v994_v55 = vadd.f32 %v5660_v48, %v993_v47  ;;  %v3962_v47 = vld [vmem:[%s4297_s17 + $0x120] sm:$0xff] }
 0x3e0   : > { %v1804_v16 = vpop.permute.xlu0 %1803 }
 0x3e1   : > { %v1875_v19 = vsel %vm718_vm0, %v976_v20, %v1804_v16 }
 0x3e2   : > { %1907 = vst.msk [vmem:[%s5794_s7 + $0x180] sm:$0xff] %vm789_vm2, %v1875_v19 }
 0x3e6   : > { %2122 = vrot.lane.b32.xlu1 %v6080_v31, %s4260_s18  ;;  %2126 = vrot.lane.b32.xlu0 %v3935_v51, %s4260_s18  ;;  %v6180_v51 = vld [vmem:[%s4297_s17 + $0xb0] sm:$0xff] }
 0x3e7   : > { %2130 = vrot.lane.b32.xlu2 %v3937_v63, %s4260_s18  ;;  %7597 = vst [vmem:[#allocation12_spill] sm:$0xff] %v6180_v51  ;;  %v996_v63 = vpop.f32.mrf.mxu0 }
 0x3e8   : > { %v1806_v40 = vpop.permute.xlu1 %1805 }
 0x3e9   : > { %v1876_v22 = vsel %vm718_vm0, %v979_v9, %v1806_v40  ;;  %v6183_v9 = vld [vmem:[%s4297_s17 + $0xc8] sm:$0xff]  ;;  %v997_v40 = vadd.f32 %v5660_v48, %v996_v63 }
 0x3ea   : > { %1908 = vst.msk [vmem:[%s5794_s7 + $0x188] sm:$0xff] %vm789_vm2, %v1876_v22 }
 0x3eb   : > { %7598 = vst [vmem:[#allocation39_spill] sm:$0xff] %v6183_v9 }
 0x3ee   : > { %2128 = vrot.lane.b32.xlu1 %v3936_v3, %s4260_s18  ;;  %2132 = vrot.lane.b32.xlu0 %v3938_v53, %s4260_s18 }
 0x3ef   : > { %2136 = vrot.lane.b32.xlu2 %v3940_v11, %s4260_s18  ;;  %v6200_v11 = vld [vmem:[%s4297_s17 + $0xc0] sm:$0xff] }
 0x3f0   : > { %v1814_v14 = vpop.permute.xlu2 %1813  ;;  %7600 = vst [vmem:[#allocation13_spill] sm:$0xff] %v6200_v11 }
 0x3f1   : > { %v1880_v23 = vsel %vm718_vm0, %v991_v33, %v1814_v14  ;;  %v3956_v33 = vld [vmem:[%s4297_s17 + $0xd8] sm:$0xff]  ;;  %v3958_v14 = vld [vmem:[%s4297_s17 + $0xf0] sm:$0xff] }
 0x3f2   : > { %1912 = vst.msk [vmem:[%s5794_s7 + $0x1c8] sm:$0xff] %vm789_vm2, %v1880_v23 }
 0x3f6   : > { %2134 = vrot.lane.b32.xlu1 %v3939_v21, %s4260_s18  ;;  %2138 = vrot.lane.b32.xlu0 %v3941_v7, %s4260_s18  ;;  %v3957_v7 = vld [vmem:[%s4297_s17 + $0xe0] sm:$0xff] }
 0x3f7   : > { %2206 = vrot.lane.b32.xlu2 %v6105_v28, %s4261_s19 }
 0x3f8   : > { %v6112_v56 = vpop.permute.xlu2 %2076  ;;  %v1810_v50 = vpop.permute.xlu0 %1809 }
 0x3f9   : > { %v1878_v34 = vsel %vm718_vm0, %v985_v6, %v1810_v50  ;;  %v3959_v6 = vld [vmem:[%s4297_s17 + $0xf8] sm:$0xff]  ;;  %v3961_v50 = vld [vmem:[%s4297_s17 + $0x110] sm:$0xff] }
 0x3fa   : > { %1910 = vst.msk [vmem:[%s5794_s7 + $0x1a8] sm:$0xff] %vm789_vm2, %v1878_v34 }
 0x3fe   : > { %2204 = vrot.lane.b32.xlu1 %v6118_v43, %s4261_s19  ;;  %2208 = vrot.lane.b32.xlu0 %v6121_v4, %s4261_s19 }
 0x3ff   : > { %2212 = vrot.lane.b32.xlu2 %v6124_v42, %s4261_s19 }
 0x400   : > { %v1812_v52 = vpop.permute.xlu1 %1811 }
 0x401   : > { %v1879_v25 = vsel %vm718_vm0, %v988_v60, %v1812_v52  ;;  %v6134_v62 = vpop.permute.xlu2 %2082 }
 0x402   : > { %1911 = vst.msk [vmem:[%s5794_s7 + $0x1c0] sm:$0xff] %vm789_vm2, %v1879_v25  ;;  %v3960_v25 = vld [vmem:[%s4297_s17 + $0x108] sm:$0xff] }
 0x406   : > { %2210 = vrot.lane.b32.xlu1 %v6139_v59, %s4261_s19  ;;  %2214 = vrot.lane.b32.xlu0 %v6142_v12, %s4261_s19 }
 0x407   : > { %2218 = vrot.lane.b32.xlu2 %v6145_v0, %s4261_s19 }
 0x409   : > { %v6153_v44 = vpop.permute.xlu2 %2088 }
 0x40e   : > { %2216 = vrot.lane.b32.xlu1 %v6156_v36, %s4261_s19  ;;  %2220 = vrot.lane.b32.xlu0 %v6159_v46, %s4261_s19 }
 0x40f   : > { %2224 = vrot.lane.b32.xlu2 %v6162_v24, %s4261_s19 }
 0x410   : > { %v1816_v20 = vpop.permute.xlu0 %1815 }
 0x411   : > { %v6171_v16 = vpop.permute.xlu2 %2094  ;;  %v1881_v19 = vsel %vm718_vm0, %v994_v55, %v1816_v20  ;;  %v3964_v55 = vld [vmem:[%s4297_s17 + $0x138] sm:$0xff] }
 0x412   : > { %1913 = vst.msk [vmem:[%s5794_s7 + $0x1e0] sm:$0xff] %vm789_vm2, %v1881_v19 }
 0x416   : > { %2222 = vrot.lane.b32.xlu1 %v6177_v29, %s4261_s19  ;;  %2226 = vrot.lane.b32.xlu0 %v6180_v51, %s4261_s19 }
 0x417   : > { %2230 = vrot.lane.b32.xlu2 %v6183_v9, %s4261_s19 }
 0x418   : > { %v1818_v22 = vpop.permute.xlu1 %1817  ;;  %v6192_v3 = vpop.permute.xlu0 %2078 }
 0x419   : > { %v1882_v53 = vsel %vm718_vm0, %v997_v40, %v1818_v22  ;;  %v6195_v5 = vpop.permute.xlu2 %2100  ;;  %v3963_v40 = vld [vmem:[%s4297_s17 + $0x128] sm:$0xff]  ;;  %v3965_v22 = vld [vmem:[%s4297_s17 + $0x140] sm:$0xff] }
 0x41a   : > { %7599 = vst [vmem:[#allocation19_spill] sm:$0xff] %v6195_v5  ;;  %v4078_v5 = vld [vmem:[%s4297_s17 + $0x7a] sm:$0xff] }
 0x41b   : > { %1914 = vst.msk [vmem:[%s5794_s7 + $0x1e8] sm:$0xff] %vm789_vm2, %v1882_v53  ;;  %v3967_v53 = vld [vmem:[%s4297_s17 + $0x158] sm:$0xff] }
 0x41e   : > { %2228 = vrot.lane.b32.xlu1 %v6200_v11, %s4261_s19  ;;  %2232 = vrot.lane.b32.xlu0 %v3956_v33, %s4261_s19 }
 0x41f   : > { %2236 = vrot.lane.b32.xlu2 %v3958_v14, %s4261_s19 }
 0x420   : > { %v6208_v48 = vpop.permute.xlu1 %2080  ;;  %v6210_v23 = vpop.permute.xlu0 %2084 }
 0x421   : > { %v6212_v21 = vpop.permute.xlu2 %2106 }
 0x422   : > { %7601 = vst [vmem:[#allocation63_spill] sm:$0xff] %v6212_v21 }
 0x426   : > { %2234 = vrot.lane.b32.xlu1 %v3957_v7, %s4261_s19  ;;  %2238 = vrot.lane.b32.xlu0 %v3959_v6, %s4261_s19  ;;  %v3966_v6 = vld [vmem:[%s4297_s17 + $0x150] sm:$0xff] }
 0x427   : > { %2242 = vrot.lane.b32.xlu2 %v3961_v50, %s4261_s19  ;;  %v3968_v50 = vld [vmem:[%s4297_s17 + $0x168] sm:$0xff] }
 0x428   : > { %v6220_v34 = vpop.permute.xlu1 %2086  ;;  %v6222_v60 = vpop.permute.xlu0 %2090 }
 0x429   : > { %v6224_v52 = vpop.permute.xlu2 %2112 }
 0x42a   : > { %7602 = vst [vmem:[#allocation65_spill] sm:$0xff] %v6224_v52 }
 0x42e   : > { %2240 = vrot.lane.b32.xlu1 %v3960_v25, %s4261_s19  ;;  %2244 = vrot.lane.b32.xlu0 %v3962_v47, %s4261_s19  ;;  %v3970_v25 = vld [vmem:[%s4297_s17 + $0x180] sm:$0xff] }
 0x42f   : > { %2248 = vrot.lane.b32.xlu2 %v3964_v55, %s4261_s19 }
 0x430   : > { %v6232_v20 = vpop.permute.xlu1 %2092  ;;  %v6234_v19 = vpop.permute.xlu0 %2096 }
 0x431   : > { %7603 = vst [vmem:[#allocation14_spill] sm:$0xff] %v6234_v19  ;;  %v6236_v63 = vpop.permute.xlu2 %2118 }
 0x432   : > { %7604 = vst [vmem:[#allocation25_spill] sm:$0xff] %v6236_v63  ;;  %v3973_v63 = vld [vmem:[%s4297_s17 + $0x1a0] sm:$0xff] }
 0x436   : > { %2246 = vrot.lane.b32.xlu1 %v3963_v40, %s4261_s19  ;;  %2250 = vrot.lane.b32.xlu0 %v3965_v22, %s4261_s19  ;;  %v3969_v22 = vld [vmem:[%s4297_s17 + $0x170] sm:$0xff] }
 0x437   : > { %2254 = vrot.lane.b32.xlu2 %v3967_v53, %s4261_s19  ;;  %v3971_v53 = vld [vmem:[%s4297_s17 + $0x188] sm:$0xff] }
 0x438   : > { %v6244_v33 = vpop.permute.xlu1 %2098  ;;  %v6246_v14 = vpop.permute.xlu0 %2102 }
 0x439   : > { %7605 = vst [vmem:[#allocation18_spill] sm:$0xff] %v6244_v33  ;;  %v6248_v7 = vpop.permute.xlu2 %2124  ;;  %v4079_v33 = vld [vmem:[%s4297_s17 + $0x82] sm:$0xff] }
 0x43a   : > { %7606 = vst [vmem:[#allocation15_spill] sm:$0xff] %v6246_v14  ;;  %v4077_v14 = vld [vmem:[%s4297_s17 + $0x6a] sm:$0xff] }
 0x43b   : > { %7607 = vst [vmem:[#allocation62_spill] sm:$0xff] %v6248_v7  ;;  %v3972_v7 = vld [vmem:[%s4297_s17 + $0x198] sm:$0xff] }
 0x43e   : > { %2252 = vrot.lane.b32.xlu1 %v3966_v6, %s4261_s19  ;;  %2256 = vrot.lane.b32.xlu0 %v3968_v50, %s4261_s19 }
 0x43f   : > { %2260 = vrot.lane.b32.xlu2 %v3970_v25, %s4261_s19 }
 0x440   : > { %v6256_v47 = vpop.permute.xlu1 %2104  ;;  %v6258_v55 = vpop.permute.xlu0 %2108 }
 0x441   : > { %7608 = vst [vmem:[#allocation74_spill] sm:$0xff] %v6256_v47  ;;  %v6260_v40 = vpop.permute.xlu2 %2130  ;;  %v4076_v47 = vld [vmem:[%s4297_s17 + $0x62] sm:$0xff] }
 0x442   : > { %7609 = vst [vmem:[#allocation69_spill] sm:$0xff] %v6258_v55 }
 0x443   : > { %7610 = vst [vmem:[#allocation45_spill] sm:$0xff] %v6260_v40 }
 0x446   : > { %2258 = vrot.lane.b32.xlu1 %v3969_v22, %s4261_s19  ;;  %2262 = vrot.lane.b32.xlu0 %v3971_v53, %s4261_s19 }
 0x447   : > { %2266 = vrot.lane.b32.xlu2 %v3973_v63, %s4261_s19 }
 0x448   : > { %v6268_v6 = vpop.permute.xlu1 %2110  ;;  %v6270_v50 = vpop.permute.xlu0 %2114 }
 0x449   : > { %7611 = vst [vmem:[#allocation24_spill] sm:$0xff] %v6268_v6  ;;  %v6272_v25 = vpop.permute.xlu2 %2136 }
 0x44a   : > { %7612 = vst [vmem:[#allocation64_spill] sm:$0xff] %v6270_v50 }
 0x44b   : > { %7613 = vst [vmem:[#allocation56_spill] sm:$0xff] %v6272_v25 }
 0x44e   : > { %2264 = vrot.lane.b32.xlu1 %v3972_v7, %s4261_s19  ;;  %2332 = vrot.lane.b32.xlu0 %v5950_v1, %s4262_s20 }
 0x44f   : > { %2336 = vrot.lane.b32.xlu2 %v5953_v35, %s4262_s20 }
 0x450   : > { %v6280_v22 = vpop.permute.xlu1 %2116  ;;  %v6282_v63 = vpop.permute.xlu0 %2120 }
 0x451   : > { %7614 = vst [vmem:[#allocation79_spill] sm:$0xff] %v6280_v22  ;;  %v6284_v53 = vpop.permute.xlu2 %2206  ;;  %v4072_v22 = vld [vmem:[%s4297_s17 + $0x32] sm:$0xff] }
 0x452   : > { %7615 = vst [vmem:[#allocation72_spill] sm:$0xff] %v6282_v63  ;;  %v4040_v63 = vld [vmem:[%s4297_s17 + $0x1a] sm:$0xff] }
 0x456   : > { %2334 = vrot.lane.b32.xlu1 %v5938_v57, %s4262_s20  ;;  %2338 = vrot.lane.b32.xlu0 %v5969_v61, %s4262_s20 }
 0x457   : > { %2342 = vrot.lane.b32.xlu2 %v5972_v38, %s4262_s20 }
 0x458   : > { %v6292_v7 = vpop.permute.xlu1 %2122  ;;  %v6294_v25 = vpop.permute.xlu0 %2126 }
 0x459   : > { %7616 = vst [vmem:[#allocation44_spill] sm:$0xff] %v6292_v7  ;;  %v6296_v40 = vpop.permute.xlu2 %2212  ;;  %v4073_v7 = vld [vmem:[%s4297_s17 + $0x3a] sm:$0xff] }
 0x45a   : > { %7617 = vst [vmem:[#allocation23_spill] sm:$0xff] %v6294_v25  ;;  %v4041_v25 = vld [vmem:[%s4297_s17 + $0x22] sm:$0xff] }
 0x45e   : > { %2340 = vrot.lane.b32.xlu1 %v5956_v13, %s4262_s20  ;;  %2832 = vrot.lane.b32.xlu0 %v4040_v63, %s4260_s18 }
 0x45f   : > { %3056 = vrot.lane.b32.xlu2 %v4072_v22, %s4262_s20 }
 0x460   : > { %v6304_v50 = vpop.permute.xlu1 %2128  ;;  %v6306_v52 = vpop.permute.xlu0 %2132 }
 0x461   : > { %7618 = vst [vmem:[#allocation73_spill] sm:$0xff] %v6304_v50  ;;  %v6308_v6 = vpop.permute.xlu2 %2218 }
 0x462   : > { %7619 = vst [vmem:[#allocation68_spill] sm:$0xff] %v6306_v52  ;;  %v4074_v52 = vld [vmem:[%s4297_s17 + $0x4a] sm:$0xff] }
 0x466   : > { %2928 = vrot.lane.b32.xlu1 %v5950_v1, %s4261_s19  ;;  %2834 = vrot.lane.b32.xlu0 %v4041_v25, %s4260_s18 }
 0x467   : > { %3058 = vrot.lane.b32.xlu2 %v4073_v7, %s4262_s20 }
 0x468   : > { %v6316_v55 = vpop.permute.xlu1 %2134  ;;  %v6318_v63 = vpop.permute.xlu0 %2138 }
 0x469   : > { %7620 = vst [vmem:[#allocation84_spill] sm:$0xff] %v6316_v55  ;;  %v6320_v50 = vpop.permute.xlu2 %2224  ;;  %v4075_v55 = vld [vmem:[%s4297_s17 + $0x52] sm:$0xff] }
 0x46a   : > { %7621 = vst [vmem:[#allocation77_spill] sm:$0xff] %v6318_v63 }
 0x46b   : > { %7622 = vst [vmem:[#allocation29_spill] sm:$0xff] %v6320_v50  ;;  %v4083_v50 = vld [vmem:[%s4297_s17 + $0xb2] sm:$0xff] }
 0x46e   : > { %2930 = vrot.lane.b32.xlu1 %v5938_v57, %s4261_s19  ;;  %2836 = vrot.lane.b32.xlu0 %v4072_v22, %s4260_s18 }
 0x46f   : > { %3060 = vrot.lane.b32.xlu2 %v4074_v52, %s4262_s20 }
 0x470   : > { %v6327_v9 = vpop.permute.xlu1 %2204  ;;  %v6329_v25 = vpop.permute.xlu0 %2208 }
 0x471   : > { %v6331_v21 = vpop.permute.xlu2 %2230 }
 0x472   : > { %7623 = vst [vmem:[#allocation22_spill] sm:$0xff] %v6331_v21 }
 0x476   : > { %2932 = vrot.lane.b32.xlu1 %v5953_v35, %s4261_s19  ;;  %2838 = vrot.lane.b32.xlu0 %v4073_v7, %s4260_s18 }
 0x477   : > { %3062 = vrot.lane.b32.xlu2 %v4075_v55, %s4262_s20 }
 0x478   : > { %v6338_v63 = vpop.permute.xlu1 %2210  ;;  %v6340_v22 = vpop.permute.xlu0 %2214 }
 0x479   : > { %v6342_v11 = vpop.permute.xlu2 %2236 }
 0x47a   : > { %7624 = vst [vmem:[#allocation78_spill] sm:$0xff] %v6342_v11 }
 0x47e   : > { %2934 = vrot.lane.b32.xlu1 %v5969_v61, %s4261_s19  ;;  %2840 = vrot.lane.b32.xlu0 %v4074_v52, %s4260_s18 }
 0x47f   : > { %3064 = vrot.lane.b32.xlu2 %v4076_v47, %s4262_s20 }
 0x480   : > { %v6349_v21 = vpop.permute.xlu1 %2216  ;;  %v6351_v7 = vpop.permute.xlu0 %2220 }
 0x481   : > { %v6353_v51 = vpop.permute.xlu2 %2242 }
 0x482   : > { %7625 = vst [vmem:[#allocation67_spill] sm:$0xff] %v6353_v51 }
 0x486   : > { %2936 = vrot.lane.b32.xlu1 %v5956_v13, %s4261_s19  ;;  %2842 = vrot.lane.b32.xlu0 %v4075_v55, %s4260_s18 }
 0x487   : > { %3066 = vrot.lane.b32.xlu2 %v4077_v14, %s4262_s20 }
 0x488   : > { %v6360_v11 = vpop.permute.xlu1 %2222  ;;  %v6362_v52 = vpop.permute.xlu0 %2226 }
 0x489   : > { %7626 = vst [vmem:[#allocation82_spill] sm:$0xff] %v6360_v11  ;;  %v6364_v24 = vpop.permute.xlu2 %2248  ;;  %v3879_v11 = vld [vmem:[%s4297_s17 + $0x20] sm:$0xff] }
 0x48a   : > { %7627 = vst [vmem:[#allocation47_spill] sm:$0xff] %v6362_v52 }
 0x48b   : > { %7628 = vst [vmem:[#allocation28_spill] sm:$0xff] %v6364_v24 }
 0x48e   : > { %2938 = vrot.lane.b32.xlu1 %v5972_v38, %s4261_s19  ;;  %2844 = vrot.lane.b32.xlu0 %v4076_v47, %s4260_s18 }
 0x48f   : > { %3068 = vrot.lane.b32.xlu2 %v4078_v5, %s4262_s20 }
 0x490   : > { %v6371_v51 = vpop.permute.xlu1 %2228  ;;  %v6373_v55 = vpop.permute.xlu0 %2232 }
 0x491   : > { %7629 = vst [vmem:[#allocation83_spill] sm:$0xff] %v6371_v51  ;;  %v6375_v29 = vpop.permute.xlu2 %2254  ;;  %v4080_v51 = vld [vmem:[%s4297_s17 + $0x92] sm:$0xff] }
 0x492   : > { %7630 = vst [vmem:[#allocation57_spill] sm:$0xff] %v6373_v55 }
 0x493   : > { %7631 = vst [vmem:[#allocation46_spill] sm:$0xff] %v6375_v29 }
 0x496   : > { %2940 = vrot.lane.b32.xlu1 %v5988_v49, %s4261_s19  ;;  %2846 = vrot.lane.b32.xlu0 %v4077_v14, %s4260_s18  ;;  %v4007_v14 = vld [vmem:[%s7303_s1 + $0x28] sm:$0xff] }
 0x497   : > { %3070 = vrot.lane.b32.xlu2 %v4079_v33, %s4262_s20  ;;  %2637 = vmatpush.msra.mxu2 %v4007_v14 }
 0x498   : > { %v6382_v24 = vpop.permute.xlu1 %2234  ;;  %v6384_v47 = vpop.permute.xlu0 %2238 }
 0x499   : > { %7632 = vst [vmem:[#allocation27_spill] sm:$0xff] %v6382_v24  ;;  %v6386_v52 = vpop.permute.xlu2 %2260 }
 0x49a   : > { %7633 = vst [vmem:[#allocation86_spill] sm:$0xff] %v6384_v47 }
 0x49b   : > { %7634 = vst [vmem:[#allocation71_spill] sm:$0xff] %v6386_v52  ;;  %v4006_v52 = vld [vmem:[%s7303_s1 + $0x20] sm:$0xff] }
 0x49c   : > { %2638 = vmatpush.msra.mxu2 %v4006_v52 }
 0x49e   : > { %2942 = vrot.lane.b32.xlu1 %v5975_v45, %s4261_s19  ;;  %2848 = vrot.lane.b32.xlu0 %v4078_v5, %s4260_s18  ;;  %v4081_v5 = vld [vmem:[%s4297_s17 + $0x9a] sm:$0xff] }
 0x49f   : > { %3072 = vrot.lane.b32.xlu2 %v4080_v51, %s4262_s20 }
 0x4a0   : > { %v6396_v29 = vpop.permute.xlu1 %2240  ;;  %v6398_v24 = vpop.permute.xlu0 %2244 }
 0x4a1   : > { %7635 = vst [vmem:[#allocation87_spill] sm:$0xff] %v6396_v29  ;;  %v6400_v47 = vpop.permute.xlu2 %2266 }
 0x4a2   : > { %7636 = vst [vmem:[#allocation33_spill] sm:$0xff] %v6398_v24  ;;  %v4082_v24 = vld [vmem:[%s4297_s17 + $0xaa] sm:$0xff] }
 0x4a3   : > { %7637 = vst [vmem:[#allocation26_spill] sm:$0xff] %v6400_v47 }
 0x4a6   : > { %2944 = vrot.lane.b32.xlu1 %v5991_v8, %s4261_s19  ;;  %2850 = vrot.lane.b32.xlu0 %v4079_v33, %s4260_s18 }
 0x4a7   : > { %3074 = vrot.lane.b32.xlu2 %v4081_v5, %s4262_s20 }
 0x4a8   : > { %v6410_v55 = vpop.permute.xlu1 %2246  ;;  %v6412_v29 = vpop.permute.xlu0 %2250 }
 0x4a9   : > { %7638 = vst [vmem:[#allocation88_spill] sm:$0xff] %v6410_v55  ;;  %v2337_v14 = vpop.permute.xlu2 %2336 }
 0x4aa   : > { %7639 = vst [vmem:[#allocation70_spill] sm:$0xff] %v6412_v29 }
 0x4ae   : > { %2946 = vrot.lane.b32.xlu1 %v6007_v17, %s4261_s19  ;;  %2852 = vrot.lane.b32.xlu0 %v4080_v51, %s4260_s18  ;;  %v4105_v51 = vld [vmem:[%s7303_s1 + $0x38] sm:$0xff] }
 0x4af   : > { %3076 = vrot.lane.b32.xlu2 %v4082_v24, %s4262_s20  ;;  %3361 = vmatpush.msra.mxu3 %v4105_v51 }
 0x4b0   : > { %v6419_v52 = vpop.permute.xlu1 %2252  ;;  %v6421_v33 = vpop.permute.xlu0 %2256 }
 0x4b1   : > { %7640 = vst [vmem:[#allocation89_spill] sm:$0xff] %v6419_v52  ;;  %v6423_v47 = vpop.permute.xlu2 %2342  ;;  %v4104_v52 = vld [vmem:[%s7303_s1 + $0x30] sm:$0xff] }
 0x4b2   : > { %7641 = vst [vmem:[#allocation49_spill] sm:$0xff] %v6421_v33  ;;  %3362 = vmatpush.msra.mxu3 %v4104_v52 }
 0x4b6   : > { %2948 = vrot.lane.b32.xlu1 %v5994_v26, %s4261_s19  ;;  %2854 = vrot.lane.b32.xlu0 %v4081_v5, %s4260_s18  ;;  %v3878_v5 = vld [vmem:[%s4297_s17 + $0x18] sm:$0xff] }
 0x4b7   : > { %2950 = vrot.lane.b32.xlu2 %v6010_v41, %s4261_s19 }
 0x4b8   : > { %v6433_v29 = vpop.permute.xlu1 %2258  ;;  %v6435_v55 = vpop.permute.xlu0 %2262 }
 0x4b9   : > { %7642 = vst [vmem:[#allocation32_spill] sm:$0xff] %v6433_v29  ;;  %v3057_v33 = vpop.permute.xlu2 %3056  ;;  %v2428_v29 = vsel %vm685_vm1, %v3878_v5, %v6112_v56  ;;  %v2429_v56 = vsel %vm685_vm1, %v3879_v11, %v6192_v3  ;;  %v2430_v3 = vsel %vm685_vm1, %v6118_v43, %v6208_v48  ;;  %v2431_v43 = vsel %vm685_vm1, %v6105_v28, %v6134_v62  ;;  %v4086_v28 = vld [vmem:[%s4297_s17 + $0xda] sm:$0xff] }
 0x4ba   : > { %7643 = vst [vmem:[#allocation90_spill] sm:$0xff] %v6435_v55  ;;  %v2460_v51 = vsel %vm718_vm0, %v2428_v29, %v6327_v9  ;;  %v2461_v29 = vsel %vm718_vm0, %v2429_v56, %v6284_v53  ;;  %v2462_v11 = vsel %vm718_vm0, %v2430_v3, %v6329_v25  ;;  %v2463_v48 = vsel %vm718_vm0, %v2431_v43, %v6338_v63 }
 0x4bb   : > { %v2494_v56 = vsel %vm751_vm3, %v2462_v11, %v2337_v14  ;;  %v2432_v63 = vsel %vm685_vm1, %v6121_v4, %v6210_v23  ;;  %v2433_v23 = vsel %vm685_vm1, %v6139_v59, %v6220_v34  ;;  %v4087_v59 = vld [vmem:[%s4297_s17 + $0xe2] sm:$0xff]  ;;  %v4088_v34 = vld [vmem:[%s4297_s17 + $0xf2] sm:$0xff] }
 0x4be   : > { %2344 = vrot.lane.b32.xlu1 %v5988_v49, %s4262_s20  ;;  %3078 = vrot.lane.b32.xlu0 %v4083_v50, %s4262_s20 }
 0x4bf   : > { %2346 = vrot.lane.b32.xlu2 %v5975_v45, %s4262_s20 }
 0x4c0   : > { %v6451_v55 = vpop.permute.xlu1 %2264  ;;  %v2333_v46 = vpop.permute.xlu0 %2332 }
 0x4c1   : > { %7644 = vst [vmem:[#allocation58_spill] sm:$0xff] %v6451_v55  ;;  %v3059_v52 = vpop.permute.xlu2 %3058  ;;  %v2492_v19 = vsel %vm751_vm3, %v2460_v51, %v2333_v46 }
 0x4c2   : > { %4008 = vmatmul.msk.f32.vlgmr.msra.gmra.mxu2 %vm789_vm2, %v2492_v19  ;;  %v4084_v19 = vld [vmem:[%s4297_s17 + $0xc2] sm:$0xff] }
 0x4c6   : > { %2856 = vrot.lane.b32.xlu1 %v4082_v24, %s4260_s18  ;;  %2952 = vrot.lane.b32.xlu0 %v6026_v18, %s4261_s19  ;;  %v4085_v24 = vld [vmem:[%s4297_s17 + $0xca] sm:$0xff] }
 0x4c7   : > { %2858 = vrot.lane.b32.xlu2 %v4083_v50, %s4260_s18 }
 0x4c8   : > { %v2335_v9 = vpop.permute.xlu1 %2334  ;;  %v2339_v5 = vpop.permute.xlu0 %2338 }
 0x4c9   : > { %v3061_v55 = vpop.permute.xlu2 %3060  ;;  %v2493_v46 = vsel %vm751_vm3, %v2461_v29, %v2335_v9 }
 0x4ca   : > { %4009 = vmatmul.msk.f32.gmra.mxu2 %vm789_vm2, %v2493_v46  ;;  %v2495_v46 = vsel %vm751_vm3, %v2463_v48, %v2339_v5 }
 0x4ce   : > { %3080 = vrot.lane.b32.xlu1 %v4084_v19, %s4262_s20  ;;  %2348 = vrot.lane.b32.xlu0 %v5991_v8, %s4262_s20 }
 0x4cf   : > { %3082 = vrot.lane.b32.xlu2 %v4085_v24, %s4262_s20 }
 0x4d0   : > { %v2341_v50 = vpop.permute.xlu1 %2340  ;;  %v2833_v53 = vpop.permute.xlu0 %2832 }
 0x4d1   : > { %v3063_v51 = vpop.permute.xlu2 %3062  ;;  %v3152_v29 = vsel %vm685_vm1, %v5923_v37, %v2833_v53 }
 0x4d2   : > { %4010 = vmatmul.msk.f32.gmra.mxu2 %vm789_vm2, %v2494_v56 }
 0x4d6   : > { %2954 = vrot.lane.b32.xlu1 %v6013_v15, %s4261_s19  ;;  %2860 = vrot.lane.b32.xlu0 %v4084_v19, %s4260_s18 }
 0x4d7   : > { %2956 = vrot.lane.b32.xlu2 %v6029_v10, %s4261_s19 }
 0x4d8   : > { %v2929_v25 = vpop.permute.xlu1 %2928  ;;  %v2835_v14 = vpop.permute.xlu0 %2834 }
 0x4d9   : > { %v3184_v9 = vsel %vm718_vm0, %v3152_v29, %v2929_v25  ;;  %v3065_v37 = vpop.permute.xlu2 %3064  ;;  %v3153_v62 = vsel %vm685_vm1, %v5934_v27, %v2835_v14 }
 0x4da   : > { %4011 = vmatmul.msk.f32.gmra.mxu2 %vm789_vm2, %v2495_v46  ;;  %v3216_v19 = vsel %vm751_vm3, %v3184_v9, %v3057_v33  ;;  %v2464_v33 = vsel %vm718_vm0, %v2432_v63, %v6296_v40  ;;  %v2465_v40 = vsel %vm718_vm0, %v2433_v23, %v6340_v22  ;;  %v4091_v23 = vld [vmem:[%s4297_s17 + $0x112] sm:$0xff] }
 0x4db   : > { %4106 = vmatmul.msk.f32.vlgmr.msra.gmra.mxu3 %vm789_vm2, %v3216_v19  ;;  %v2496_v53 = vsel %vm751_vm3, %v2464_v33, %v2341_v50 }
 0x4de   : > { %2350 = vrot.lane.b32.xlu1 %v6007_v17, %s4262_s20  ;;  %3084 = vrot.lane.b32.xlu0 %v4086_v28, %s4262_s20 }
 0x4df   : > { %2352 = vrot.lane.b32.xlu2 %v5994_v26, %s4262_s20 }
 0x4e0   : > { %v2931_v5 = vpop.permute.xlu1 %2930  ;;  %v2837_v3 = vpop.permute.xlu0 %2836 }
 0x4e1   : > { %v3185_v11 = vsel %vm718_vm0, %v3153_v62, %v2931_v5  ;;  %v3067_v27 = vpop.permute.xlu2 %3066  ;;  %v3154_v4 = vsel %vm685_vm1, %v5950_v1, %v2837_v3  ;;  %v2497_v1 = vsel %vm751_vm3, %v2465_v40, %v6423_v47  ;;  %v4089_v62 = vld [vmem:[%s4297_s17 + $0xfa] sm:$0xff] }
 0x4e2   : > { %4012 = vmatmul.msk.f32.gmra.mxu2 %vm789_vm2, %v2496_v53  ;;  %v3217_v56 = vsel %vm751_vm3, %v3185_v11, %v3059_v52 }
 0x4e3   : > { %4107 = vmatmul.msk.f32.gmra.mxu3 %vm789_vm2, %v3217_v56 }
 0x4e6   : > { %2862 = vrot.lane.b32.xlu1 %v4085_v24, %s4260_s18  ;;  %2958 = vrot.lane.b32.xlu0 %v6045_v2, %s4261_s19 }
 0x4e7   : > { %2864 = vrot.lane.b32.xlu2 %v4086_v28, %s4260_s18 }
 0x4e8   : > { %v2933_v52 = vpop.permute.xlu1 %2932  ;;  %v2839_v50 = vpop.permute.xlu0 %2838 }
 0x4e9   : > { %v3186_v29 = vsel %vm718_vm0, %v3154_v4, %v2933_v52  ;;  %v3069_v43 = vpop.permute.xlu2 %3068  ;;  %v3155_v48 = vsel %vm685_vm1, %v5938_v57, %v2839_v50 }
 0x4ea   : > { %4013 = vmatmul.msk.f32.gmra.mxu2 %vm789_vm2, %v2497_v1  ;;  %v3218_v24 = vsel %vm751_vm3, %v3186_v29, %v3061_v55 }
 0x4eb   : > { %4108 = vmatmul.msk.f32.gmra.mxu3 %vm789_vm2, %v3218_v24 }
 0x4ee   : > { %3086 = vrot.lane.b32.xlu1 %v4087_v59, %s4262_s20  ;;  %2354 = vrot.lane.b32.xlu0 %v6010_v41, %s4262_s20 }
 0x4ef   : > { %3088 = vrot.lane.b32.xlu2 %v4088_v34, %s4262_s20 }
 0x4f0   : > { %v2935_v22 = vpop.permute.xlu1 %2934  ;;  %v2841_v47 = vpop.permute.xlu0 %2840 }
 0x4f1   : > { %v3187_v25 = vsel %vm718_vm0, %v3155_v48, %v2935_v22  ;;  %v3071_v55 = vpop.permute.xlu2 %3070  ;;  %v3156_v57 = vsel %vm685_vm1, %v5953_v35, %v2841_v47  ;;  %v4092_v48 = vld [vmem:[%s4297_s17 + $0x122] sm:$0xff] }
 0x4f2   : > { %v3219_v14 = vsel %vm751_vm3, %v3187_v25, %v3063_v51 }
 0x4f3   : > { %4109 = vmatmul.msk.f32.gmra.mxu3 %vm789_vm2, %v3219_v14 }
 0x4f6   : > { %2960 = vrot.lane.b32.xlu1 %v6032_v54, %s4261_s19  ;;  %2866 = vrot.lane.b32.xlu0 %v4087_v59, %s4260_s18 }
 0x4f7   : > { %2962 = vrot.lane.b32.xlu2 %v6048_v58, %s4261_s19 }
 0x4f8   : > { %v2937_v9 = vpop.permute.xlu1 %2936  ;;  %v2843_v46 = vpop.permute.xlu0 %2842 }
 0x4f9   : > { %v3188_v19 = vsel %vm718_vm0, %v3156_v57, %v2937_v9  ;;  %v3073_v28 = vpop.permute.xlu2 %3072  ;;  %v3157_v35 = vsel %vm685_vm1, %v5969_v61, %v2843_v46 }
 0x4fa   : > { %v3220_v51 = vsel %vm751_vm3, %v3188_v19, %v3065_v37 }
 0x4fb   : > { %4110 = vmatmul.msk.f32.gmra.mxu3 %vm789_vm2, %v3220_v51 }
 0x4fe   : > { %2356 = vrot.lane.b32.xlu1 %v6026_v18, %s4262_s20  ;;  %3090 = vrot.lane.b32.xlu0 %v4089_v62, %s4262_s20 }
 0x4ff   : > { %2358 = vrot.lane.b32.xlu2 %v6013_v15, %s4262_s20 }
 0x500   : > { %v2939_v63 = vpop.permute.xlu1 %2938  ;;  %v2845_v33 = vpop.permute.xlu0 %2844 }
 0x501   : > { %v3189_v37 = vsel %vm718_vm0, %v3157_v35, %v2939_v63  ;;  %v3075_v5 = vpop.permute.xlu2 %3074  ;;  %v3158_v61 = vsel %vm685_vm1, %v5956_v13, %v2845_v33 }
 0x502   : > { %v3221_v3 = vsel %vm751_vm3, %v3189_v37, %v3067_v27  ;;  %v4090_v27 = vld [vmem:[%s4297_s17 + $0x10a] sm:$0xff] }
 0x503   : > { %4111 = vmatmul.msk.f32.gmra.mxu3 %vm789_vm2, %v3221_v3 }
 0x506   : > { %2868 = vrot.lane.b32.xlu1 %v4088_v34, %s4260_s18  ;;  %2964 = vrot.lane.b32.xlu0 %v6064_v39, %s4261_s19 }
 0x507   : > { %2870 = vrot.lane.b32.xlu2 %v4089_v62, %s4260_s18  ;;  %v2434_v62 = vsel %vm685_vm1, %v6124_v42, %v6153_v44  ;;  %v6635_v42 = vld [vmem:[%s4297_s17 + $0x141] sm:$0xff]  ;;  %v2435_v44 = vsel %vm685_vm1, %v6142_v12, %v6222_v60  ;;  %v2436_v12 = vsel %vm685_vm1, %v6156_v36, %v6232_v20 }
 0x508   : > { %v2941_v15 = vpop.permute.xlu1 %2940  ;;  %v2847_v11 = vpop.permute.xlu0 %2846  ;;  %v2468_v60 = vsel %vm718_vm0, %v2436_v12, %v6351_v7 }
 0x509   : > { %v3190_v53 = vsel %vm718_vm0, %v3158_v61, %v2941_v15  ;;  %v3077_v56 = vpop.permute.xlu2 %3076  ;;  %v3159_v13 = vsel %vm685_vm1, %v5972_v38, %v2847_v11 }
 0x50a   : > { %v3222_v4 = vsel %vm751_vm3, %v3190_v53, %v3069_v43  ;;  %v4095_v53 = vld [vmem:[%s4297_s17 + $0x142] sm:$0xff] }
 0x50b   : > { %4112 = vmatmul.msk.f32.gmra.mxu3 %vm789_vm2, %v3222_v4 }
 0x50e   : > { %3092 = vrot.lane.b32.xlu1 %v4090_v27, %s4262_s20  ;;  %2360 = vrot.lane.b32.xlu0 %v6029_v10, %s4262_s20 }
 0x50f   : > { %3094 = vrot.lane.b32.xlu2 %v4091_v23, %s4262_s20 }
 0x510   : > { %v2943_v40 = vpop.permute.xlu1 %2942  ;;  %v2849_v52 = vpop.permute.xlu0 %2848 }
 0x511   : > { %v3191_v50 = vsel %vm718_vm0, %v3159_v13, %v2943_v40  ;;  %v2951_v29 = vpop.permute.xlu2 %2950  ;;  %v3160_v38 = vsel %vm685_vm1, %v5988_v49, %v2849_v52 }
 0x512   : > { %v3223_v43 = vsel %vm751_vm3, %v3191_v50, %v3071_v55 }
 0x513   : > { %4113 = vmatmul.msk.f32.gmra.mxu3 %vm789_vm2, %v3223_v43  ;;  %v4097_v43 = vld [vmem:[%s4297_s17 + $0x15a] sm:$0xff] }
 0x516   : > { %2966 = vrot.lane.b32.xlu1 %v6051_v32, %s4261_s19  ;;  %2872 = vrot.lane.b32.xlu0 %v4090_v27, %s4260_s18 }
 0x517   : > { %2968 = vrot.lane.b32.xlu2 %v6067_v30, %s4261_s19 }
 0x518   : > { %v2945_v10 = vpop.permute.xlu1 %2944  ;;  %v2851_v1 = vpop.permute.xlu0 %2850 }
 0x519   : > { %v3192_v24 = vsel %vm718_vm0, %v3160_v38, %v2945_v10  ;;  %v2347_v59 = vpop.permute.xlu2 %2346  ;;  %v3161_v49 = vsel %vm685_vm1, %v5975_v45, %v2851_v1  ;;  %v2437_v38 = vsel %vm685_vm1, %v6145_v0, %v6171_v16  ;;  %v6703_v0 = vld [vmem:[%s4297_s17 + $0x169] sm:$0xff]  ;;  %v7646_v16 = vld [vmem:[#allocation14_spill] sm:$0xff] }
 0x51a   : > { %v3224_v34 = vsel %vm751_vm3, %v3192_v24, %v3073_v28  ;;  %v4094_v28 = vld [vmem:[%s4297_s17 + $0x13a] sm:$0xff] }
 0x51b   : > { %4114 = vmatmul.msk.f32.gmra.mxu3 %vm789_vm2, %v3224_v34 }
 0x51e   : > { %2362 = vrot.lane.b32.xlu1 %v6045_v2, %s4262_s20  ;;  %3096 = vrot.lane.b32.xlu0 %v4092_v48, %s4262_s20 }
 0x51f   : > { %2364 = vrot.lane.b32.xlu2 %v6032_v54, %s4262_s20 }
 0x520   : > { %v2947_v22 = vpop.permute.xlu1 %2946  ;;  %v2853_v47 = vpop.permute.xlu0 %2852 }
 0x521   : > { %v3193_v25 = vsel %vm718_vm0, %v3161_v49, %v2947_v22  ;;  %v2859_v55 = vpop.permute.xlu2 %2858  ;;  %v3162_v45 = vsel %vm685_vm1, %v5991_v8, %v2853_v47  ;;  %v4093_v8 = vld [vmem:[%s4297_s17 + $0x12a] sm:$0xff]  ;;  %v7647_v49 = vld [vmem:[#allocation10_spill] sm:$0xff]  ;;  %v7648_v47 = vld [vmem:[#allocation29_spill] sm:$0xff] }
 0x522   : > { %v3225_v14 = vsel %vm751_vm3, %v3193_v25, %v3075_v5  ;;  %v3165_v36 = vsel %vm685_vm1, %v6010_v41, %v2859_v55  ;;  %v2438_v22 = vsel %vm685_vm1, %v7647_v49, %v7646_v16  ;;  %v4101_v16 = vld [vmem:[%s4297_s17 + $0x18a] sm:$0xff] }
 0x523   : > { %4115 = vmatmul.msk.f32.gmra.mxu3 %vm789_vm2, %v3225_v14  ;;  %v2470_v25 = vsel %vm718_vm0, %v2438_v22, %v7648_v47  ;;  %v4221_v49 = vld [vmem:[%s4297_s17 + $0xf1] sm:$0xff] }
 0x526   : > { %2874 = vrot.lane.b32.xlu1 %v4091_v23, %s4260_s18  ;;  %2970 = vrot.lane.b32.xlu0 %v6080_v31, %s4261_s19 }
 0x527   : > { %2876 = vrot.lane.b32.xlu2 %v4092_v48, %s4260_s18 }
 0x528   : > { %v2949_v54 = vpop.permute.xlu1 %2948  ;;  %v2855_v2 = vpop.permute.xlu0 %2854 }
 0x529   : > { %v3194_v57 = vsel %vm718_vm0, %v3162_v45, %v2949_v54  ;;  %v3083_v9 = vpop.permute.xlu2 %3082  ;;  %v3163_v19 = vsel %vm685_vm1, %v6007_v17, %v2855_v2  ;;  %v2466_v17 = vsel %vm718_vm0, %v2434_v62, %v6349_v21  ;;  %v2467_v21 = vsel %vm718_vm0, %v2435_v44, %v6308_v6  ;;  %v4098_v2 = vld [vmem:[%s4297_s17 + $0x16a] sm:$0xff]  ;;  %v4219_v44 = vld [vmem:[%s4297_s17 + $0xd9] sm:$0xff] }
 0x52a   : > { %v3226_v46 = vsel %vm751_vm3, %v3194_v57, %v3077_v56  ;;  %v3195_v51 = vsel %vm718_vm0, %v3163_v19, %v2951_v29  ;;  %v2499_v11 = vsel %vm751_vm3, %v2467_v21, %v2347_v59  ;;  %v4096_v29 = vld [vmem:[%s4297_s17 + $0x152] sm:$0xff]  ;;  %v4218_v57 = vld [vmem:[%s4297_s17 + $0xc9] sm:$0xff]  ;;  %v7649_v19 = vld [vmem:[#allocation18_spill] sm:$0xff] }
 0x52b   : > { %4116 = vmatmul.msk.f32.gmra.mxu3 %vm789_vm2, %v3226_v46 }
 0x52e   : > { %3098 = vrot.lane.b32.xlu1 %v4093_v8, %s4262_s20  ;;  %2366 = vrot.lane.b32.xlu0 %v6048_v58, %s4262_s20  ;;  %v6632_v58 = vld [vmem:[%s4297_s17 + $0x139] sm:$0xff] }
 0x52f   : > { %3100 = vrot.lane.b32.xlu2 %v4094_v28, %s4262_s20 }
 0x530   : > { %v2345_v35 = vpop.permute.xlu1 %2344  ;;  %v3079_v63 = vpop.permute.xlu0 %3078 }
 0x531   : > { %v2957_v33 = vpop.permute.xlu2 %2956  ;;  %v2498_v37 = vsel %vm751_vm3, %v2466_v17, %v2345_v35  ;;  %v3227_v5 = vsel %vm751_vm3, %v3195_v51, %v3079_v63  ;;  %v7651_v51 = vld [vmem:[#allocation47_spill] sm:$0xff] }
 0x532   : > { %4014 = vmatmul.msk.f32.gmra.mxu2 %vm789_vm2, %v2498_v37 }
 0x533   : > { %4117 = vmatmul.msk.f32.gmra.mxu3 %vm789_vm2, %v3227_v5  ;;  %v6742_v5 = vld [vmem:[%s4297_s17 + $0x171] sm:$0xff] }
 0x536   : > { %2972 = vrot.lane.b32.xlu1 %v6632_v58, %s4261_s19  ;;  %2878 = vrot.lane.b32.xlu0 %v4093_v8, %s4260_s18  ;;  %v7650_v8 = vld [vmem:[#allocation11_spill] sm:$0xff] }
 0x537   : > { %2974 = vrot.lane.b32.xlu2 %v6635_v42, %s4261_s19 }
 0x538   : > { %v2857_v3 = vpop.permute.xlu1 %2856  ;;  %v2953_v61 = vpop.permute.xlu0 %2952 }
 0x539   : > { %v2353_v15 = vpop.permute.xlu2 %2352  ;;  %v3164_v56 = vsel %vm685_vm1, %v5994_v26, %v2857_v3 }
 0x53a   : > { %4015 = vmatmul.msk.f32.gmra.mxu2 %vm789_vm2, %v2499_v11  ;;  %v3196_v6 = vsel %vm718_vm0, %v3164_v56, %v2953_v61  ;;  %v2502_v54 = vsel %vm751_vm3, %v2470_v25, %v2353_v15  ;;  %v4220_v56 = vld [vmem:[%s4297_s17 + $0xe1] sm:$0xff] }
 0x53b   : > { %v7658_v25 = vld [vmem:[#allocation74_spill] sm:$0xff] }
 0x53e   : > { %2368 = vrot.lane.b32.xlu1 %v6064_v39, %s4262_s20  ;;  %3102 = vrot.lane.b32.xlu0 %v4095_v53, %s4262_s20 }
 0x53f   : > { %2370 = vrot.lane.b32.xlu2 %v6051_v32, %s4262_s20  ;;  %v6670_v32 = vld [vmem:[%s4297_s17 + $0x151] sm:$0xff] }
 0x540   : > { %v3081_v4 = vpop.permute.xlu1 %3080  ;;  %v2349_v27 = vpop.permute.xlu0 %2348 }
 0x541   : > { %v6663_v26 = vpop.permute.xlu2 %2864  ;;  %v2500_v39 = vsel %vm751_vm3, %v2468_v60, %v2349_v27  ;;  %v3228_v23 = vsel %vm751_vm3, %v3196_v6, %v3081_v4  ;;  %v4099_v60 = vld [vmem:[%s4297_s17 + $0x172] sm:$0xff]  ;;  %v4100_v6 = vld [vmem:[%s4297_s17 + $0x182] sm:$0xff] }
 0x542   : > { %4016 = vmatmul.msk.f32.gmra.mxu2 %vm789_vm2, %v2500_v39  ;;  %4118 = vmatmul.msk.f32.gmra.mxu3 %vm789_vm2, %v3228_v23  ;;  %v3168_v21 = vsel %vm685_vm1, %v4219_v44, %v6663_v26  ;;  %v7652_v26 = vld [vmem:[#allocation19_spill] sm:$0xff] }
 0x543   : > { %v7653_v39 = vld [vmem:[#allocation55_spill] sm:$0xff] }
 0x544   : > { %v2440_v23 = vsel %vm685_vm1, %v7653_v39, %v7652_v26  ;;  %v4223_v44 = vld [vmem:[%s4297_s17 + $0x109] sm:$0xff] }
 0x546   : > { %2880 = vrot.lane.b32.xlu1 %v4094_v28, %s4260_s18  ;;  %2976 = vrot.lane.b32.xlu0 %v6670_v32, %s4261_s19  ;;  %v2439_v28 = vsel %vm685_vm1, %v7650_v8, %v7649_v19 }
 0x547   : > { %2882 = vrot.lane.b32.xlu2 %v4095_v53, %s4260_s18  ;;  %v2471_v62 = vsel %vm718_vm0, %v2439_v28, %v7651_v51  ;;  %v4222_v51 = vld [vmem:[%s4297_s17 + $0xf9] sm:$0xff] }
 0x548   : > { %v2955_v20 = vpop.permute.xlu1 %2954  ;;  %v2861_v7 = vpop.permute.xlu0 %2860 }
 0x549   : > { %v3197_v13 = vsel %vm718_vm0, %v3165_v36, %v2955_v20  ;;  %v3089_v40 = vpop.permute.xlu2 %3088  ;;  %v3166_v50 = vsel %vm685_vm1, %v6026_v18, %v2861_v7  ;;  %v7645_v18 = vld [vmem:[#allocation82_spill] sm:$0xff]  ;;  %v7654_v36 = vld [vmem:[#allocation83_spill] sm:$0xff] }
 0x54a   : > { %v3229_v52 = vsel %vm751_vm3, %v3197_v13, %v3083_v9  ;;  %v3198_v41 = vsel %vm718_vm0, %v3166_v50, %v2957_v33  ;;  %v2469_v10 = vsel %vm718_vm0, %v2437_v38, %v7645_v18  ;;  %v2472_v20 = vsel %vm718_vm0, %v2440_v23, %v7654_v36  ;;  %v6779_v50 = vld [vmem:[%s4297_s17 + $0x181] sm:$0xff]  ;;  %v7656_v38 = vld [vmem:[#allocation12_spill] sm:$0xff] }
 0x54b   : > { %4119 = vmatmul.msk.f32.gmra.mxu3 %vm789_vm2, %v3229_v52  ;;  %v4005_v23 = vld [vmem:[%s4297_s17 + $0x1a1] sm:$0xff] }
 0x54e   : > { %3104 = vrot.lane.b32.xlu1 %v4096_v29, %s4262_s20  ;;  %2372 = vrot.lane.b32.xlu0 %v6067_v30, %s4262_s20  ;;  %v6700_v30 = vld [vmem:[%s4297_s17 + $0x159] sm:$0xff] }
 0x54f   : > { %3106 = vrot.lane.b32.xlu2 %v4097_v43, %s4262_s20 }
 0x550   : > { %v2351_v1 = vpop.permute.xlu1 %2350  ;;  %v3085_v24 = vpop.permute.xlu0 %3084 }
 0x551   : > { %v2963_v59 = vpop.permute.xlu2 %2962  ;;  %v2501_v34 = vsel %vm751_vm3, %v2469_v10, %v2351_v1  ;;  %v3230_v48 = vsel %vm751_vm3, %v3198_v41, %v3085_v24  ;;  %v7655_v41 = vld [vmem:[#allocation15_spill] sm:$0xff]  ;;  %v7657_v10 = vld [vmem:[#allocation22_spill] sm:$0xff] }
 0x552   : > { %4017 = vmatmul.msk.f32.gmra.mxu2 %vm789_vm2, %v2501_v34  ;;  %v2441_v18 = vsel %vm685_vm1, %v7656_v38, %v7655_v41 }
 0x553   : > { %4120 = vmatmul.msk.f32.gmra.mxu3 %vm789_vm2, %v3230_v48  ;;  %v2473_v1 = vsel %vm718_vm0, %v2441_v18, %v7657_v10  ;;  %v6879_v18 = vld [vmem:[%s7304_s2] ss:$0 sm:$0xff]  ;;  %v4226_v10 = vld [vmem:[%s4297_s17 + $0x111] sm:$0xff] }
 0x556   : > { %2978 = vrot.lane.b32.xlu1 %v6700_v30, %s4261_s19  ;;  %2884 = vrot.lane.b32.xlu0 %v4096_v29, %s4260_s18  ;;  %v6782_v29 = vld [vmem:[%s4297_s17 + $0x189] sm:$0xff] }
 0x557   : > { %2980 = vrot.lane.b32.xlu2 %v6703_v0, %s4261_s19 }
 0x558   : > { %v2863_v55 = vpop.permute.xlu1 %2862  ;;  %v2959_v14 = vpop.permute.xlu0 %2958 }
 0x559   : > { %v6715_v45 = vpop.permute.xlu2 %2358  ;;  %v3167_v9 = vsel %vm685_vm1, %v4218_v57, %v2863_v55  ;;  %v7659_v55 = vld [vmem:[#allocation13_spill] sm:$0xff] }
 0x55a   : > { %4018 = vmatmul.msk.f32.gmra.mxu2 %vm789_vm2, %v2502_v54  ;;  %v3199_v17 = vsel %vm718_vm0, %v3167_v9, %v2959_v14  ;;  %v2505_v48 = vsel %vm751_vm3, %v2473_v1, %v6715_v45  ;;  %v2442_v14 = vsel %vm685_vm1, %v7659_v55, %v7658_v25  ;;  %v7660_v45 = vld [vmem:[#allocation57_spill] sm:$0xff] }
 0x55b   : > { %v2474_v54 = vsel %vm718_vm0, %v2442_v14, %v7660_v45 }
 0x55e   : > { %2374 = vrot.lane.b32.xlu1 %v6080_v31, %s4262_s20  ;;  %3108 = vrot.lane.b32.xlu0 %v4098_v2, %s4262_s20  ;;  %v6725_v46 = vpop.f32.mrf.mxu3 }
 0x55f   : > { %2376 = vrot.lane.b32.xlu2 %v6632_v58, %s4262_s20 }
 0x560   : > { %v3087_v35 = vpop.permute.xlu1 %3086  ;;  %v2355_v63 = vpop.permute.xlu0 %2354 }
 0x561   : > { %v6735_v31 = vpop.permute.xlu2 %2870  ;;  %v2503_v33 = vsel %vm751_vm3, %v2471_v62, %v2355_v63  ;;  %v3231_v37 = vsel %vm751_vm3, %v3199_v17, %v3087_v35 }
 0x562   : > { %4019 = vmatmul.msk.f32.gmra.mxu2 %vm789_vm2, %v2503_v33  ;;  %4121 = vmatmul.msk.f32.gmra.mxu3 %vm789_vm2, %v3231_v37  ;;  %v3171_v62 = vsel %vm685_vm1, %v4222_v51, %v6735_v31  ;;  %v6916_v51 = vpop.f32.mrf.mxu2 }
 0x566   : > { %2886 = vrot.lane.b32.xlu1 %v4097_v43, %s4260_s18  ;;  %2982 = vrot.lane.b32.xlu0 %v6742_v5, %s4261_s19  ;;  %v6747_v58 = vpop.f32.mrf.mxu3 }
 0x567   : > { %2888 = vrot.lane.b32.xlu2 %v4098_v2, %s4260_s18  ;;  %v3368_v45 = vadd.f32 %v6879_v18, %v6747_v58 }
 0x568   : > { %v2961_v3 = vpop.permute.xlu1 %2960  ;;  %v2867_v61 = vpop.permute.xlu0 %2866 }
 0x569   : > { %v3200_v15 = vsel %vm718_vm0, %v3168_v21, %v2961_v3  ;;  %v6754_v11 = vpop.permute.xlu2 %3094  ;;  %v3169_v12 = vsel %vm685_vm1, %v4220_v56, %v2867_v61  ;;  %v4102_v3 = vld [vmem:[%s4297_s17 + $0x19a] sm:$0xff]  ;;  %v4103_v61 = vld [vmem:[%s4297_s17 + $0x1a2] sm:$0xff] }
 0x56a   : > { %v3232_v53 = vsel %vm751_vm3, %v3200_v15, %v3089_v40  ;;  %v3201_v27 = vsel %vm718_vm0, %v3169_v12, %v2963_v59  ;;  %v7663_v12 = vld [vmem:[#allocation27_spill] sm:$0xff] }
 0x56b   : > { %4122 = vmatmul.msk.f32.gmra.mxu3 %vm789_vm2, %v3232_v53  ;;  %v7661_v53 = vld [vmem:[#allocation63_spill] sm:$0xff] }
 0x56e   : > { %3110 = vrot.lane.b32.xlu1 %v4099_v60, %s4262_s20  ;;  %2378 = vrot.lane.b32.xlu0 %v6635_v42, %s4262_s20  ;;  %v6765_v4 = vpop.f32.mrf.mxu3 }
 0x56f   : > { %3112 = vrot.lane.b32.xlu2 %v4100_v6, %s4262_s20 }
 0x570   : > { %v2357_v7 = vpop.permute.xlu1 %2356  ;;  %v3091_v13 = vpop.permute.xlu0 %3090 }
 0x571   : > { %v2969_v40 = vpop.permute.xlu2 %2968  ;;  %v2504_v52 = vsel %vm751_vm3, %v2472_v20, %v2357_v7  ;;  %v3233_v42 = vsel %vm751_vm3, %v3201_v27, %v3091_v13  ;;  %v4224_v20 = vld [vmem:[%s4297_s17 + $0xd8] sm:$0xff] }
 0x572   : > { %4020 = vmatmul.msk.f32.gmra.mxu2 %vm789_vm2, %v2504_v52  ;;  %v7664_v7 = vld [vmem:[#allocation69_spill] sm:$0xff] }
 0x573   : > { %4123 = vmatmul.msk.f32.gmra.mxu3 %vm789_vm2, %v3233_v42  ;;  %v2444_v13 = vsel %vm685_vm1, %v4224_v20, %v7664_v7 }
 0x576   : > { %2984 = vrot.lane.b32.xlu1 %v6779_v50, %s4261_s19  ;;  %2890 = vrot.lane.b32.xlu0 %v4099_v60, %s4260_s18  ;;  %v6787_v43 = vpop.f32.mrf.mxu3 }
 0x577   : > { %2986 = vrot.lane.b32.xlu2 %v6782_v29, %s4261_s19 }
 0x578   : > { %v2869_v24 = vpop.permute.xlu1 %2868  ;;  %v2965_v59 = vpop.permute.xlu0 %2964 }
 0x579   : > { %v6796_v34 = vpop.permute.xlu2 %2364  ;;  %v3170_v22 = vsel %vm685_vm1, %v4221_v49, %v2869_v24  ;;  %v4227_v24 = vld [vmem:[%s4297_s17 + $0xe0] sm:$0xff] }
 0x57a   : > { %4021 = vmatmul.msk.f32.gmra.mxu2 %vm789_vm2, %v2505_v48  ;;  %v3202_v2 = vsel %vm718_vm0, %v3170_v22, %v2965_v59  ;;  %v7666_v59 = vld [vmem:[#allocation24_spill] sm:$0xff] }
 0x57e   : > { %2380 = vrot.lane.b32.xlu1 %v6670_v32, %s4262_s20  ;;  %3114 = vrot.lane.b32.xlu0 %v4101_v16, %s4262_s20  ;;  %v6807_v47 = vpop.f32.mrf.mxu3 }
 0x57f   : > { %2382 = vrot.lane.b32.xlu2 %v6700_v30, %s4262_s20  ;;  %v4004_v30 = vld [vmem:[%s4297_s17 + $0x199] sm:$0xff] }
 0x580   : > { %v3093_v57 = vpop.permute.xlu1 %3092  ;;  %v2361_v9 = vpop.permute.xlu0 %2360 }
 0x581   : > { %v6817_v32 = vpop.permute.xlu2 %2876  ;;  %v2506_v19 = vsel %vm751_vm3, %v2474_v54, %v2361_v9  ;;  %v3234_v8 = vsel %vm751_vm3, %v3202_v2, %v3093_v57  ;;  %v3374_v54 = vadd.f32 %v6879_v18, %v6787_v43  ;;  %v4228_v2 = vld [vmem:[%s4297_s17 + $0x121] sm:$0xff] }
 0x582   : > { %4022 = vmatmul.msk.f32.gmra.mxu2 %vm789_vm2, %v2506_v19  ;;  %4124 = vmatmul.msk.f32.gmra.mxu3 %vm789_vm2, %v3234_v8  ;;  %v3174_v57 = vsel %vm685_vm1, %v4228_v2, %v6817_v32  ;;  %v3371_v32 = vadd.f32 %v6879_v18, %v6765_v4 }
 0x586   : > { %2892 = vrot.lane.b32.xlu1 %v4100_v6, %s4260_s18  ;;  %2988 = vrot.lane.b32.xlu0 %v4004_v30, %s4261_s19  ;;  %v6826_v28 = vpop.f32.mrf.mxu3 }
 0x587   : > { %2894 = vrot.lane.b32.xlu2 %v4101_v16, %s4260_s18  ;;  %v7667_v16 = vld [vmem:[#allocation86_spill] sm:$0xff] }
 0x588   : > { %v2967_v17 = vpop.permute.xlu1 %2966  ;;  %v2873_v35 = vpop.permute.xlu0 %2872 }
 0x589   : > { %v3203_v63 = vsel %vm718_vm0, %v3171_v62, %v2967_v17  ;;  %v6833_v33 = vpop.permute.xlu2 %3100  ;;  %v3172_v21 = vsel %vm685_vm1, %v4223_v44, %v2873_v35  ;;  %v4229_v62 = vld [vmem:[%s4297_s17 + $0x129] sm:$0xff]  ;;  %v3377_v35 = vadd.f32 %v6879_v18, %v6807_v47  ;;  %v7668_v44 = vld [vmem:[#allocation65_spill] sm:$0xff] }
 0x58a   : > { %v3235_v37 = vsel %vm751_vm3, %v3203_v63, %v6754_v11  ;;  %v3204_v15 = vsel %vm718_vm0, %v3172_v21, %v2969_v40  ;;  %v7662_v11 = vld [vmem:[#allocation39_spill] sm:$0xff]  ;;  %v7665_v40 = vld [vmem:[#allocation78_spill] sm:$0xff] }
 0x58b   : > { %4125 = vmatmul.msk.f32.gmra.mxu3 %vm789_vm2, %v3235_v37  ;;  %v2443_v56 = vsel %vm685_vm1, %v7662_v11, %v7661_v53  ;;  %v2476_v52 = vsel %vm718_vm0, %v2444_v13, %v7665_v40  ;;  %v4230_v37 = vld [vmem:[%s4297_s17 + $0xf0] sm:$0xff] }
 0x58c   : > { %v2475_v60 = vsel %vm718_vm0, %v2443_v56, %v7663_v12  ;;  %v2446_v21 = vsel %vm685_vm1, %v4230_v37, %v7668_v44  ;;  %v3380_v56 = vadd.f32 %v6879_v18, %v6826_v28  ;;  %v7671_v28 = vld [vmem:[#allocation67_spill] sm:$0xff] }
 0x58e   : > { %3116 = vrot.lane.b32.xlu1 %v4102_v3, %s4262_s20  ;;  %2384 = vrot.lane.b32.xlu0 %v6703_v0, %s4262_s20  ;;  %v6845_v31 = vpop.f32.mrf.mxu3  ;;  %v7669_v3 = vld [vmem:[#allocation87_spill] sm:$0xff] }
 0x58f   : > { %3118 = vrot.lane.b32.xlu2 %v4103_v61, %s4262_s20  ;;  %v3383_v63 = vadd.f32 %v6879_v18, %v6845_v31  ;;  %v2478_v4 = vsel %vm718_vm0, %v2446_v21, %v7669_v3 }
 0x590   : > { %v2363_v6 = vpop.permute.xlu1 %2362  ;;  %v3097_v27 = vpop.permute.xlu0 %3096 }
 0x591   : > { %v2975_v26 = vpop.permute.xlu2 %2974  ;;  %v2507_v39 = vsel %vm751_vm3, %v2475_v60, %v2363_v6  ;;  %v3236_v0 = vsel %vm751_vm3, %v3204_v15, %v3097_v27  ;;  %v6944_v60 = vpop.f32.mrf.mxu2  ;;  %v4231_v27 = vld [vmem:[%s4297_s17 + $0xf8] sm:$0xff] }
 0x592   : > { %4023 = vmatmul.msk.f32.gmra.mxu2 %vm789_vm2, %v2507_v39 }
 0x593   : > { %4126 = vmatmul.msk.f32.gmra.mxu3 %vm789_vm2, %v3236_v0 }
 0x596   : > { %2990 = vrot.lane.b32.xlu1 %v4005_v23, %s4261_s19  ;;  %2386 = vrot.lane.b32.xlu0 %v6742_v5, %s4262_s20  ;;  %v6862_v36 = vpop.f32.mrf.mxu3  ;;  %v2508_v5 = vsel %vm751_vm3, %v2476_v52, %v6796_v34  ;;  %v2445_v34 = vsel %vm685_vm1, %v4227_v24, %v7666_v59 }
 0x597   : > { %2390 = vrot.lane.b32.xlu2 %v6782_v29, %s4262_s20  ;;  %v3365_v29 = vadd.f32 %v6879_v18, %v6725_v46  ;;  %v2477_v49 = vsel %vm718_vm0, %v2445_v34, %v7667_v16  ;;  %v3386_v12 = vadd.f32 %v6879_v18, %v6862_v36 }
 0x598   : > { %v2875_v42 = vpop.permute.xlu1 %2874  ;;  %v2971_v41 = vpop.permute.xlu0 %2970 }
 0x599   : > { %v6871_v38 = vpop.permute.xlu2 %2370  ;;  %v3173_v1 = vsel %vm685_vm1, %v4226_v10, %v2875_v42  ;;  %v4232_v42 = vld [vmem:[%s4297_s17 + $0x139] sm:$0xff] }
 0x59a   : > { %4024 = vmatmul.msk.f32.gmra.mxu2 %vm789_vm2, %v2508_v5  ;;  %v3205_v46 = vsel %vm718_vm0, %v3173_v1, %v2971_v41  ;;  %v4233_v5 = vld [vmem:[%s4297_s17 + $0x108] sm:$0xff]  ;;  %v7673_v1 = vld [vmem:[#allocation33_spill] sm:$0xff] }
 0x59e   : > { %2388 = vrot.lane.b32.xlu1 %v6779_v50, %s4262_s20  ;;  %2392 = vrot.lane.b32.xlu0 %v4004_v30, %s4262_s20  ;;  %v3388_v48 = vpop.f32.mrf.mxu3 }
 0x59f   : > { %3492 = vrot.lane.b32.xlu2 %v3365_v29, %s4261_s19  ;;  %v3389_v13 = vadd.f32 %v6879_v18, %v3388_v48  ;;  %v7672_v29 = vld [vmem:[#allocation79_spill] sm:$0xff] }
 0x5a0   : > { %v3099_v22 = vpop.permute.xlu1 %3098  ;;  %v2367_v25 = vpop.permute.xlu0 %2366  ;;  %v2448_v10 = vsel %vm685_vm1, %v4233_v5, %v7672_v29 }
 0x5a1   : > { %v6895_v55 = vpop.permute.xlu2 %2882  ;;  %v2509_v50 = vsel %vm751_vm3, %v2477_v49, %v2367_v25  ;;  %v3237_v14 = vsel %vm751_vm3, %v3205_v46, %v3099_v22  ;;  %v2480_v24 = vsel %vm718_vm0, %v2448_v10, %v7673_v1 }
 0x5a2   : > { %4025 = vmatmul.msk.f32.gmra.mxu2 %vm789_vm2, %v2509_v50  ;;  %4127 = vmatmul.msk.f32.gmra.mxu3 %vm789_vm2, %v3237_v14  ;;  %v4234_v14 = vld [vmem:[%s4297_s17 + $0x141] sm:$0xff] }
 0x5a6   : > { %2394 = vrot.lane.b32.xlu1 %v4005_v23, %s4262_s20  ;;  %3494 = vrot.lane.b32.xlu0 %v3368_v45, %s4261_s19  ;;  %v3391_v8 = vpop.f32.mrf.mxu3  ;;  %v3177_v45 = vsel %vm685_vm1, %v4234_v14, %v6895_v55  ;;  %v4241_v14 = vld [vmem:[%s4297_s17 + $0x171] sm:$0xff] }
 0x5a7   : > { %3498 = vrot.lane.b32.xlu2 %v3374_v54, %s4261_s19  ;;  %v3392_v6 = vadd.f32 %v6879_v18, %v3391_v8 }
 0x5a8   : > { %v2973_v9 = vpop.permute.xlu1 %2972  ;;  %v2879_v19 = vpop.permute.xlu0 %2878 }
 0x5a9   : > { %v3206_v30 = vsel %vm718_vm0, %v3174_v57, %v2973_v9  ;;  %v6912_v58 = vpop.permute.xlu2 %3106  ;;  %v3175_v17 = vsel %vm685_vm1, %v4229_v62, %v2879_v19 }
 0x5aa   : > { %v3238_v43 = vsel %vm751_vm3, %v3206_v30, %v6833_v33  ;;  %v3207_v33 = vsel %vm718_vm0, %v3175_v17, %v2975_v26  ;;  %v7670_v26 = vld [vmem:[#allocation64_spill] sm:$0xff] }
 0x5ab   : > { %4128 = vmatmul.msk.f32.gmra.mxu3 %vm789_vm2, %v3238_v43  ;;  %v2447_v39 = vsel %vm685_vm1, %v4231_v27, %v7670_v26  ;;  %v4235_v30 = vld [vmem:[%s4297_s17 + $0x151] sm:$0xff] }
 0x5ac   : > { %v2479_v0 = vsel %vm718_vm0, %v2447_v39, %v7671_v28  ;;  %v4236_v17 = vld [vmem:[%s4297_s17 + $0x110] sm:$0xff] }
 0x5ad   : > { %v2511_v7 = vsel %vm751_vm3, %v2479_v0, %v6871_v38  ;;  %v6969_v38 = vpop.f32.mrf.mxu2  ;;  %v4238_v0 = vld [vmem:[%s4297_s17 + $0x159] sm:$0xff] }
 0x5ae   : > { %3496 = vrot.lane.b32.xlu1 %v3371_v32, %s4261_s19  ;;  %3500 = vrot.lane.b32.xlu0 %v3377_v35, %s4261_s19  ;;  %v3394_v11 = vpop.f32.mrf.mxu3  ;;  %v7674_v32 = vld [vmem:[#allocation25_spill] sm:$0xff] }
 0x5af   : > { %3504 = vrot.lane.b32.xlu2 %v3383_v63, %s4261_s19  ;;  %v3395_v40 = vadd.f32 %v6879_v18, %v3394_v11  ;;  %v2449_v35 = vsel %vm685_vm1, %v4236_v17, %v7674_v32 }
 0x5b0   : > { %v2369_v47 = vpop.permute.xlu1 %2368  ;;  %v3103_v61 = vpop.permute.xlu0 %3102 }
 0x5b1   : > { %v2981_v15 = vpop.permute.xlu2 %2980  ;;  %v2510_v31 = vsel %vm751_vm3, %v2478_v4, %v2369_v47  ;;  %v3239_v53 = vsel %vm751_vm3, %v3207_v33, %v3103_v61  ;;  %v7675_v33 = vld [vmem:[#allocation88_spill] sm:$0xff] }
 0x5b2   : > { %4026 = vmatmul.msk.f32.gmra.mxu2 %vm789_vm2, %v2510_v31  ;;  %v2481_v37 = vsel %vm718_vm0, %v2449_v35, %v7675_v33  ;;  %v7676_v31 = vld [vmem:[#allocation72_spill] sm:$0xff] }
 0x5b3   : > { %4129 = vmatmul.msk.f32.gmra.mxu3 %vm789_vm2, %v3239_v53 }
 0x5b5   : > { %v6987_v57 = vpop.f32.mrf.mxu2 }
 0x5b6   : > { %3502 = vrot.lane.b32.xlu1 %v3380_v56, %s4261_s19  ;;  %3506 = vrot.lane.b32.xlu0 %v3386_v12, %s4261_s19  ;;  %v3397_v52 = vpop.f32.mrf.mxu3  ;;  %v7677_v56 = vld [vmem:[#allocation28_spill] sm:$0xff] }
 0x5b7   : > { %3510 = vrot.lane.b32.xlu2 %v3392_v6, %s4261_s19  ;;  %v3398_v22 = vadd.f32 %v6879_v18, %v3397_v52 }
 0x5b8   : > { %v2881_v23 = vpop.permute.xlu1 %2880  ;;  %v2977_v36 = vpop.permute.xlu0 %2976 }
 0x5b9   : > { %v6955_v20 = vpop.permute.xlu2 %2376  ;;  %v3176_v41 = vsel %vm685_vm1, %v4232_v42, %v2881_v23 }
 0x5ba   : > { %4027 = vmatmul.msk.f32.gmra.mxu2 %vm789_vm2, %v2511_v7  ;;  %v3208_v59 = vsel %vm718_vm0, %v3176_v41, %v2977_v36  ;;  %v4239_v36 = vld [vmem:[%s4297_s17 + $0x128] sm:$0xff]  ;;  %v7678_v7 = vld [vmem:[#allocation44_spill] sm:$0xff] }
 0x5bd   : > { %v7006_v47 = vpop.f32.mrf.mxu2 }
 0x5be   : > { %3508 = vrot.lane.b32.xlu1 %v3389_v13, %s4261_s19  ;;  %3512 = vrot.lane.b32.xlu0 %v3395_v40, %s4261_s19  ;;  %v2451_v13 = vsel %vm685_vm1, %v4239_v36, %v7678_v7  ;;  %v7679_v40 = vld [vmem:[#allocation70_spill] sm:$0xff]  ;;  %v2650_v36 = vadd.f32 %v6879_v18, %v6987_v57 }
 0x5bf   : > { %v2483_v52 = vsel %vm718_vm0, %v2451_v13, %v7679_v40 }
 0x5c0   : > { %v3105_v34 = vpop.permute.xlu1 %3104  ;;  %v2373_v48 = vpop.permute.xlu0 %2372 }
 0x5c1   : > { %v3240_v16 = vsel %vm751_vm3, %v3208_v59, %v3105_v34  ;;  %v6975_v49 = vpop.permute.xlu2 %2888  ;;  %v2512_v46 = vsel %vm751_vm3, %v2480_v24, %v2373_v48  ;;  %v4240_v34 = vld [vmem:[%s4297_s17 + $0x169] sm:$0xff] }
 0x5c2   : > { %4028 = vmatmul.msk.f32.gmra.mxu2 %vm789_vm2, %v2512_v46  ;;  %4130 = vmatmul.msk.f32.gmra.mxu3 %vm789_vm2, %v3240_v16  ;;  %v3180_v48 = vsel %vm685_vm1, %v4240_v34, %v6975_v49  ;;  %v4242_v49 = vld [vmem:[%s4297_s17 + $0x138] sm:$0xff] }
 0x5c5   : > { %v3400_v25 = vpop.f32.mrf.mxu3  ;;  %v7019_v28 = vpop.f32.mrf.mxu2 }
 0x5c6   : > { %v3401_v50 = vadd.f32 %v6879_v18, %v3400_v25  ;;  %3514 = vrot.lane.b32.xlu1 %v3398_v22, %s4261_s19 }
 0x5c8   : > { %v2979_v54 = vpop.permute.xlu1 %2978  ;;  %3516 = vrot.lane.b32.xlu2 %v3401_v50, %s4261_s19  ;;  %v2885_v2 = vpop.permute.xlu0 %2884 }
 0x5c9   : > { %v3209_v9 = vsel %vm718_vm0, %v3177_v45, %v2979_v54  ;;  %v3113_v19 = vpop.permute.xlu2 %3112  ;;  %v3178_v43 = vsel %vm685_vm1, %v4235_v30, %v2885_v2 }
 0x5ca   : > { %v3241_v8 = vsel %vm751_vm3, %v3209_v9, %v6912_v58  ;;  %v3210_v55 = vsel %vm718_vm0, %v3178_v43, %v2981_v15  ;;  %v4237_v15 = vld [vmem:[%s4297_s17 + $0x120] sm:$0xff] }
 0x5cb   : > { %4131 = vmatmul.msk.f32.gmra.mxu3 %vm789_vm2, %v3241_v8  ;;  %v2450_v53 = vsel %vm685_vm1, %v4237_v15, %v7676_v31  ;;  %v7680_v9 = vld [vmem:[#allocation62_spill] sm:$0xff] }
 0x5cc   : > { %v2482_v12 = vsel %vm718_vm0, %v2450_v53, %v7677_v56  ;;  %v2452_v8 = vsel %vm685_vm1, %v4242_v49, %v7680_v9 }
 0x5cd   : > { %v2514_v39 = vsel %vm751_vm3, %v2482_v12, %v6955_v20  ;;  %v7035_v1 = vpop.f32.mrf.mxu2 }
 0x5ce   : > { %v3403_v62 = vpop.f32.mrf.mxu3 }
 0x5cf   : > { %v3404_v63 = vadd.f32 %v6879_v18, %v3403_v62  ;;  %v7681_v62 = vld [vmem:[#allocation89_spill] sm:$0xff] }
 0x5d0   : > { %v2375_v44 = vpop.permute.xlu1 %2374  ;;  %v3109_v58 = vpop.permute.xlu0 %3108 }
 0x5d1   : > { %v2987_v21 = vpop.permute.xlu2 %2986  ;;  %v3242_v3 = vsel %vm751_vm3, %v3210_v55, %v3109_v58  ;;  %3518 = vrot.lane.b32.xlu0 %v3404_v63, %s4261_s19  ;;  %v2513_v4 = vsel %vm751_vm3, %v2481_v37, %v2375_v44  ;;  %v4243_v37 = vld [vmem:[%s4297_s17 + $0x140] sm:$0xff]  ;;  %v7682_v44 = vld [vmem:[#allocation23_spill] sm:$0xff] }
 0x5d2   : > { %4029 = vmatmul.msk.f32.gmra.mxu2 %vm789_vm2, %v2513_v4  ;;  %v2453_v58 = vsel %vm685_vm1, %v4243_v37, %v7682_v44 }
 0x5d3   : > { %4132 = vmatmul.msk.f32.gmra.mxu3 %vm789_vm2, %v3242_v3  ;;  %v7683_v3 = vld [vmem:[#allocation46_spill] sm:$0xff] }
 0x5d4   : > { %v2485_v4 = vsel %vm718_vm0, %v2453_v58, %v7683_v3 }
 0x5d5   : > { %v7053_v30 = vpop.f32.mrf.mxu2 }
 0x5d6   : > { %v3406_v61 = vpop.f32.mrf.mxu3 }
 0x5d7   : > { %v3407_v11 = vadd.f32 %v6879_v18, %v3406_v61  ;;  %v2641_v61 = vadd.f32 %v6879_v18, %v6916_v51  ;;  %v4245_v51 = vld [vmem:[%s4297_s17 + $0x150] sm:$0xff] }
 0x5d8   : > { %v2887_v6 = vpop.permute.xlu1 %2886  ;;  %v2983_v27 = vpop.permute.xlu0 %2982 }
 0x5d9   : > { %v2383_v26 = vpop.permute.xlu2 %2382  ;;  %3520 = vrot.lane.b32.xlu1 %v3407_v11, %s4261_s19  ;;  %v3179_v23 = vsel %vm685_vm1, %v4238_v0, %v2887_v6  ;;  %v4244_v6 = vld [vmem:[%s4297_s17 + $0x181] sm:$0xff] }
 0x5da   : > { %4030 = vmatmul.msk.f32.gmra.mxu2 %vm789_vm2, %v2514_v39  ;;  %v3211_v42 = vsel %vm718_vm0, %v3179_v23, %v2983_v27  ;;  %v2517_v53 = vsel %vm751_vm3, %v2485_v4, %v2383_v26  ;;  %v7684_v39 = vld [vmem:[#allocation73_spill] sm:$0xff]  ;;  %v4249_v4 = vld [vmem:[%s4297_s17 + $0x170] sm:$0xff] }
 0x5db   : > { %v2454_v0 = vsel %vm685_vm1, %v4245_v51, %v7684_v39  ;;  %v7685_v26 = vld [vmem:[#allocation49_spill] sm:$0xff] }
 0x5dc   : > { %v2486_v23 = vsel %vm718_vm0, %v2454_v0, %v7685_v26  ;;  %v4250_v0 = vld [vmem:[%s4297_s17 + $0x180] sm:$0xff]  ;;  %v7692_v26 = vld [vmem:[#allocation56_spill] sm:$0xff] }
 0x5dd   : > { %v7075_v56 = vpop.f32.mrf.mxu2 }
 0x5e0   : > { %v3111_v41 = vpop.permute.xlu1 %3110  ;;  %v2379_v5 = vpop.permute.xlu0 %2378 }
 0x5e1   : > { %v3243_v20 = vsel %vm751_vm3, %v3211_v42, %v3111_v41  ;;  %v7030_v29 = vpop.permute.xlu2 %2894  ;;  %v2515_v10 = vsel %vm751_vm3, %v2483_v52, %v2379_v5 }
 0x5e2   : > { %4031 = vmatmul.msk.f32.gmra.mxu2 %vm789_vm2, %v2515_v10  ;;  %4133 = vmatmul.msk.f32.gmra.mxu3 %vm789_vm2, %v3243_v20 }
 0x5e5   : > { %v3409_v24 = vpop.f32.mrf.mxu3  ;;  %v2667_v5 = vpop.f32.mrf.mxu2 }
 0x5e6   : > { %v3410_v59 = vadd.f32 %v6879_v18, %v3409_v24  ;;  %v4246_v24 = vld [vmem:[%s4297_s17 + $0x158] sm:$0xff] }
 0x5e8   : > { %v2985_v16 = vpop.permute.xlu1 %2984  ;;  %3522 = vrot.lane.b32.xlu2 %v3410_v59, %s4261_s19  ;;  %v2891_v46 = vpop.permute.xlu0 %2890  ;;  %v7686_v59 = vld [vmem:[#allocation45_spill] sm:$0xff] }
 0x5e9   : > { %v3212_v22 = vsel %vm718_vm0, %v3180_v48, %v2985_v16  ;;  %v7043_v25 = vpop.permute.xlu2 %3118  ;;  %v3181_v45 = vsel %vm685_vm1, %v4241_v14, %v2891_v46  ;;  %v2455_v34 = vsel %vm685_vm1, %v4246_v24, %v7686_v59  ;;  %v7687_v48 = vld [vmem:[#allocation32_spill] sm:$0xff]  ;;  %v2659_v46 = vadd.f32 %v6879_v18, %v7035_v1  ;;  %v4251_v24 = vld [vmem:[%s4297_s17 + $0x188] sm:$0xff]  ;;  %v7694_v59 = vld [vmem:[#allocation77_spill] sm:$0xff] }
 0x5ea   : > { %v3244_v50 = vsel %vm751_vm3, %v3212_v22, %v3113_v19  ;;  %v3213_v2 = vsel %vm718_vm0, %v3181_v45, %v2987_v21  ;;  %v2484_v19 = vsel %vm718_vm0, %v2452_v8, %v7681_v62  ;;  %v2487_v16 = vsel %vm718_vm0, %v2455_v34, %v7687_v48  ;;  %v4247_v22 = vld [vmem:[%s4297_s17 + $0x189] sm:$0xff] }
 0x5eb   : > { %4134 = vmatmul.msk.f32.gmra.mxu3 %vm789_vm2, %v3244_v50  ;;  %v3183_v50 = vsel %vm685_vm1, %v4247_v22, %v7030_v29  ;;  %v7688_v62 = vld [vmem:[#allocation68_spill] sm:$0xff]  ;;  %v2459_v34 = vsel %vm685_vm1, %v4251_v24, %v7694_v59  ;;  %v2656_v48 = vadd.f32 %v6879_v18, %v7019_v28 }
 0x5ed   : > { %v7119_v29 = vpop.f32.mrf.mxu2 }
 0x5ee   : > { %v3412_v54 = vpop.f32.mrf.mxu3 }
 0x5ef   : > { %v3413_v43 = vadd.f32 %v6879_v18, %v3412_v54 }
 0x5f0   : > { %v2381_v55 = vpop.permute.xlu1 %2380  ;;  %v3115_v17 = vpop.permute.xlu0 %3114 }
 0x5f1   : > { %v2516_v32 = vsel %vm751_vm3, %v2484_v19, %v2381_v55  ;;  %v7059_v35 = vpop.permute.xlu2 %2390  ;;  %v3245_v63 = vsel %vm751_vm3, %v3213_v2, %v3115_v17  ;;  %3524 = vrot.lane.b32.xlu0 %v3413_v43, %s4261_s19  ;;  %v4248_v43 = vld [vmem:[%s4297_s17 + $0x168] sm:$0xff] }
 0x5f2   : > { %4032 = vmatmul.msk.f32.gmra.mxu2 %vm789_vm2, %v2516_v32  ;;  %v2456_v19 = vsel %vm685_vm1, %v4248_v43, %v7688_v62  ;;  %v7689_v17 = vld [vmem:[#allocation71_spill] sm:$0xff] }
 0x5f3   : > { %4135 = vmatmul.msk.f32.gmra.mxu3 %vm789_vm2, %v3245_v63  ;;  %v2488_v32 = vsel %vm718_vm0, %v2456_v19, %v7689_v17 }
 0x5f6   : > { %v3415_v33 = vpop.f32.mrf.mxu3 }
 0x5f7   : > { %v3416_v21 = vadd.f32 %v6879_v18, %v3415_v33 }
 0x5f8   : > { %v2893_v15 = vpop.permute.xlu1 %2892  ;;  %v2989_v31 = vpop.permute.xlu0 %2988 }
 0x5f9   : > { %v3493_v11 = vpop.permute.xlu2 %3492  ;;  %3526 = vrot.lane.b32.xlu1 %v3416_v21, %s4261_s19  ;;  %v3182_v27 = vsel %vm685_vm1, %v4244_v6, %v2893_v15  ;;  %v2673_v21 = vpop.f32.mrf.mxu2 }
 0x5fa   : > { %v3588_v12 = vsel %vm718_vm0, %v2641_v61, %v3493_v11  ;;  %4033 = vmatmul.msk.f32.gmra.mxu2 %vm789_vm2, %v2517_v53  ;;  %v3214_v7 = vsel %vm718_vm0, %v3182_v27, %v2989_v31  ;;  %v7690_v61 = vld [vmem:[#allocation84_spill] sm:$0xff]  ;;  %v2644_v31 = vadd.f32 %v6879_v18, %v6944_v60  ;;  %v7691_v11 = vld [vmem:[#allocation90_spill] sm:$0xff] }
 0x5fb   : > { %4138 = vst.msk [vmem:[%s5794_s7 + $0x10] sm:$0xff] %vm789_vm2, %v3588_v12  ;;  %v2457_v15 = vsel %vm685_vm1, %v4249_v4, %v7690_v61 }
 0x5fc   : > { %v2489_v12 = vsel %vm718_vm0, %v2457_v15, %v7691_v11 }
 0x5fd   : > { %v2521_v51 = vsel %vm751_vm3, %v2489_v12, %v7059_v35  ;;  %v2653_v35 = vadd.f32 %v6879_v18, %v7006_v47 }
 0x600   : > { %v3117_v13 = vpop.permute.xlu1 %3116  ;;  %v2385_v40 = vpop.permute.xlu0 %2384 }
 0x601   : > { %v3246_v52 = vsel %vm751_vm3, %v3214_v7, %v3117_v13  ;;  %v3499_v42 = vpop.permute.xlu2 %3498  ;;  %v2518_v41 = vsel %vm751_vm3, %v2486_v23, %v2385_v40  ;;  %v2676_v60 = vpop.f32.mrf.mxu2  ;;  %v2458_v23 = vsel %vm685_vm1, %v4250_v0, %v7692_v26  ;;  %v7693_v7 = vld [vmem:[#allocation58_spill] sm:$0xff] }
 0x602   : > { %v3591_v20 = vsel %vm718_vm0, %v2650_v36, %v3499_v42  ;;  %4034 = vmatmul.msk.f32.gmra.mxu2 %vm789_vm2, %v2518_v41  ;;  %4136 = vmatmul.msk.f32.gmra.mxu3 %vm789_vm2, %v3246_v52  ;;  %v2647_v36 = vadd.f32 %v6879_v18, %v6969_v38  ;;  %v2490_v13 = vsel %vm718_vm0, %v2458_v23, %v7693_v7 }
 0x603   : > { %4141 = vst.msk [vmem:[%s5794_s7 + $0x38] sm:$0xff] %vm789_vm2, %v3591_v20  ;;  %v2677_v42 = vadd.f32 %v6879_v18, %v2676_v60 }
 0x605   : > { %v3418_v57 = vpop.f32.mrf.mxu3 }
 0x606   : > { %v3419_v10 = vadd.f32 %v6879_v18, %v3418_v57 }
 0x608   : > { %v2991_v14 = vpop.permute.xlu1 %2990  ;;  %3528 = vrot.lane.b32.xlu2 %v3419_v10, %s4261_s19  ;;  %v2387_v45 = vpop.permute.xlu0 %2386 }
 0x609   : > { %v3215_v54 = vsel %vm718_vm0, %v3183_v50, %v2991_v14  ;;  %v3505_v2 = vpop.permute.xlu2 %3504  ;;  %v2519_v49 = vsel %vm751_vm3, %v2487_v16, %v2387_v45  ;;  %v2662_v16 = vadd.f32 %v6879_v18, %v7053_v30  ;;  %v2679_v28 = vpop.f32.mrf.mxu2 }
 0x60a   : > { %v3594_v9 = vsel %vm718_vm0, %v2659_v46, %v3505_v2  ;;  %4035 = vmatmul.msk.f32.gmra.mxu2 %vm789_vm2, %v2519_v49  ;;  %v3247_v1 = vsel %vm751_vm3, %v3215_v54, %v7043_v25  ;;  %v2668_v25 = vadd.f32 %v6879_v18, %v2667_v5  ;;  %v7695_v46 = vld [vmem:[#allocation26_spill] sm:$0xff]  ;;  %v2665_v49 = vadd.f32 %v6879_v18, %v7075_v56 }
 0x60b   : > { %4144 = vst.msk [vmem:[%s5794_s7 + $0x70] sm:$0xff] %vm789_vm2, %v3594_v9  ;;  %4137 = vmatmul.msk.f32.gmra.mxu3 %vm789_vm2, %v3247_v1  ;;  %v2491_v22 = vsel %vm718_vm0, %v2459_v34, %v7695_v46  ;;  %v2671_v9 = vadd.f32 %v6879_v18, %v7119_v29  ;;  %v2674_v29 = vadd.f32 %v6879_v18, %v2673_v21 }
 0x60e   : > { %v3421_v8 = vpop.f32.mrf.mxu3 }
 0x60f   : > { %v3422_v55 = vadd.f32 %v6879_v18, %v3421_v8 }
 0x610   : > { %v2389_v63 = vpop.permute.xlu1 %2388  ;;  %v2393_v33 = vpop.permute.xlu0 %2392 }
 0x611   : > { %v2520_v37 = vsel %vm751_vm3, %v2488_v32, %v2389_v63  ;;  %v3511_v44 = vpop.permute.xlu2 %3510  ;;  %3530 = vrot.lane.b32.xlu0 %v3422_v55, %s4261_s19  ;;  %v2522_v41 = vsel %vm751_vm3, %v2490_v13, %v2393_v33  ;;  %v2682_v56 = vpop.f32.mrf.mxu2 }
 0x612   : > { %v3597_v58 = vsel %vm718_vm0, %v2668_v25, %v3511_v44  ;;  %4036 = vmatmul.msk.f32.gmra.mxu2 %vm789_vm2, %v2520_v37  ;;  %v2680_v37 = vadd.f32 %v6879_v18, %v2679_v28  ;;  %v2683_v15 = vadd.f32 %v6879_v18, %v2682_v56 }
 0x613   : > { %4147 = vst.msk [vmem:[%s5794_s7 + $0x98] sm:$0xff] %vm789_vm2, %v3597_v58 }
 0x616   : > { %v3424_v3 = vpop.f32.mrf.mxu3 }
 0x617   : > { %v3425_v53 = vadd.f32 %v6879_v18, %v3424_v3 }
 0x618   : > { %v2395_v6 = vpop.permute.xlu1 %2394  ;;  %v3495_v27 = vpop.permute.xlu0 %3494 }
 0x619   : > { %v3589_v39 = vsel %vm718_vm0, %v2644_v31, %v3495_v27  ;;  %3532 = vrot.lane.b32.xlu1 %v3425_v53, %s4261_s19  ;;  %v2523_v45 = vsel %vm751_vm3, %v2491_v22, %v2395_v6  ;;  %v2685_v63 = vpop.f32.mrf.mxu2 }
 0x61a   : > { %4139 = vst.msk [vmem:[%s5794_s7 + $0x18] sm:$0xff] %vm789_vm2, %v3589_v39  ;;  %4037 = vmatmul.msk.f32.gmra.mxu2 %vm789_vm2, %v2521_v51  ;;  %v2686_v33 = vadd.f32 %v6879_v18, %v2685_v63 }
 0x620   : > { %v3497_v40 = vpop.permute.xlu1 %3496  ;;  %v3501_v52 = vpop.permute.xlu0 %3500 }
 0x621   : > { %v3590_v5 = vsel %vm718_vm0, %v2647_v36, %v3497_v40  ;;  %v3592_v20 = vsel %vm718_vm0, %v2653_v35, %v3501_v52  ;;  %v2688_v53 = vpop.f32.mrf.mxu2 }
 0x622   : > { %4140 = vst.msk [vmem:[%s5794_s7 + $0x30] sm:$0xff] %vm789_vm2, %v3590_v5  ;;  %v3517_v38 = vpop.permute.xlu2 %3516  ;;  %4038 = vmatmul.msk.f32.gmra.mxu2 %vm789_vm2, %v2522_v41  ;;  %v2689_v26 = vadd.f32 %v6879_v18, %v2688_v53 }
 0x623   : > { %4142 = vst.msk [vmem:[%s5794_s7 + $0x50] sm:$0xff] %vm789_vm2, %v3592_v20  ;;  %v3600_v47 = vsel %vm718_vm0, %v2677_v42, %v3517_v38 }
 0x624   : > { %4150 = vst.msk [vmem:[%s5794_s7 + $0xd0] sm:$0xff] %vm789_vm2, %v3600_v47 }
 0x625   : > { %v3427_v57 = vpop.f32.mrf.mxu3 }
 0x626   : > { %v3428_v10 = vadd.f32 %v6879_v18, %v3427_v57 }
 0x628   : > { %v3503_v50 = vpop.permute.xlu1 %3502  ;;  %3534 = vrot.lane.b32.xlu2 %v3428_v10, %s4261_s19  ;;  %v3507_v14 = vpop.permute.xlu0 %3506 }
 0x629   : > { %v3593_v54 = vsel %vm718_vm0, %v2656_v48, %v3503_v50  ;;  %v3595_v2 = vsel %vm718_vm0, %v2662_v16, %v3507_v14  ;;  %v2691_v27 = vpop.f32.mrf.mxu2 }
 0x62a   : > { %4143 = vst.msk [vmem:[%s5794_s7 + $0x58] sm:$0xff] %vm789_vm2, %v3593_v54  ;;  %4039 = vmatmul.msk.f32.gmra.mxu2 %vm789_vm2, %v2523_v45  ;;  %v2692_v52 = vadd.f32 %v6879_v18, %v2691_v27 }
 0x62b   : > { %4145 = vst.msk [vmem:[%s5794_s7 + $0x78] sm:$0xff] %vm789_vm2, %v3595_v2 }
 0x62e   : > { %v3430_v30 = vpop.f32.mrf.mxu3 }
 0x62f   : > { %v3431_v1 = vadd.f32 %v6879_v18, %v3430_v30 }
 0x630   : > { %v3509_v8 = vpop.permute.xlu1 %3508  ;;  %v3513_v43 = vpop.permute.xlu0 %3512 }
 0x631   : > { %v3596_v62 = vsel %vm718_vm0, %v2665_v49, %v3509_v8  ;;  %v3598_v19 = vsel %vm718_vm0, %v2671_v9, %v3513_v43  ;;  %3536 = vrot.lane.b32.xlu0 %v3431_v1, %s4261_s19 }
 0x632   : > { %4146 = vst.msk [vmem:[%s5794_s7 + $0x90] sm:$0xff] %vm789_vm2, %v3596_v62 }
 0x633   : > { %4148 = vst.msk [vmem:[%s5794_s7 + $0xb0] sm:$0xff] %vm789_vm2, %v3598_v19 }
 0x635   : > { %v2694_v60 = vpop.f32.mrf.mxu2 }
 0x636   : > { %v3433_v55 = vpop.f32.mrf.mxu3  ;;  %v2695_v0 = vadd.f32 %v6879_v18, %v2694_v60 }
 0x637   : > { %v3434_v17 = vadd.f32 %v6879_v18, %v3433_v55 }
 0x638   : > { %v3515_v32 = vpop.permute.xlu1 %3514 }
 0x639   : > { %v3599_v25 = vsel %vm718_vm0, %v2674_v29, %v3515_v32  ;;  %3538 = vrot.lane.b32.xlu1 %v3434_v17, %s4261_s19 }
 0x63a   : > { %4149 = vst.msk [vmem:[%s5794_s7 + $0xb8] sm:$0xff] %vm789_vm2, %v3599_v25 }
 0x63d   : > { %v2697_v41 = vpop.f32.mrf.mxu2 }
 0x63e   : > { %v2698_v34 = vadd.f32 %v6879_v18, %v2697_v41 }
 0x642   : > { %v3523_v44 = vpop.permute.xlu2 %3522 }
 0x643   : > { %v3603_v58 = vsel %vm718_vm0, %v2686_v33, %v3523_v44  ;;  %v3519_v3 = vpop.permute.xlu0 %3518 }
 0x644   : > { %4153 = vst.msk [vmem:[%s5794_s7 + $0xf8] sm:$0xff] %vm789_vm2, %v3603_v58  ;;  %v3601_v21 = vsel %vm718_vm0, %v2680_v37, %v3519_v3 }
 0x645   : > { %4151 = vst.msk [vmem:[%s5794_s7 + $0xd8] sm:$0xff] %vm789_vm2, %v3601_v21  ;;  %v3436_v4 = vpop.f32.mrf.mxu3  ;;  %v2700_v47 = vpop.f32.mrf.mxu2 }
 0x646   : > { %v3437_v61 = vadd.f32 %v6879_v18, %v3436_v4  ;;  %v2701_v45 = vadd.f32 %v6879_v18, %v2700_v47 }
 0x648   : > { %3540 = vrot.lane.b32.xlu2 %v3437_v61, %s4261_s19 }
 0x64b   : > { %v3521_v31 = vpop.permute.xlu1 %3520 }
 0x64c   : > { %v3602_v11 = vsel %vm718_vm0, %v2683_v15, %v3521_v31 }
 0x64d   : > { %4152 = vst.msk [vmem:[%s5794_s7 + $0xf0] sm:$0xff] %vm789_vm2, %v3602_v11 }
 0x64e   : > { %v3439_v12 = vpop.f32.mrf.mxu3 }
 0x64f   : > { %v3440_v6 = vadd.f32 %v6879_v18, %v3439_v12 }
 0x651   : > { %3542 = vrot.lane.b32.xlu0 %v3440_v6, %s4261_s19 }
 0x655   : > { %v2703_v24 = vpop.f32.mrf.mxu2 }
 0x656   : > { %v3442_v51 = vpop.f32.mrf.mxu3  ;;  %v2704_v59 = vadd.f32 %v6879_v18, %v2703_v24 }
 0x657   : > { %v3443_v39 = vadd.f32 %v6879_v18, %v3442_v51 }
 0x659   : > { %3544 = vrot.lane.b32.xlu1 %v3443_v39, %s4261_s19 }
 0x65d   : > { %v2706_v2 = vpop.f32.mrf.mxu2 }
 0x65e   : > { %v2707_v43 = vadd.f32 %v6879_v18, %v2706_v2 }
 0x662   : > { %v3529_v23 = vpop.permute.xlu2 %3528 }
 0x663   : > { %v3606_v36 = vsel %vm718_vm0, %v2695_v0, %v3529_v23  ;;  %v3525_v35 = vpop.permute.xlu0 %3524 }
 0x664   : > { %4156 = vst.msk [vmem:[%s5794_s7 + $0x130] sm:$0xff] %vm789_vm2, %v3606_v36  ;;  %v3604_v7 = vsel %vm718_vm0, %v2689_v26, %v3525_v35 }
 0x665   : > { %4154 = vst.msk [vmem:[%s5794_s7 + $0x110] sm:$0xff] %vm789_vm2, %v3604_v7  ;;  %v3445_v13 = vpop.f32.mrf.mxu3  ;;  %v2709_v9 = vpop.f32.mrf.mxu2 }
 0x666   : > { %v3446_v40 = vadd.f32 %v6879_v18, %v3445_v13  ;;  %v2710_v29 = vadd.f32 %v6879_v18, %v2709_v9 }
 0x668   : > { %3546 = vrot.lane.b32.xlu2 %v3446_v40, %s4261_s19 }
 0x66b   : > { %v3527_v42 = vpop.permute.xlu1 %3526 }
 0x66c   : > { %v3605_v5 = vsel %vm718_vm0, %v2692_v52, %v3527_v42 }
 0x66d   : > { %4155 = vst.msk [vmem:[%s5794_s7 + $0x118] sm:$0xff] %vm789_vm2, %v3605_v5 }
 0x66e   : > { %v3448_v20 = vpop.f32.mrf.mxu3 }
 0x66f   : > { %v3449_v38 = vadd.f32 %v6879_v18, %v3448_v20 }
 0x671   : > { %3548 = vrot.lane.b32.xlu0 %v3449_v38, %s4261_s19 }
 0x675   : > { %v2712_v1 = vpop.f32.mrf.mxu2 }
 0x676   : > { %v3451_v57 = vpop.f32.mrf.mxu3  ;;  %v2713_v8 = vadd.f32 %v6879_v18, %v2712_v1 }
 0x677   : > { %v3452_v10 = vadd.f32 %v6879_v18, %v3451_v57 }
 0x679   : > { %3550 = vrot.lane.b32.xlu1 %v3452_v10, %s4261_s19 }
 0x67d   : > { %v2715_v17 = vpop.f32.mrf.mxu2 }
 0x67e   : > { %v2716_v44 = vadd.f32 %v6879_v18, %v2715_v17 }
 0x682   : > { %v3535_v48 = vpop.permute.xlu2 %3534 }
 0x683   : > { %v3609_v16 = vsel %vm718_vm0, %v2704_v59, %v3535_v48  ;;  %v3531_v46 = vpop.permute.xlu0 %3530 }
 0x684   : > { %4159 = vst.msk [vmem:[%s5794_s7 + $0x158] sm:$0xff] %vm789_vm2, %v3609_v16  ;;  %v3607_v22 = vsel %vm718_vm0, %v2698_v34, %v3531_v46 }
 0x685   : > { %4157 = vst.msk [vmem:[%s5794_s7 + $0x138] sm:$0xff] %vm789_vm2, %v3607_v22  ;;  %v3454_v50 = vpop.f32.mrf.mxu3  ;;  %v2718_v63 = vpop.f32.mrf.mxu2 }
 0x686   : > { %v3455_v14 = vadd.f32 %v6879_v18, %v3454_v50  ;;  %v2719_v61 = vadd.f32 %v6879_v18, %v2718_v63 }
 0x688   : > { %3552 = vrot.lane.b32.xlu2 %v3455_v14, %s4261_s19 }
 0x68b   : > { %v3533_v54 = vpop.permute.xlu1 %3532 }
 0x68c   : > { %v3608_v28 = vsel %vm718_vm0, %v2701_v45, %v3533_v54 }
 0x68d   : > { %4158 = vst.msk [vmem:[%s5794_s7 + $0x150] sm:$0xff] %vm789_vm2, %v3608_v28  ;;  %v2721_v33 = vpop.f32.mrf.mxu2 }
 0x68e   : > { %v3457_v30 = vpop.f32.mrf.mxu3  ;;  %v2722_v37 = vadd.f32 %v6879_v18, %v2721_v33 }
 0x68f   : > { %v3458_v49 = vadd.f32 %v6879_v18, %v3457_v30 }
 0x691   : > { %3554 = vrot.lane.b32.xlu0 %v3458_v49, %s4261_s19 }
 0x695   : > { %v2724_v15 = vpop.f32.mrf.mxu2 }
 0x696   : > { %v2725_v27 = vadd.f32 %v6879_v18, %v2724_v15 }
 0x69d   : > { %v2727_v11 = vpop.f32.mrf.mxu2 }
 0x69e   : > { %v2728_v26 = vadd.f32 %v6879_v18, %v2727_v11 }
 0x6a2   : > { %v3541_v62 = vpop.permute.xlu2 %3540 }
 0x6a3   : > { %v3612_v19 = vsel %vm718_vm0, %v2713_v8, %v3541_v62  ;;  %v3537_v56 = vpop.permute.xlu0 %3536 }
 0x6a4   : > { %4162 = vst.msk [vmem:[%s5794_s7 + $0x190] sm:$0xff] %vm789_vm2, %v3612_v19  ;;  %v3610_v55 = vsel %vm718_vm0, %v2707_v43, %v3537_v56 }
 0x6a5   : > { %4160 = vst.msk [vmem:[%s5794_s7 + $0x170] sm:$0xff] %vm789_vm2, %v3610_v55  ;;  %v2730_v12 = vpop.f32.mrf.mxu2 }
 0x6a6   : > { %v2731_v6 = vadd.f32 %v6879_v18, %v2730_v12 }
 0x6ab   : > { %v3539_v32 = vpop.permute.xlu1 %3538 }
 0x6ac   : > { %v3611_v25 = vsel %vm718_vm0, %v2710_v29, %v3539_v32 }
 0x6ad   : > { %4161 = vst.msk [vmem:[%s5794_s7 + $0x178] sm:$0xff] %vm789_vm2, %v3611_v25  ;;  %v2733_v35 = vpop.f32.mrf.mxu2 }
 0x6ae   : > { %v2734_v7 = vadd.f32 %v6879_v18, %v2733_v35 }
 0x6c2   : > { %v3547_v58 = vpop.permute.xlu2 %3546 }
 0x6c3   : > { %v3615_v3 = vsel %vm718_vm0, %v2722_v37, %v3547_v58  ;;  %v3543_v21 = vpop.permute.xlu0 %3542 }
 0x6c4   : > { %4165 = vst.msk [vmem:[%s5794_s7 + $0x1b8] sm:$0xff] %vm789_vm2, %v3615_v3  ;;  %v3613_v4 = vsel %vm718_vm0, %v2716_v44, %v3543_v21 }
 0x6c5   : > { %4163 = vst.msk [vmem:[%s5794_s7 + $0x198] sm:$0xff] %vm789_vm2, %v3613_v4 }
 0x6cb   : > { %v3545_v31 = vpop.permute.xlu1 %3544 }
 0x6cc   : > { %v3614_v53 = vsel %vm718_vm0, %v2719_v61, %v3545_v31 }
 0x6cd   : > { %4164 = vst.msk [vmem:[%s5794_s7 + $0x1b0] sm:$0xff] %vm789_vm2, %v3614_v53 }
 0x6e2   : > { %v3553_v51 = vpop.permute.xlu2 %3552 }
 0x6e3   : > { %v3618_v39 = vsel %vm718_vm0, %v2731_v6, %v3553_v51  ;;  %v3549_v60 = vpop.permute.xlu0 %3548 }
 0x6e4   : > { %4168 = vst.msk [vmem:[%s5794_s7 + $0x1f0] sm:$0xff] %vm789_vm2, %v3618_v39  ;;  %v3616_v0 = vsel %vm718_vm0, %v2725_v27, %v3549_v60 }
 0x6e5   : > { %4166 = vst.msk [vmem:[%s5794_s7 + $0x1d0] sm:$0xff] %vm789_vm2, %v3616_v0 }
 0x6eb   : > { %v3551_v23 = vpop.permute.xlu1 %3550 }
 0x6ec   : > { %v3617_v36 = vsel %vm718_vm0, %v2728_v26, %v3551_v23 }
 0x6ed   : > { %4167 = vst.msk [vmem:[%s5794_s7 + $0x1d8] sm:$0xff] %vm789_vm2, %v3617_v36 }
 0x703   : > { %v3555_v13 = vpop.permute.xlu0 %3554 }
 0x704   : > { %v3619_v40 = vsel %vm718_vm0, %v2734_v7, %v3555_v13 }
 0x705   : > { %4169 = vst.msk [vmem:[%s5794_s7 + $0x1f8] sm:$0xff] %vm789_vm2, %v3619_v40 }
 0x706 PF: > { %s13_s12 = sadd.s32 1, %s4258_s12  }
 0x707   : > { %p10_p4 = scmp.ge.s32.totalorder %s13_s12, 4  }
 0x709   :  { %12 = sbr.rel (!%p10_p4) target bundleno = 1 (0x1), region = 68 }

</bundles_post_ra>
